<compile_context>
chip_gen: v7x
topology: tpu7x:2x2x1
jax: 0.10.0
libtpu: 0.0.40
codegen_flags: <defaults>
</compile_context>

<pallas_src>
import functools

import jax
import jax.numpy as jnp
from jax.experimental import pallas as pl
from jax.experimental.pallas import tpu as pltpu


# ----------------------------------------------------------------------------
# Fused Pallas kernel: embeds -> multi-layer biLSTM -> Linear head
# ----------------------------------------------------------------------------

def _build_fused_kernel(*, S, B, H, num_layers, num_dirs):
    """Build the fused biLSTM + Linear kernel for static (S, B, H, layers, dirs).

    Kernel argument order (all whole-array VMEM refs, gridless call):
      x_ref                     : (S, B, E)        embeddings, time-major
      per layer, per direction  : W (Din+H, 4H), b (1, 4H)
      head_w_ref                : (num_dirs*H, C)
      head_b_ref                : (1, C)
      out_ref                   : (S, B, C)        logits, time-major
      acts (scratch)            : 1-2 x VMEM (S, B, num_dirs*H)
    """
    n_wb = num_layers * num_dirs  # number of (W, b) pairs

    def kernel(*args):
        x_ref = args[0]
        wb = args[1:1 + 2 * n_wb]
        head_w_ref = args[1 + 2 * n_wb]
        head_b_ref = args[2 + 2 * n_wb]
        out_ref = args[3 + 2 * n_wb]
        acts = args[4 + 2 * n_wb:]

        def run_direction(read_x, dst_ref, lane_off, w_ref, b_ref, reverse):
            """One LSTM direction over the whole (statically unrolled) sequence."""
            w = w_ref[...]                               # (Din + H, 4H), hoisted
            b = b_ref[...]                               # (1, 4H)
            h = jnp.zeros((B, H), jnp.float32)
            c = jnp.zeros((B, H), jnp.float32)
            for t in range(S):                           # static unroll, S tiny
                s = S - 1 - t if reverse else t
                x_t = read_x(s)                          # (B, Din)
                xh = jnp.concatenate([x_t, h], axis=-1)  # (B, Din + H)
                gates = jnp.dot(xh, w,
                                preferred_element_type=jnp.float32) + b
                sig = jax.nn.sigmoid(gates)              # full 4H vreg at once
                th = jnp.tanh(gates)
                # PyTorch gate order: i, f, g, o
                i_g = sig[:, 0 * H:1 * H]
                f_g = sig[:, 1 * H:2 * H]
                g_g = th[:, 2 * H:3 * H]
                o_g = sig[:, 3 * H:4 * H]
                c = f_g * c + i_g * g_g
                h = o_g * jnp.tanh(c)
                dst_ref[s, :, lane_off:lane_off + H] = h

        # ---- LSTM stack (layers unrolled at trace time) ----
        read_x = lambda s: x_ref[s]
        for layer in range(num_layers):
            dst = acts[layer % len(acts)]   # ping-pong: layer l reads layer l-1
            for d in range(num_dirs):
                w_ref = wb[2 * (layer * num_dirs + d)]
                b_ref = wb[2 * (layer * num_dirs + d) + 1]
                run_direction(read_x, dst, d * H, w_ref, b_ref,
                              reverse=(d == 1))
            read_x = (lambda ref: (lambda s: ref[s]))(dst)

        # ---- hidden2out Linear head, fused into the same kernel ----
        head_w = head_w_ref[...]                         # (num_dirs*H, C)
        head_b = head_b_ref[...]                         # (1, C)
        for s in range(S):
            h_s = read_x(s)                              # (B, num_dirs*H)
            out_ref[s] = (jnp.dot(h_s, head_w,
                                  preferred_element_type=jnp.float32)
                          + head_b).astype(out_ref.dtype)

    return kernel


# ----------------------------------------------------------------------------
# SeqTagger forward
# ----------------------------------------------------------------------------

@functools.partial(jax.jit, static_argnames=("num_layers", "bidirectional"))
def seq_tagger_forward(params, batch_ids, *, num_layers, bidirectional):
    """batch_ids: (B, S) int32 token ids -> logits (B, S, num_class+1)."""
    # embeds = self.embed(batch.t()) -> (S, B, E); dropout = identity (eval).
    embeds = jnp.take(params["embeddings"], batch_ids.T, axis=0)
    S, B, _ = embeds.shape
    num_dirs = 2 if bidirectional else 1
    H = params["lstm"][0]["w"].shape[1] // 4
    C = params["out_w"].shape[1]

    kernel = _build_fused_kernel(S=S, B=B, H=H,
                                 num_layers=num_layers, num_dirs=num_dirs)

    wb = []
    for layer in range(num_layers):
        p = params["lstm"][layer]
        wb += [p["w"], p["b"]]
        if bidirectional:
            wb += [p["w_rev"], p["b_rev"]]

    n_act = 2 if num_layers > 1 else 1
    out_sbc = pl.pallas_call(
        kernel,
        out_shape=jax.ShapeDtypeStruct((S, B, C), jnp.float32),
        scratch_shapes=[pltpu.VMEM((S, B, num_dirs * H), jnp.float32)
                        for _ in range(n_act)],
    )(embeds, *wb, params["out_w"], params["out_b"])

    # out = hidden2out(lstm_out.permute(1, 0, 2)) -> (B, S, C).
    # Tiny (~2.5 KiB) layout fixup; cheaper to leave to XLA than to emit
    # sublane-scattered stores inside the kernel.
    return jnp.transpose(out_sbc, (1, 0, 2))


# ----------------------------------------------------------------------------
# Pure-JAX reference (same params / folded bias) for a numeric self-check
# ----------------------------------------------------------------------------

def _reference_forward(params, batch_ids, *, num_layers, bidirectional):
    x = jnp.take(params["embeddings"], batch_ids.T, axis=0)      # (S, B, E)
    num_dirs = 2 if bidirectional else 1
    H = params["lstm"][0]["w"].shape[1] // 4

    def run_dir(xs, w, b, reverse):
        Bsz = xs.shape[1]

        def step(carry, x_t):
            h, c = carry
            g = jnp.concatenate([x_t, h], axis=-1) @ w + b
            i = jax.nn.sigmoid(g[:, 0 * H:1 * H])
            f = jax.nn.sigmoid(g[:, 1 * H:2 * H])
            gg = jnp.tanh(g[:, 2 * H:3 * H])
            o = jax.nn.sigmoid(g[:, 3 * H:4 * H])
            c = f * c + i * gg
            h = o * jnp.tanh(c)
            return (h, c), h

        init = (jnp.zeros((Bsz, H), jnp.float32),
                jnp.zeros((Bsz, H), jnp.float32))
        _, hs = jax.lax.scan(step, init, xs, reverse=reverse)
        return hs                                                 # (S, B, H)

    for layer in range(num_layers):
        p = params["lstm"][layer]
        outs = [run_dir(x, p["w"], p["b"], reverse=False)]
        if bidirectional:
            outs.append(run_dir(x, p["w_rev"], p["b_rev"], reverse=True))
        x = jnp.concatenate(outs, axis=-1)

    lstm_out = jnp.transpose(x, (1, 0, 2))                        # (B, S, D)
    return lstm_out @ params["out_w"] + params["out_b"]


# ----------------------------------------------------------------------------
# Deterministic parameter construction (synthetic, no checkpoint)
# ----------------------------------------------------------------------------

def make_params(key, *, vocab, embed_dim, hidden, num_layers, bidirectional,
                num_class_plus_one):
    num_dirs = 2 if bidirectional else 1
    n_keys = 3 + 3 * num_dirs * num_layers
    keys = jax.random.split(key, n_keys)
    kit = iter(keys)

    def uni(k, shape, scale):
        return jax.random.uniform(k, shape, jnp.float32, -scale, scale)

    params = {}
    params["embeddings"] = jax.random.normal(next(kit), (vocab, embed_dim),
                                             jnp.float32) * 0.1

    scale = 1.0 / float(hidden) ** 0.5
    lstm_layers = []
    for layer in range(num_layers):
        d_in = embed_dim if layer == 0 else num_dirs * hidden
        # PyTorch stores (4H, Din)/(4H, H); we pre-transpose and pre-concat
        # [w_ih; w_hh] -> (Din+H, 4H) so the kernel does one matmul per step.
        w_ih = uni(next(kit), (d_in, 4 * hidden), scale)
        w_hh = uni(next(kit), (hidden, 4 * hidden), scale)
        lyr = {
            "w": jnp.concatenate([w_ih, w_hh], axis=0),
            "b": uni(next(kit), (1, 4 * hidden), scale),   # b_ih + b_hh folded
        }
        if bidirectional:
            w_ih_r = uni(next(kit), (d_in, 4 * hidden), scale)
            w_hh_r = uni(next(kit), (hidden, 4 * hidden), scale)
            lyr["w_rev"] = jnp.concatenate([w_ih_r, w_hh_r], axis=0)
            lyr["b_rev"] = uni(next(kit), (1, 4 * hidden), scale)
        lstm_layers.append(lyr)
    params["lstm"] = lstm_layers

    d_out_in = num_dirs * hidden
    lin_scale = 1.0 / float(d_out_in) ** 0.5
    params["out_w"] = uni(next(kit), (d_out_in, num_class_plus_one), lin_scale)
    params["out_b"] = uni(next(kit), (1, num_class_plus_one), lin_scale)
    return params


if __name__ == "__main__":
    VOCAB = 20
    EMBED_DIM = 32
    HIDDEN = 32
    NUM_LAYERS = 2
    BIDIRECTIONAL = True
    NUM_CLASS = 9            # SeqTagger uses num_class + 1 output classes
    B, S = 8, 8

    key = jax.random.PRNGKey(0)
    k_param, k_ids = jax.random.split(key)

    params = make_params(
        k_param, vocab=VOCAB, embed_dim=EMBED_DIM, hidden=HIDDEN,
        num_layers=NUM_LAYERS, bidirectional=BIDIRECTIONAL,
        num_class_plus_one=NUM_CLASS + 1)

    batch_ids = jax.random.randint(k_ids, (B, S), 0, VOCAB, jnp.int32)

    out = seq_tagger_forward(params, batch_ids,
                             num_layers=NUM_LAYERS,
                             bidirectional=BIDIRECTIONAL)
    out = jax.block_until_ready(out)
    assert out.shape == (B, S, NUM_CLASS + 1), out.shape
    assert out.dtype == jnp.float32

    # Numeric self-check against a pure-JAX reference of the same math.
    ref = _reference_forward(params, batch_ids,
                             num_layers=NUM_LAYERS,
                             bidirectional=BIDIRECTIONAL)
    max_err = float(jnp.max(jnp.abs(out - ref)))
    assert max_err < 2e-4, f"kernel vs reference mismatch: {max_err}"

    print("KERNEL_OK")
</pallas_src>

<mosaic_0001>
module attributes {stable_mosaic.version = 11 : i64} {
  func.func @kernel(%arg0: memref<8x8x32xf32, #tpu.memory_space<vmem>>, %arg1: memref<64x128xf32, #tpu.memory_space<vmem>>, %arg2: memref<1x128xf32, #tpu.memory_space<vmem>>, %arg3: memref<64x128xf32, #tpu.memory_space<vmem>>, %arg4: memref<1x128xf32, #tpu.memory_space<vmem>>, %arg5: memref<96x128xf32, #tpu.memory_space<vmem>>, %arg6: memref<1x128xf32, #tpu.memory_space<vmem>>, %arg7: memref<96x128xf32, #tpu.memory_space<vmem>>, %arg8: memref<1x128xf32, #tpu.memory_space<vmem>>, %arg9: memref<64x10xf32, #tpu.memory_space<vmem>>, %arg10: memref<1x10xf32, #tpu.memory_space<vmem>>, %arg11: memref<8x8x10xf32, #tpu.memory_space<vmem>>, %arg12: memref<8x8x64xf32, #tpu.memory_space<vmem>>, %arg13: memref<8x8x64xf32, #tpu.memory_space<vmem>>) attributes {dimension_semantics = [], scalar_prefetch = 0 : i64, scratch_operands = 2 : i64, tpu.core_type = #tpu.core_type<tc>} {
    %c0 = arith.constant 0 : index
    %c0_0 = arith.constant 0 : index
    %0 = vector.load %arg1[%c0, %c0_0] : memref<64x128xf32, #tpu.memory_space<vmem>>, vector<64x128xf32>
    %c0_1 = arith.constant 0 : index
    %c0_2 = arith.constant 0 : index
    %1 = vector.load %arg2[%c0_1, %c0_2] : memref<1x128xf32, #tpu.memory_space<vmem>>, vector<1x128xf32>
    %cst = arith.constant 0.000000e+00 : f32
    %2 = vector.broadcast %cst : f32 to vector<8x32xf32>
    %cst_3 = arith.constant 0.000000e+00 : f32
    %3 = vector.broadcast %cst_3 : f32 to vector<8x32xf32>
    %c0_4 = arith.constant 0 : index
    %c0_5 = arith.constant 0 : index
    %c0_6 = arith.constant 0 : index
    %4 = vector.load %arg0[%c0_4, %c0_5, %c0_6] : memref<8x8x32xf32, #tpu.memory_space<vmem>>, vector<1x8x32xf32>
    %5 = vector.shape_cast %4 : vector<1x8x32xf32> to vector<8x32xf32>
    %6 = tpu.concatenate %5, %2 in 1 : vector<8x32xf32>, vector<8x32xf32> -> vector<8x64xf32>
    %cst_7 = arith.constant dense<0.000000e+00> : vector<8x128xf32>
    %7 = tpu.matmul %6, %0, %cst_7 {dimension_numbers = #tpu.dot_dimension_numbers<[1], [0], [0], [1], [0, 0, 1, 1], [], []>} : vector<8x64xf32>, vector<64x128xf32>, vector<8x128xf32> -> vector<8x128xf32>
    %8 = vector.broadcast %1 : vector<1x128xf32> to vector<8x128xf32>
    %9 = arith.addf %7, %8 : vector<8x128xf32>
    %10 = arith.negf %9 : vector<8x128xf32>
    %11 = math.exp %10 : vector<8x128xf32>
    %cst_8 = arith.constant 1.000000e+00 : f32
    %12 = vector.broadcast %cst_8 : f32 to vector<8x128xf32>
    %13 = arith.addf %12, %11 : vector<8x128xf32>
    %14 = arith.divf %12, %13 : vector<8x128xf32>
    %15 = math.tanh %9 : vector<8x128xf32>
    %16 = vector.extract_strided_slice %14 {offsets = [0, 0], sizes = [8, 32], strides = [1, 1]} : vector<8x128xf32> to vector<8x32xf32>
    %17 = vector.extract_strided_slice %14 {offsets = [0, 32], sizes = [8, 32], strides = [1, 1]} : vector<8x128xf32> to vector<8x32xf32>
    %18 = vector.extract_strided_slice %15 {offsets = [0, 64], sizes = [8, 32], strides = [1, 1]} : vector<8x128xf32> to vector<8x32xf32>
    %19 = vector.extract_strided_slice %14 {offsets = [0, 96], sizes = [8, 32], strides = [1, 1]} : vector<8x128xf32> to vector<8x32xf32>
    %20 = arith.mulf %17, %3 : vector<8x32xf32>
    %21 = arith.mulf %16, %18 : vector<8x32xf32>
    %22 = arith.addf %20, %21 : vector<8x32xf32>
    %23 = math.tanh %22 : vector<8x32xf32>
    %24 = arith.mulf %19, %23 : vector<8x32xf32>
    %c0_9 = arith.constant 0 : index
    %c0_10 = arith.constant 0 : index
    %c0_11 = arith.constant 0 : index
    %25 = vector.load %arg12[%c0_9, %c0_10, %c0_11] : memref<8x8x64xf32, #tpu.memory_space<vmem>>, vector<1x8x32xf32>
    %26 = vector.shape_cast %25 : vector<1x8x32xf32> to vector<8x32xf32>
    %27 = vector.shape_cast %24 : vector<8x32xf32> to vector<1x8x32xf32>
    tpu.vector_store %arg12[%c0_9, %c0_10, %c0_11], %27 {strides = array<i32>} : memref<8x8x64xf32, #tpu.memory_space<vmem>>, vector<1x8x32xf32>,
    %c1 = arith.constant 1 : index
    %c0_12 = arith.constant 0 : index
    %c0_13 = arith.constant 0 : index
    %28 = vector.load %arg0[%c1, %c0_12, %c0_13] : memref<8x8x32xf32, #tpu.memory_space<vmem>>, vector<1x8x32xf32>
    %29 = vector.shape_cast %28 : vector<1x8x32xf32> to vector<8x32xf32>
    %30 = tpu.concatenate %29, %24 in 1 : vector<8x32xf32>, vector<8x32xf32> -> vector<8x64xf32>
    %cst_14 = arith.constant dense<0.000000e+00> : vector<8x128xf32>
    %31 = tpu.matmul %30, %0, %cst_14 {dimension_numbers = #tpu.dot_dimension_numbers<[1], [0], [0], [1], [0, 0, 1, 1], [], []>} : vector<8x64xf32>, vector<64x128xf32>, vector<8x128xf32> -> vector<8x128xf32>
    %32 = vector.broadcast %1 : vector<1x128xf32> to vector<8x128xf32>
    %33 = arith.addf %31, %32 : vector<8x128xf32>
    %34 = arith.negf %33 : vector<8x128xf32>
    %35 = math.exp %34 : vector<8x128xf32>
    %cst_15 = arith.constant 1.000000e+00 : f32
    %36 = vector.broadcast %cst_15 : f32 to vector<8x128xf32>
    %37 = arith.addf %36, %35 : vector<8x128xf32>
    %38 = arith.divf %36, %37 : vector<8x128xf32>
    %39 = math.tanh %33 : vector<8x128xf32>
    %40 = vector.extract_strided_slice %38 {offsets = [0, 0], sizes = [8, 32], strides = [1, 1]} : vector<8x128xf32> to vector<8x32xf32>
    %41 = vector.extract_strided_slice %38 {offsets = [0, 32], sizes = [8, 32], strides = [1, 1]} : vector<8x128xf32> to vector<8x32xf32>
    %42 = vector.extract_strided_slice %39 {offsets = [0, 64], sizes = [8, 32], strides = [1, 1]} : vector<8x128xf32> to vector<8x32xf32>
    %43 = vector.extract_strided_slice %38 {offsets = [0, 96], sizes = [8, 32], strides = [1, 1]} : vector<8x128xf32> to vector<8x32xf32>
    %44 = arith.mulf %41, %22 : vector<8x32xf32>
    %45 = arith.mulf %40, %42 : vector<8x32xf32>
    %46 = arith.addf %44, %45 : vector<8x32xf32>
    %47 = math.tanh %46 : vector<8x32xf32>
    %48 = arith.mulf %43, %47 : vector<8x32xf32>
    %c1_16 = arith.constant 1 : index
    %c0_17 = arith.constant 0 : index
    %c0_18 = arith.constant 0 : index
    %49 = vector.load %arg12[%c1_16, %c0_17, %c0_18] : memref<8x8x64xf32, #tpu.memory_space<vmem>>, vector<1x8x32xf32>
    %50 = vector.shape_cast %49 : vector<1x8x32xf32> to vector<8x32xf32>
    %51 = vector.shape_cast %48 : vector<8x32xf32> to vector<1x8x32xf32>
    tpu.vector_store %arg12[%c1_16, %c0_17, %c0_18], %51 {strides = array<i32>} : memref<8x8x64xf32, #tpu.memory_space<vmem>>, vector<1x8x32xf32>,
    %c2 = arith.constant 2 : index
    %c0_19 = arith.constant 0 : index
    %c0_20 = arith.constant 0 : index
    %52 = vector.load %arg0[%c2, %c0_19, %c0_20] : memref<8x8x32xf32, #tpu.memory_space<vmem>>, vector<1x8x32xf32>
    %53 = vector.shape_cast %52 : vector<1x8x32xf32> to vector<8x32xf32>
    %54 = tpu.concatenate %53, %48 in 1 : vector<8x32xf32>, vector<8x32xf32> -> vector<8x64xf32>
    %cst_21 = arith.constant dense<0.000000e+00> : vector<8x128xf32>
    %55 = tpu.matmul %54, %0, %cst_21 {dimension_numbers = #tpu.dot_dimension_numbers<[1], [0], [0], [1], [0, 0, 1, 1], [], []>} : vector<8x64xf32>, vector<64x128xf32>, vector<8x128xf32> -> vector<8x128xf32>
    %56 = vector.broadcast %1 : vector<1x128xf32> to vector<8x128xf32>
    %57 = arith.addf %55, %56 : vector<8x128xf32>
    %58 = arith.negf %57 : vector<8x128xf32>
    %59 = math.exp %58 : vector<8x128xf32>
    %cst_22 = arith.constant 1.000000e+00 : f32
    %60 = vector.broadcast %cst_22 : f32 to vector<8x128xf32>
    %61 = arith.addf %60, %59 : vector<8x128xf32>
    %62 = arith.divf %60, %61 : vector<8x128xf32>
    %63 = math.tanh %57 : vector<8x128xf32>
    %64 = vector.extract_strided_slice %62 {offsets = [0, 0], sizes = [8, 32], strides = [1, 1]} : vector<8x128xf32> to vector<8x32xf32>
    %65 = vector.extract_strided_slice %62 {offsets = [0, 32], sizes = [8, 32], strides = [1, 1]} : vector<8x128xf32> to vector<8x32xf32>
    %66 = vector.extract_strided_slice %63 {offsets = [0, 64], sizes = [8, 32], strides = [1, 1]} : vector<8x128xf32> to vector<8x32xf32>
    %67 = vector.extract_strided_slice %62 {offsets = [0, 96], sizes = [8, 32], strides = [1, 1]} : vector<8x128xf32> to vector<8x32xf32>
    %68 = arith.mulf %65, %46 : vector<8x32xf32>
    %69 = arith.mulf %64, %66 : vector<8x32xf32>
    %70 = arith.addf %68, %69 : vector<8x32xf32>
    %71 = math.tanh %70 : vector<8x32xf32>
    %72 = arith.mulf %67, %71 : vector<8x32xf32>
    %c2_23 = arith.constant 2 : index
    %c0_24 = arith.constant 0 : index
    %c0_25 = arith.constant 0 : index
    %73 = vector.load %arg12[%c2_23, %c0_24, %c0_25] : memref<8x8x64xf32, #tpu.memory_space<vmem>>, vector<1x8x32xf32>
    %74 = vector.shape_cast %73 : vector<1x8x32xf32> to vector<8x32xf32>
    %75 = vector.shape_cast %72 : vector<8x32xf32> to vector<1x8x32xf32>
    tpu.vector_store %arg12[%c2_23, %c0_24, %c0_25], %75 {strides = array<i32>} : memref<8x8x64xf32, #tpu.memory_space<vmem>>, vector<1x8x32xf32>,
    %c3 = arith.constant 3 : index
    %c0_26 = arith.constant 0 : index
    %c0_27 = arith.constant 0 : index
    %76 = vector.load %arg0[%c3, %c0_26, %c0_27] : memref<8x8x32xf32, #tpu.memory_space<vmem>>, vector<1x8x32xf32>
    %77 = vector.shape_cast %76 : vector<1x8x32xf32> to vector<8x32xf32>
    %78 = tpu.concatenate %77, %72 in 1 : vector<8x32xf32>, vector<8x32xf32> -> vector<8x64xf32>
    %cst_28 = arith.constant dense<0.000000e+00> : vector<8x128xf32>
    %79 = tpu.matmul %78, %0, %cst_28 {dimension_numbers = #tpu.dot_dimension_numbers<[1], [0], [0], [1], [0, 0, 1, 1], [], []>} : vector<8x64xf32>, vector<64x128xf32>, vector<8x128xf32> -> vector<8x128xf32>
    %80 = vector.broadcast %1 : vector<1x128xf32> to vector<8x128xf32>
    %81 = arith.addf %79, %80 : vector<8x128xf32>
    %82 = arith.negf %81 : vector<8x128xf32>
    %83 = math.exp %82 : vector<8x128xf32>
    %cst_29 = arith.constant 1.000000e+00 : f32
    %84 = vector.broadcast %cst_29 : f32 to vector<8x128xf32>
    %85 = arith.addf %84, %83 : vector<8x128xf32>
    %86 = arith.divf %84, %85 : vector<8x128xf32>
    %87 = math.tanh %81 : vector<8x128xf32>
    %88 = vector.extract_strided_slice %86 {offsets = [0, 0], sizes = [8, 32], strides = [1, 1]} : vector<8x128xf32> to vector<8x32xf32>
    %89 = vector.extract_strided_slice %86 {offsets = [0, 32], sizes = [8, 32], strides = [1, 1]} : vector<8x128xf32> to vector<8x32xf32>
    %90 = vector.extract_strided_slice %87 {offsets = [0, 64], sizes = [8, 32], strides = [1, 1]} : vector<8x128xf32> to vector<8x32xf32>
    %91 = vector.extract_strided_slice %86 {offsets = [0, 96], sizes = [8, 32], strides = [1, 1]} : vector<8x128xf32> to vector<8x32xf32>
    %92 = arith.mulf %89, %70 : vector<8x32xf32>
    %93 = arith.mulf %88, %90 : vector<8x32xf32>
    %94 = arith.addf %92, %93 : vector<8x32xf32>
    %95 = math.tanh %94 : vector<8x32xf32>
    %96 = arith.mulf %91, %95 : vector<8x32xf32>
    %c3_30 = arith.constant 3 : index
    %c0_31 = arith.constant 0 : index
    %c0_32 = arith.constant 0 : index
    %97 = vector.load %arg12[%c3_30, %c0_31, %c0_32] : memref<8x8x64xf32, #tpu.memory_space<vmem>>, vector<1x8x32xf32>
    %98 = vector.shape_cast %97 : vector<1x8x32xf32> to vector<8x32xf32>
    %99 = vector.shape_cast %96 : vector<8x32xf32> to vector<1x8x32xf32>
    tpu.vector_store %arg12[%c3_30, %c0_31, %c0_32], %99 {strides = array<i32>} : memref<8x8x64xf32, #tpu.memory_space<vmem>>, vector<1x8x32xf32>,
    %c4 = arith.constant 4 : index
    %c0_33 = arith.constant 0 : index
    %c0_34 = arith.constant 0 : index
    %100 = vector.load %arg0[%c4, %c0_33, %c0_34] : memref<8x8x32xf32, #tpu.memory_space<vmem>>, vector<1x8x32xf32>
    %101 = vector.shape_cast %100 : vector<1x8x32xf32> to vector<8x32xf32>
    %102 = tpu.concatenate %101, %96 in 1 : vector<8x32xf32>, vector<8x32xf32> -> vector<8x64xf32>
    %cst_35 = arith.constant dense<0.000000e+00> : vector<8x128xf32>
    %103 = tpu.matmul %102, %0, %cst_35 {dimension_numbers = #tpu.dot_dimension_numbers<[1], [0], [0], [1], [0, 0, 1, 1], [], []>} : vector<8x64xf32>, vector<64x128xf32>, vector<8x128xf32> -> vector<8x128xf32>
    %104 = vector.broadcast %1 : vector<1x128xf32> to vector<8x128xf32>
    %105 = arith.addf %103, %104 : vector<8x128xf32>
    %106 = arith.negf %105 : vector<8x128xf32>
    %107 = math.exp %106 : vector<8x128xf32>
    %cst_36 = arith.constant 1.000000e+00 : f32
    %108 = vector.broadcast %cst_36 : f32 to vector<8x128xf32>
    %109 = arith.addf %108, %107 : vector<8x128xf32>
    %110 = arith.divf %108, %109 : vector<8x128xf32>
    %111 = math.tanh %105 : vector<8x128xf32>
    %112 = vector.extract_strided_slice %110 {offsets = [0, 0], sizes = [8, 32], strides = [1, 1]} : vector<8x128xf32> to vector<8x32xf32>
    %113 = vector.extract_strided_slice %110 {offsets = [0, 32], sizes = [8, 32], strides = [1, 1]} : vector<8x128xf32> to vector<8x32xf32>
    %114 = vector.extract_strided_slice %111 {offsets = [0, 64], sizes = [8, 32], strides = [1, 1]} : vector<8x128xf32> to vector<8x32xf32>
    %115 = vector.extract_strided_slice %110 {offsets = [0, 96], sizes = [8, 32], strides = [1, 1]} : vector<8x128xf32> to vector<8x32xf32>
    %116 = arith.mulf %113, %94 : vector<8x32xf32>
    %117 = arith.mulf %112, %114 : vector<8x32xf32>
    %118 = arith.addf %116, %117 : vector<8x32xf32>
    %119 = math.tanh %118 : vector<8x32xf32>
    %120 = arith.mulf %115, %119 : vector<8x32xf32>
    %c4_37 = arith.constant 4 : index
    %c0_38 = arith.constant 0 : index
    %c0_39 = arith.constant 0 : index
    %121 = vector.load %arg12[%c4_37, %c0_38, %c0_39] : memref<8x8x64xf32, #tpu.memory_space<vmem>>, vector<1x8x32xf32>
    %122 = vector.shape_cast %121 : vector<1x8x32xf32> to vector<8x32xf32>
    %123 = vector.shape_cast %120 : vector<8x32xf32> to vector<1x8x32xf32>
    tpu.vector_store %arg12[%c4_37, %c0_38, %c0_39], %123 {strides = array<i32>} : memref<8x8x64xf32, #tpu.memory_space<vmem>>, vector<1x8x32xf32>,
    %c5 = arith.constant 5 : index
    %c0_40 = arith.constant 0 : index
    %c0_41 = arith.constant 0 : index
    %124 = vector.load %arg0[%c5, %c0_40, %c0_41] : memref<8x8x32xf32, #tpu.memory_space<vmem>>, vector<1x8x32xf32>
    %125 = vector.shape_cast %124 : vector<1x8x32xf32> to vector<8x32xf32>
    %126 = tpu.concatenate %125, %120 in 1 : vector<8x32xf32>, vector<8x32xf32> -> vector<8x64xf32>
    %cst_42 = arith.constant dense<0.000000e+00> : vector<8x128xf32>
    %127 = tpu.matmul %126, %0, %cst_42 {dimension_numbers = #tpu.dot_dimension_numbers<[1], [0], [0], [1], [0, 0, 1, 1], [], []>} : vector<8x64xf32>, vector<64x128xf32>, vector<8x128xf32> -> vector<8x128xf32>
    %128 = vector.broadcast %1 : vector<1x128xf32> to vector<8x128xf32>
    %129 = arith.addf %127, %128 : vector<8x128xf32>
    %130 = arith.negf %129 : vector<8x128xf32>
    %131 = math.exp %130 : vector<8x128xf32>
    %cst_43 = arith.constant 1.000000e+00 : f32
    %132 = vector.broadcast %cst_43 : f32 to vector<8x128xf32>
    %133 = arith.addf %132, %131 : vector<8x128xf32>
    %134 = arith.divf %132, %133 : vector<8x128xf32>
    %135 = math.tanh %129 : vector<8x128xf32>
    %136 = vector.extract_strided_slice %134 {offsets = [0, 0], sizes = [8, 32], strides = [1, 1]} : vector<8x128xf32> to vector<8x32xf32>
    %137 = vector.extract_strided_slice %134 {offsets = [0, 32], sizes = [8, 32], strides = [1, 1]} : vector<8x128xf32> to vector<8x32xf32>
    %138 = vector.extract_strided_slice %135 {offsets = [0, 64], sizes = [8, 32], strides = [1, 1]} : vector<8x128xf32> to vector<8x32xf32>
    %139 = vector.extract_strided_slice %134 {offsets = [0, 96], sizes = [8, 32], strides = [1, 1]} : vector<8x128xf32> to vector<8x32xf32>
    %140 = arith.mulf %137, %118 : vector<8x32xf32>
    %141 = arith.mulf %136, %138 : vector<8x32xf32>
    %142 = arith.addf %140, %141 : vector<8x32xf32>
    %143 = math.tanh %142 : vector<8x32xf32>
    %144 = arith.mulf %139, %143 : vector<8x32xf32>
    %c5_44 = arith.constant 5 : index
    %c0_45 = arith.constant 0 : index
    %c0_46 = arith.constant 0 : index
    %145 = vector.load %arg12[%c5_44, %c0_45, %c0_46] : memref<8x8x64xf32, #tpu.memory_space<vmem>>, vector<1x8x32xf32>
    %146 = vector.shape_cast %145 : vector<1x8x32xf32> to vector<8x32xf32>
    %147 = vector.shape_cast %144 : vector<8x32xf32> to vector<1x8x32xf32>
    tpu.vector_store %arg12[%c5_44, %c0_45, %c0_46], %147 {strides = array<i32>} : memref<8x8x64xf32, #tpu.memory_space<vmem>>, vector<1x8x32xf32>,
    %c6 = arith.constant 6 : index
    %c0_47 = arith.constant 0 : index
    %c0_48 = arith.constant 0 : index
    %148 = vector.load %arg0[%c6, %c0_47, %c0_48] : memref<8x8x32xf32, #tpu.memory_space<vmem>>, vector<1x8x32xf32>
    %149 = vector.shape_cast %148 : vector<1x8x32xf32> to vector<8x32xf32>
    %150 = tpu.concatenate %149, %144 in 1 : vector<8x32xf32>, vector<8x32xf32> -> vector<8x64xf32>
    %cst_49 = arith.constant dense<0.000000e+00> : vector<8x128xf32>
    %151 = tpu.matmul %150, %0, %cst_49 {dimension_numbers = #tpu.dot_dimension_numbers<[1], [0], [0], [1], [0, 0, 1, 1], [], []>} : vector<8x64xf32>, vector<64x128xf32>, vector<8x128xf32> -> vector<8x128xf32>
    %152 = vector.broadcast %1 : vector<1x128xf32> to vector<8x128xf32>
    %153 = arith.addf %151, %152 : vector<8x128xf32>
    %154 = arith.negf %153 : vector<8x128xf32>
    %155 = math.exp %154 : vector<8x128xf32>
    %cst_50 = arith.constant 1.000000e+00 : f32
    %156 = vector.broadcast %cst_50 : f32 to vector<8x128xf32>
    %157 = arith.addf %156, %155 : vector<8x128xf32>
    %158 = arith.divf %156, %157 : vector<8x128xf32>
    %159 = math.tanh %153 : vector<8x128xf32>
    %160 = vector.extract_strided_slice %158 {offsets = [0, 0], sizes = [8, 32], strides = [1, 1]} : vector<8x128xf32> to vector<8x32xf32>
    %161 = vector.extract_strided_slice %158 {offsets = [0, 32], sizes = [8, 32], strides = [1, 1]} : vector<8x128xf32> to vector<8x32xf32>
    %162 = vector.extract_strided_slice %159 {offsets = [0, 64], sizes = [8, 32], strides = [1, 1]} : vector<8x128xf32> to vector<8x32xf32>
    %163 = vector.extract_strided_slice %158 {offsets = [0, 96], sizes = [8, 32], strides = [1, 1]} : vector<8x128xf32> to vector<8x32xf32>
    %164 = arith.mulf %161, %142 : vector<8x32xf32>
    %165 = arith.mulf %160, %162 : vector<8x32xf32>
    %166 = arith.addf %164, %165 : vector<8x32xf32>
    %167 = math.tanh %166 : vector<8x32xf32>
    %168 = arith.mulf %163, %167 : vector<8x32xf32>
    %c6_51 = arith.constant 6 : index
    %c0_52 = arith.constant 0 : index
    %c0_53 = arith.constant 0 : index
    %169 = vector.load %arg12[%c6_51, %c0_52, %c0_53] : memref<8x8x64xf32, #tpu.memory_space<vmem>>, vector<1x8x32xf32>
    %170 = vector.shape_cast %169 : vector<1x8x32xf32> to vector<8x32xf32>
    %171 = vector.shape_cast %168 : vector<8x32xf32> to vector<1x8x32xf32>
    tpu.vector_store %arg12[%c6_51, %c0_52, %c0_53], %171 {strides = array<i32>} : memref<8x8x64xf32, #tpu.memory_space<vmem>>, vector<1x8x32xf32>,
    %c7 = arith.constant 7 : index
    %c0_54 = arith.constant 0 : index
    %c0_55 = arith.constant 0 : index
    %172 = vector.load %arg0[%c7, %c0_54, %c0_55] : memref<8x8x32xf32, #tpu.memory_space<vmem>>, vector<1x8x32xf32>
    %173 = vector.shape_cast %172 : vector<1x8x32xf32> to vector<8x32xf32>
    %174 = tpu.concatenate %173, %168 in 1 : vector<8x32xf32>, vector<8x32xf32> -> vector<8x64xf32>
    %cst_56 = arith.constant dense<0.000000e+00> : vector<8x128xf32>
    %175 = tpu.matmul %174, %0, %cst_56 {dimension_numbers = #tpu.dot_dimension_numbers<[1], [0], [0], [1], [0, 0, 1, 1], [], []>} : vector<8x64xf32>, vector<64x128xf32>, vector<8x128xf32> -> vector<8x128xf32>
    %176 = vector.broadcast %1 : vector<1x128xf32> to vector<8x128xf32>
    %177 = arith.addf %175, %176 : vector<8x128xf32>
    %178 = arith.negf %177 : vector<8x128xf32>
    %179 = math.exp %178 : vector<8x128xf32>
    %cst_57 = arith.constant 1.000000e+00 : f32
    %180 = vector.broadcast %cst_57 : f32 to vector<8x128xf32>
    %181 = arith.addf %180, %179 : vector<8x128xf32>
    %182 = arith.divf %180, %181 : vector<8x128xf32>
    %183 = math.tanh %177 : vector<8x128xf32>
    %184 = vector.extract_strided_slice %182 {offsets = [0, 0], sizes = [8, 32], strides = [1, 1]} : vector<8x128xf32> to vector<8x32xf32>
    %185 = vector.extract_strided_slice %182 {offsets = [0, 32], sizes = [8, 32], strides = [1, 1]} : vector<8x128xf32> to vector<8x32xf32>
    %186 = vector.extract_strided_slice %183 {offsets = [0, 64], sizes = [8, 32], strides = [1, 1]} : vector<8x128xf32> to vector<8x32xf32>
    %187 = vector.extract_strided_slice %182 {offsets = [0, 96], sizes = [8, 32], strides = [1, 1]} : vector<8x128xf32> to vector<8x32xf32>
    %188 = arith.mulf %185, %166 : vector<8x32xf32>
    %189 = arith.mulf %184, %186 : vector<8x32xf32>
    %190 = arith.addf %188, %189 : vector<8x32xf32>
    %191 = math.tanh %190 : vector<8x32xf32>
    %192 = arith.mulf %187, %191 : vector<8x32xf32>
    %c7_58 = arith.constant 7 : index
    %c0_59 = arith.constant 0 : index
    %c0_60 = arith.constant 0 : index
    %193 = vector.load %arg12[%c7_58, %c0_59, %c0_60] : memref<8x8x64xf32, #tpu.memory_space<vmem>>, vector<1x8x32xf32>
    %194 = vector.shape_cast %193 : vector<1x8x32xf32> to vector<8x32xf32>
    %195 = vector.shape_cast %192 : vector<8x32xf32> to vector<1x8x32xf32>
    tpu.vector_store %arg12[%c7_58, %c0_59, %c0_60], %195 {strides = array<i32>} : memref<8x8x64xf32, #tpu.memory_space<vmem>>, vector<1x8x32xf32>,
    %c0_61 = arith.constant 0 : index
    %c0_62 = arith.constant 0 : index
    %196 = vector.load %arg3[%c0_61, %c0_62] : memref<64x128xf32, #tpu.memory_space<vmem>>, vector<64x128xf32>
    %c0_63 = arith.constant 0 : index
    %c0_64 = arith.constant 0 : index
    %197 = vector.load %arg4[%c0_63, %c0_64] : memref<1x128xf32, #tpu.memory_space<vmem>>, vector<1x128xf32>
    %cst_65 = arith.constant 0.000000e+00 : f32
    %198 = vector.broadcast %cst_65 : f32 to vector<8x32xf32>
    %cst_66 = arith.constant 0.000000e+00 : f32
    %199 = vector.broadcast %cst_66 : f32 to vector<8x32xf32>
    %c7_67 = arith.constant 7 : index
    %c0_68 = arith.constant 0 : index
    %c0_69 = arith.constant 0 : index
    %200 = vector.load %arg0[%c7_67, %c0_68, %c0_69] : memref<8x8x32xf32, #tpu.memory_space<vmem>>, vector<1x8x32xf32>
    %201 = vector.shape_cast %200 : vector<1x8x32xf32> to vector<8x32xf32>
    %202 = tpu.concatenate %201, %198 in 1 : vector<8x32xf32>, vector<8x32xf32> -> vector<8x64xf32>
    %cst_70 = arith.constant dense<0.000000e+00> : vector<8x128xf32>
    %203 = tpu.matmul %202, %196, %cst_70 {dimension_numbers = #tpu.dot_dimension_numbers<[1], [0], [0], [1], [0, 0, 1, 1], [], []>} : vector<8x64xf32>, vector<64x128xf32>, vector<8x128xf32> -> vector<8x128xf32>
    %204 = vector.broadcast %197 : vector<1x128xf32> to vector<8x128xf32>
    %205 = arith.addf %203, %204 : vector<8x128xf32>
    %206 = arith.negf %205 : vector<8x128xf32>
    %207 = math.exp %206 : vector<8x128xf32>
    %cst_71 = arith.constant 1.000000e+00 : f32
    %208 = vector.broadcast %cst_71 : f32 to vector<8x128xf32>
    %209 = arith.addf %208, %207 : vector<8x128xf32>
    %210 = arith.divf %208, %209 : vector<8x128xf32>
    %211 = math.tanh %205 : vector<8x128xf32>
    %212 = vector.extract_strided_slice %210 {offsets = [0, 0], sizes = [8, 32], strides = [1, 1]} : vector<8x128xf32> to vector<8x32xf32>
    %213 = vector.extract_strided_slice %210 {offsets = [0, 32], sizes = [8, 32], strides = [1, 1]} : vector<8x128xf32> to vector<8x32xf32>
    %214 = vector.extract_strided_slice %211 {offsets = [0, 64], sizes = [8, 32], strides = [1, 1]} : vector<8x128xf32> to vector<8x32xf32>
    %215 = vector.extract_strided_slice %210 {offsets = [0, 96], sizes = [8, 32], strides = [1, 1]} : vector<8x128xf32> to vector<8x32xf32>
    %216 = arith.mulf %213, %199 : vector<8x32xf32>
    %217 = arith.mulf %212, %214 : vector<8x32xf32>
    %218 = arith.addf %216, %217 : vector<8x32xf32>
    %219 = math.tanh %218 : vector<8x32xf32>
    %220 = arith.mulf %215, %219 : vector<8x32xf32>
    %c7_72 = arith.constant 7 : index
    %c0_73 = arith.constant 0 : index
    %c32 = arith.constant 32 : index
    %221 = vector.load %arg12[%c7_72, %c0_73, %c32] : memref<8x8x64xf32, #tpu.memory_space<vmem>>, vector<1x8x32xf32>
    %222 = vector.shape_cast %221 : vector<1x8x32xf32> to vector<8x32xf32>
    %223 = vector.shape_cast %220 : vector<8x32xf32> to vector<1x8x32xf32>
    tpu.vector_store %arg12[%c7_72, %c0_73, %c32], %223 {strides = array<i32>} : memref<8x8x64xf32, #tpu.memory_space<vmem>>, vector<1x8x32xf32>,
    %c6_74 = arith.constant 6 : index
    %c0_75 = arith.constant 0 : index
    %c0_76 = arith.constant 0 : index
    %224 = vector.load %arg0[%c6_74, %c0_75, %c0_76] : memref<8x8x32xf32, #tpu.memory_space<vmem>>, vector<1x8x32xf32>
    %225 = vector.shape_cast %224 : vector<1x8x32xf32> to vector<8x32xf32>
    %226 = tpu.concatenate %225, %220 in 1 : vector<8x32xf32>, vector<8x32xf32> -> vector<8x64xf32>
    %cst_77 = arith.constant dense<0.000000e+00> : vector<8x128xf32>
    %227 = tpu.matmul %226, %196, %cst_77 {dimension_numbers = #tpu.dot_dimension_numbers<[1], [0], [0], [1], [0, 0, 1, 1], [], []>} : vector<8x64xf32>, vector<64x128xf32>, vector<8x128xf32> -> vector<8x128xf32>
    %228 = vector.broadcast %197 : vector<1x128xf32> to vector<8x128xf32>
    %229 = arith.addf %227, %228 : vector<8x128xf32>
    %230 = arith.negf %229 : vector<8x128xf32>
    %231 = math.exp %230 : vector<8x128xf32>
    %cst_78 = arith.constant 1.000000e+00 : f32
    %232 = vector.broadcast %cst_78 : f32 to vector<8x128xf32>
    %233 = arith.addf %232, %231 : vector<8x128xf32>
    %234 = arith.divf %232, %233 : vector<8x128xf32>
    %235 = math.tanh %229 : vector<8x128xf32>
    %236 = vector.extract_strided_slice %234 {offsets = [0, 0], sizes = [8, 32], strides = [1, 1]} : vector<8x128xf32> to vector<8x32xf32>
    %237 = vector.extract_strided_slice %234 {offsets = [0, 32], sizes = [8, 32], strides = [1, 1]} : vector<8x128xf32> to vector<8x32xf32>
    %238 = vector.extract_strided_slice %235 {offsets = [0, 64], sizes = [8, 32], strides = [1, 1]} : vector<8x128xf32> to vector<8x32xf32>
    %239 = vector.extract_strided_slice %234 {offsets = [0, 96], sizes = [8, 32], strides = [1, 1]} : vector<8x128xf32> to vector<8x32xf32>
    %240 = arith.mulf %237, %218 : vector<8x32xf32>
    %241 = arith.mulf %236, %238 : vector<8x32xf32>
    %242 = arith.addf %240, %241 : vector<8x32xf32>
    %243 = math.tanh %242 : vector<8x32xf32>
    %244 = arith.mulf %239, %243 : vector<8x32xf32>
    %c6_79 = arith.constant 6 : index
    %c0_80 = arith.constant 0 : index
    %c32_81 = arith.constant 32 : index
    %245 = vector.load %arg12[%c6_79, %c0_80, %c32_81] : memref<8x8x64xf32, #tpu.memory_space<vmem>>, vector<1x8x32xf32>
    %246 = vector.shape_cast %245 : vector<1x8x32xf32> to vector<8x32xf32>
    %247 = vector.shape_cast %244 : vector<8x32xf32> to vector<1x8x32xf32>
    tpu.vector_store %arg12[%c6_79, %c0_80, %c32_81], %247 {strides = array<i32>} : memref<8x8x64xf32, #tpu.memory_space<vmem>>, vector<1x8x32xf32>,
    %c5_82 = arith.constant 5 : index
    %c0_83 = arith.constant 0 : index
    %c0_84 = arith.constant 0 : index
    %248 = vector.load %arg0[%c5_82, %c0_83, %c0_84] : memref<8x8x32xf32, #tpu.memory_space<vmem>>, vector<1x8x32xf32>
    %249 = vector.shape_cast %248 : vector<1x8x32xf32> to vector<8x32xf32>
    %250 = tpu.concatenate %249, %244 in 1 : vector<8x32xf32>, vector<8x32xf32> -> vector<8x64xf32>
    %cst_85 = arith.constant dense<0.000000e+00> : vector<8x128xf32>
    %251 = tpu.matmul %250, %196, %cst_85 {dimension_numbers = #tpu.dot_dimension_numbers<[1], [0], [0], [1], [0, 0, 1, 1], [], []>} : vector<8x64xf32>, vector<64x128xf32>, vector<8x128xf32> -> vector<8x128xf32>
    %252 = vector.broadcast %197 : vector<1x128xf32> to vector<8x128xf32>
    %253 = arith.addf %251, %252 : vector<8x128xf32>
    %254 = arith.negf %253 : vector<8x128xf32>
    %255 = math.exp %254 : vector<8x128xf32>
    %cst_86 = arith.constant 1.000000e+00 : f32
    %256 = vector.broadcast %cst_86 : f32 to vector<8x128xf32>
    %257 = arith.addf %256, %255 : vector<8x128xf32>
    %258 = arith.divf %256, %257 : vector<8x128xf32>
    %259 = math.tanh %253 : vector<8x128xf32>
    %260 = vector.extract_strided_slice %258 {offsets = [0, 0], sizes = [8, 32], strides = [1, 1]} : vector<8x128xf32> to vector<8x32xf32>
    %261 = vector.extract_strided_slice %258 {offsets = [0, 32], sizes = [8, 32], strides = [1, 1]} : vector<8x128xf32> to vector<8x32xf32>
    %262 = vector.extract_strided_slice %259 {offsets = [0, 64], sizes = [8, 32], strides = [1, 1]} : vector<8x128xf32> to vector<8x32xf32>
    %263 = vector.extract_strided_slice %258 {offsets = [0, 96], sizes = [8, 32], strides = [1, 1]} : vector<8x128xf32> to vector<8x32xf32>
    %264 = arith.mulf %261, %242 : vector<8x32xf32>
    %265 = arith.mulf %260, %262 : vector<8x32xf32>
    %266 = arith.addf %264, %265 : vector<8x32xf32>
    %267 = math.tanh %266 : vector<8x32xf32>
    %268 = arith.mulf %263, %267 : vector<8x32xf32>
    %c5_87 = arith.constant 5 : index
    %c0_88 = arith.constant 0 : index
    %c32_89 = arith.constant 32 : index
    %269 = vector.load %arg12[%c5_87, %c0_88, %c32_89] : memref<8x8x64xf32, #tpu.memory_space<vmem>>, vector<1x8x32xf32>
    %270 = vector.shape_cast %269 : vector<1x8x32xf32> to vector<8x32xf32>
    %271 = vector.shape_cast %268 : vector<8x32xf32> to vector<1x8x32xf32>
    tpu.vector_store %arg12[%c5_87, %c0_88, %c32_89], %271 {strides = array<i32>} : memref<8x8x64xf32, #tpu.memory_space<vmem>>, vector<1x8x32xf32>,
    %c4_90 = arith.constant 4 : index
    %c0_91 = arith.constant 0 : index
    %c0_92 = arith.constant 0 : index
    %272 = vector.load %arg0[%c4_90, %c0_91, %c0_92] : memref<8x8x32xf32, #tpu.memory_space<vmem>>, vector<1x8x32xf32>
    %273 = vector.shape_cast %272 : vector<1x8x32xf32> to vector<8x32xf32>
    %274 = tpu.concatenate %273, %268 in 1 : vector<8x32xf32>, vector<8x32xf32> -> vector<8x64xf32>
    %cst_93 = arith.constant dense<0.000000e+00> : vector<8x128xf32>
    %275 = tpu.matmul %274, %196, %cst_93 {dimension_numbers = #tpu.dot_dimension_numbers<[1], [0], [0], [1], [0, 0, 1, 1], [], []>} : vector<8x64xf32>, vector<64x128xf32>, vector<8x128xf32> -> vector<8x128xf32>
    %276 = vector.broadcast %197 : vector<1x128xf32> to vector<8x128xf32>
    %277 = arith.addf %275, %276 : vector<8x128xf32>
    %278 = arith.negf %277 : vector<8x128xf32>
    %279 = math.exp %278 : vector<8x128xf32>
    %cst_94 = arith.constant 1.000000e+00 : f32
    %280 = vector.broadcast %cst_94 : f32 to vector<8x128xf32>
    %281 = arith.addf %280, %279 : vector<8x128xf32>
    %282 = arith.divf %280, %281 : vector<8x128xf32>
    %283 = math.tanh %277 : vector<8x128xf32>
    %284 = vector.extract_strided_slice %282 {offsets = [0, 0], sizes = [8, 32], strides = [1, 1]} : vector<8x128xf32> to vector<8x32xf32>
    %285 = vector.extract_strided_slice %282 {offsets = [0, 32], sizes = [8, 32], strides = [1, 1]} : vector<8x128xf32> to vector<8x32xf32>
    %286 = vector.extract_strided_slice %283 {offsets = [0, 64], sizes = [8, 32], strides = [1, 1]} : vector<8x128xf32> to vector<8x32xf32>
    %287 = vector.extract_strided_slice %282 {offsets = [0, 96], sizes = [8, 32], strides = [1, 1]} : vector<8x128xf32> to vector<8x32xf32>
    %288 = arith.mulf %285, %266 : vector<8x32xf32>
    %289 = arith.mulf %284, %286 : vector<8x32xf32>
    %290 = arith.addf %288, %289 : vector<8x32xf32>
    %291 = math.tanh %290 : vector<8x32xf32>
    %292 = arith.mulf %287, %291 : vector<8x32xf32>
    %c4_95 = arith.constant 4 : index
    %c0_96 = arith.constant 0 : index
    %c32_97 = arith.constant 32 : index
    %293 = vector.load %arg12[%c4_95, %c0_96, %c32_97] : memref<8x8x64xf32, #tpu.memory_space<vmem>>, vector<1x8x32xf32>
    %294 = vector.shape_cast %293 : vector<1x8x32xf32> to vector<8x32xf32>
    %295 = vector.shape_cast %292 : vector<8x32xf32> to vector<1x8x32xf32>
    tpu.vector_store %arg12[%c4_95, %c0_96, %c32_97], %295 {strides = array<i32>} : memref<8x8x64xf32, #tpu.memory_space<vmem>>, vector<1x8x32xf32>,
    %c3_98 = arith.constant 3 : index
    %c0_99 = arith.constant 0 : index
    %c0_100 = arith.constant 0 : index
    %296 = vector.load %arg0[%c3_98, %c0_99, %c0_100] : memref<8x8x32xf32, #tpu.memory_space<vmem>>, vector<1x8x32xf32>
    %297 = vector.shape_cast %296 : vector<1x8x32xf32> to vector<8x32xf32>
    %298 = tpu.concatenate %297, %292 in 1 : vector<8x32xf32>, vector<8x32xf32> -> vector<8x64xf32>
    %cst_101 = arith.constant dense<0.000000e+00> : vector<8x128xf32>
    %299 = tpu.matmul %298, %196, %cst_101 {dimension_numbers = #tpu.dot_dimension_numbers<[1], [0], [0], [1], [0, 0, 1, 1], [], []>} : vector<8x64xf32>, vector<64x128xf32>, vector<8x128xf32> -> vector<8x128xf32>
    %300 = vector.broadcast %197 : vector<1x128xf32> to vector<8x128xf32>
    %301 = arith.addf %299, %300 : vector<8x128xf32>
    %302 = arith.negf %301 : vector<8x128xf32>
    %303 = math.exp %302 : vector<8x128xf32>
    %cst_102 = arith.constant 1.000000e+00 : f32
    %304 = vector.broadcast %cst_102 : f32 to vector<8x128xf32>
    %305 = arith.addf %304, %303 : vector<8x128xf32>
    %306 = arith.divf %304, %305 : vector<8x128xf32>
    %307 = math.tanh %301 : vector<8x128xf32>
    %308 = vector.extract_strided_slice %306 {offsets = [0, 0], sizes = [8, 32], strides = [1, 1]} : vector<8x128xf32> to vector<8x32xf32>
    %309 = vector.extract_strided_slice %306 {offsets = [0, 32], sizes = [8, 32], strides = [1, 1]} : vector<8x128xf32> to vector<8x32xf32>
    %310 = vector.extract_strided_slice %307 {offsets = [0, 64], sizes = [8, 32], strides = [1, 1]} : vector<8x128xf32> to vector<8x32xf32>
    %311 = vector.extract_strided_slice %306 {offsets = [0, 96], sizes = [8, 32], strides = [1, 1]} : vector<8x128xf32> to vector<8x32xf32>
    %312 = arith.mulf %309, %290 : vector<8x32xf32>
    %313 = arith.mulf %308, %310 : vector<8x32xf32>
    %314 = arith.addf %312, %313 : vector<8x32xf32>
    %315 = math.tanh %314 : vector<8x32xf32>
    %316 = arith.mulf %311, %315 : vector<8x32xf32>
    %c3_103 = arith.constant 3 : index
    %c0_104 = arith.constant 0 : index
    %c32_105 = arith.constant 32 : index
    %317 = vector.load %arg12[%c3_103, %c0_104, %c32_105] : memref<8x8x64xf32, #tpu.memory_space<vmem>>, vector<1x8x32xf32>
    %318 = vector.shape_cast %317 : vector<1x8x32xf32> to vector<8x32xf32>
    %319 = vector.shape_cast %316 : vector<8x32xf32> to vector<1x8x32xf32>
    tpu.vector_store %arg12[%c3_103, %c0_104, %c32_105], %319 {strides = array<i32>} : memref<8x8x64xf32, #tpu.memory_space<vmem>>, vector<1x8x32xf32>,
    %c2_106 = arith.constant 2 : index
    %c0_107 = arith.constant 0 : index
    %c0_108 = arith.constant 0 : index
    %320 = vector.load %arg0[%c2_106, %c0_107, %c0_108] : memref<8x8x32xf32, #tpu.memory_space<vmem>>, vector<1x8x32xf32>
    %321 = vector.shape_cast %320 : vector<1x8x32xf32> to vector<8x32xf32>
    %322 = tpu.concatenate %321, %316 in 1 : vector<8x32xf32>, vector<8x32xf32> -> vector<8x64xf32>
    %cst_109 = arith.constant dense<0.000000e+00> : vector<8x128xf32>
    %323 = tpu.matmul %322, %196, %cst_109 {dimension_numbers = #tpu.dot_dimension_numbers<[1], [0], [0], [1], [0, 0, 1, 1], [], []>} : vector<8x64xf32>, vector<64x128xf32>, vector<8x128xf32> -> vector<8x128xf32>
    %324 = vector.broadcast %197 : vector<1x128xf32> to vector<8x128xf32>
    %325 = arith.addf %323, %324 : vector<8x128xf32>
    %326 = arith.negf %325 : vector<8x128xf32>
    %327 = math.exp %326 : vector<8x128xf32>
    %cst_110 = arith.constant 1.000000e+00 : f32
    %328 = vector.broadcast %cst_110 : f32 to vector<8x128xf32>
    %329 = arith.addf %328, %327 : vector<8x128xf32>
    %330 = arith.divf %328, %329 : vector<8x128xf32>
    %331 = math.tanh %325 : vector<8x128xf32>
    %332 = vector.extract_strided_slice %330 {offsets = [0, 0], sizes = [8, 32], strides = [1, 1]} : vector<8x128xf32> to vector<8x32xf32>
    %333 = vector.extract_strided_slice %330 {offsets = [0, 32], sizes = [8, 32], strides = [1, 1]} : vector<8x128xf32> to vector<8x32xf32>
    %334 = vector.extract_strided_slice %331 {offsets = [0, 64], sizes = [8, 32], strides = [1, 1]} : vector<8x128xf32> to vector<8x32xf32>
    %335 = vector.extract_strided_slice %330 {offsets = [0, 96], sizes = [8, 32], strides = [1, 1]} : vector<8x128xf32> to vector<8x32xf32>
    %336 = arith.mulf %333, %314 : vector<8x32xf32>
    %337 = arith.mulf %332, %334 : vector<8x32xf32>
    %338 = arith.addf %336, %337 : vector<8x32xf32>
    %339 = math.tanh %338 : vector<8x32xf32>
    %340 = arith.mulf %335, %339 : vector<8x32xf32>
    %c2_111 = arith.constant 2 : index
    %c0_112 = arith.constant 0 : index
    %c32_113 = arith.constant 32 : index
    %341 = vector.load %arg12[%c2_111, %c0_112, %c32_113] : memref<8x8x64xf32, #tpu.memory_space<vmem>>, vector<1x8x32xf32>
    %342 = vector.shape_cast %341 : vector<1x8x32xf32> to vector<8x32xf32>
    %343 = vector.shape_cast %340 : vector<8x32xf32> to vector<1x8x32xf32>
    tpu.vector_store %arg12[%c2_111, %c0_112, %c32_113], %343 {strides = array<i32>} : memref<8x8x64xf32, #tpu.memory_space<vmem>>, vector<1x8x32xf32>,
    %c1_114 = arith.constant 1 : index
    %c0_115 = arith.constant 0 : index
    %c0_116 = arith.constant 0 : index
    %344 = vector.load %arg0[%c1_114, %c0_115, %c0_116] : memref<8x8x32xf32, #tpu.memory_space<vmem>>, vector<1x8x32xf32>
    %345 = vector.shape_cast %344 : vector<1x8x32xf32> to vector<8x32xf32>
    %346 = tpu.concatenate %345, %340 in 1 : vector<8x32xf32>, vector<8x32xf32> -> vector<8x64xf32>
    %cst_117 = arith.constant dense<0.000000e+00> : vector<8x128xf32>
    %347 = tpu.matmul %346, %196, %cst_117 {dimension_numbers = #tpu.dot_dimension_numbers<[1], [0], [0], [1], [0, 0, 1, 1], [], []>} : vector<8x64xf32>, vector<64x128xf32>, vector<8x128xf32> -> vector<8x128xf32>
    %348 = vector.broadcast %197 : vector<1x128xf32> to vector<8x128xf32>
    %349 = arith.addf %347, %348 : vector<8x128xf32>
    %350 = arith.negf %349 : vector<8x128xf32>
    %351 = math.exp %350 : vector<8x128xf32>
    %cst_118 = arith.constant 1.000000e+00 : f32
    %352 = vector.broadcast %cst_118 : f32 to vector<8x128xf32>
    %353 = arith.addf %352, %351 : vector<8x128xf32>
    %354 = arith.divf %352, %353 : vector<8x128xf32>
    %355 = math.tanh %349 : vector<8x128xf32>
    %356 = vector.extract_strided_slice %354 {offsets = [0, 0], sizes = [8, 32], strides = [1, 1]} : vector<8x128xf32> to vector<8x32xf32>
    %357 = vector.extract_strided_slice %354 {offsets = [0, 32], sizes = [8, 32], strides = [1, 1]} : vector<8x128xf32> to vector<8x32xf32>
    %358 = vector.extract_strided_slice %355 {offsets = [0, 64], sizes = [8, 32], strides = [1, 1]} : vector<8x128xf32> to vector<8x32xf32>
    %359 = vector.extract_strided_slice %354 {offsets = [0, 96], sizes = [8, 32], strides = [1, 1]} : vector<8x128xf32> to vector<8x32xf32>
    %360 = arith.mulf %357, %338 : vector<8x32xf32>
    %361 = arith.mulf %356, %358 : vector<8x32xf32>
    %362 = arith.addf %360, %361 : vector<8x32xf32>
    %363 = math.tanh %362 : vector<8x32xf32>
    %364 = arith.mulf %359, %363 : vector<8x32xf32>
    %c1_119 = arith.constant 1 : index
    %c0_120 = arith.constant 0 : index
    %c32_121 = arith.constant 32 : index
    %365 = vector.load %arg12[%c1_119, %c0_120, %c32_121] : memref<8x8x64xf32, #tpu.memory_space<vmem>>, vector<1x8x32xf32>
    %366 = vector.shape_cast %365 : vector<1x8x32xf32> to vector<8x32xf32>
    %367 = vector.shape_cast %364 : vector<8x32xf32> to vector<1x8x32xf32>
    tpu.vector_store %arg12[%c1_119, %c0_120, %c32_121], %367 {strides = array<i32>} : memref<8x8x64xf32, #tpu.memory_space<vmem>>, vector<1x8x32xf32>,
    %c0_122 = arith.constant 0 : index
    %c0_123 = arith.constant 0 : index
    %c0_124 = arith.constant 0 : index
    %368 = vector.load %arg0[%c0_122, %c0_123, %c0_124] : memref<8x8x32xf32, #tpu.memory_space<vmem>>, vector<1x8x32xf32>
    %369 = vector.shape_cast %368 : vector<1x8x32xf32> to vector<8x32xf32>
    %370 = tpu.concatenate %369, %364 in 1 : vector<8x32xf32>, vector<8x32xf32> -> vector<8x64xf32>
    %cst_125 = arith.constant dense<0.000000e+00> : vector<8x128xf32>
    %371 = tpu.matmul %370, %196, %cst_125 {dimension_numbers = #tpu.dot_dimension_numbers<[1], [0], [0], [1], [0, 0, 1, 1], [], []>} : vector<8x64xf32>, vector<64x128xf32>, vector<8x128xf32> -> vector<8x128xf32>
    %372 = vector.broadcast %197 : vector<1x128xf32> to vector<8x128xf32>
    %373 = arith.addf %371, %372 : vector<8x128xf32>
    %374 = arith.negf %373 : vector<8x128xf32>
    %375 = math.exp %374 : vector<8x128xf32>
    %cst_126 = arith.constant 1.000000e+00 : f32
    %376 = vector.broadcast %cst_126 : f32 to vector<8x128xf32>
    %377 = arith.addf %376, %375 : vector<8x128xf32>
    %378 = arith.divf %376, %377 : vector<8x128xf32>
    %379 = math.tanh %373 : vector<8x128xf32>
    %380 = vector.extract_strided_slice %378 {offsets = [0, 0], sizes = [8, 32], strides = [1, 1]} : vector<8x128xf32> to vector<8x32xf32>
    %381 = vector.extract_strided_slice %378 {offsets = [0, 32], sizes = [8, 32], strides = [1, 1]} : vector<8x128xf32> to vector<8x32xf32>
    %382 = vector.extract_strided_slice %379 {offsets = [0, 64], sizes = [8, 32], strides = [1, 1]} : vector<8x128xf32> to vector<8x32xf32>
    %383 = vector.extract_strided_slice %378 {offsets = [0, 96], sizes = [8, 32], strides = [1, 1]} : vector<8x128xf32> to vector<8x32xf32>
    %384 = arith.mulf %381, %362 : vector<8x32xf32>
    %385 = arith.mulf %380, %382 : vector<8x32xf32>
    %386 = arith.addf %384, %385 : vector<8x32xf32>
    %387 = math.tanh %386 : vector<8x32xf32>
    %388 = arith.mulf %383, %387 : vector<8x32xf32>
    %c0_127 = arith.constant 0 : index
    %c0_128 = arith.constant 0 : index
    %c32_129 = arith.constant 32 : index
    %389 = vector.load %arg12[%c0_127, %c0_128, %c32_129] : memref<8x8x64xf32, #tpu.memory_space<vmem>>, vector<1x8x32xf32>
    %390 = vector.shape_cast %389 : vector<1x8x32xf32> to vector<8x32xf32>
    %391 = vector.shape_cast %388 : vector<8x32xf32> to vector<1x8x32xf32>
    tpu.vector_store %arg12[%c0_127, %c0_128, %c32_129], %391 {strides = array<i32>} : memref<8x8x64xf32, #tpu.memory_space<vmem>>, vector<1x8x32xf32>,
    %c0_130 = arith.constant 0 : index
    %c0_131 = arith.constant 0 : index
    %392 = vector.load %arg5[%c0_130, %c0_131] : memref<96x128xf32, #tpu.memory_space<vmem>>, vector<96x128xf32>
    %c0_132 = arith.constant 0 : index
    %c0_133 = arith.constant 0 : index
    %393 = vector.load %arg6[%c0_132, %c0_133] : memref<1x128xf32, #tpu.memory_space<vmem>>, vector<1x128xf32>
    %cst_134 = arith.constant 0.000000e+00 : f32
    %394 = vector.broadcast %cst_134 : f32 to vector<8x32xf32>
    %cst_135 = arith.constant 0.000000e+00 : f32
    %395 = vector.broadcast %cst_135 : f32 to vector<8x32xf32>
    %c0_136 = arith.constant 0 : index
    %c0_137 = arith.constant 0 : index
    %c0_138 = arith.constant 0 : index
    %396 = vector.load %arg12[%c0_136, %c0_137, %c0_138] : memref<8x8x64xf32, #tpu.memory_space<vmem>>, vector<1x8x64xf32>
    %397 = vector.shape_cast %396 : vector<1x8x64xf32> to vector<8x64xf32>
    %398 = tpu.concatenate %397, %394 in 1 : vector<8x64xf32>, vector<8x32xf32> -> vector<8x96xf32>
    %cst_139 = arith.constant dense<0.000000e+00> : vector<8x128xf32>
    %399 = tpu.matmul %398, %392, %cst_139 {dimension_numbers = #tpu.dot_dimension_numbers<[1], [0], [0], [1], [0, 0, 1, 1], [], []>} : vector<8x96xf32>, vector<96x128xf32>, vector<8x128xf32> -> vector<8x128xf32>
    %400 = vector.broadcast %393 : vector<1x128xf32> to vector<8x128xf32>
    %401 = arith.addf %399, %400 : vector<8x128xf32>
    %402 = arith.negf %401 : vector<8x128xf32>
    %403 = math.exp %402 : vector<8x128xf32>
    %cst_140 = arith.constant 1.000000e+00 : f32
    %404 = vector.broadcast %cst_140 : f32 to vector<8x128xf32>
    %405 = arith.addf %404, %403 : vector<8x128xf32>
    %406 = arith.divf %404, %405 : vector<8x128xf32>
    %407 = math.tanh %401 : vector<8x128xf32>
    %408 = vector.extract_strided_slice %406 {offsets = [0, 0], sizes = [8, 32], strides = [1, 1]} : vector<8x128xf32> to vector<8x32xf32>
    %409 = vector.extract_strided_slice %406 {offsets = [0, 32], sizes = [8, 32], strides = [1, 1]} : vector<8x128xf32> to vector<8x32xf32>
    %410 = vector.extract_strided_slice %407 {offsets = [0, 64], sizes = [8, 32], strides = [1, 1]} : vector<8x128xf32> to vector<8x32xf32>
    %411 = vector.extract_strided_slice %406 {offsets = [0, 96], sizes = [8, 32], strides = [1, 1]} : vector<8x128xf32> to vector<8x32xf32>
    %412 = arith.mulf %409, %395 : vector<8x32xf32>
    %413 = arith.mulf %408, %410 : vector<8x32xf32>
    %414 = arith.addf %412, %413 : vector<8x32xf32>
    %415 = math.tanh %414 : vector<8x32xf32>
    %416 = arith.mulf %411, %415 : vector<8x32xf32>
    %c0_141 = arith.constant 0 : index
    %c0_142 = arith.constant 0 : index
    %c0_143 = arith.constant 0 : index
    %417 = vector.load %arg13[%c0_141, %c0_142, %c0_143] : memref<8x8x64xf32, #tpu.memory_space<vmem>>, vector<1x8x32xf32>
    %418 = vector.shape_cast %417 : vector<1x8x32xf32> to vector<8x32xf32>
    %419 = vector.shape_cast %416 : vector<8x32xf32> to vector<1x8x32xf32>
    tpu.vector_store %arg13[%c0_141, %c0_142, %c0_143], %419 {strides = array<i32>} : memref<8x8x64xf32, #tpu.memory_space<vmem>>, vector<1x8x32xf32>,
    %c1_144 = arith.constant 1 : index
    %c0_145 = arith.constant 0 : index
    %c0_146 = arith.constant 0 : index
    %420 = vector.load %arg12[%c1_144, %c0_145, %c0_146] : memref<8x8x64xf32, #tpu.memory_space<vmem>>, vector<1x8x64xf32>
    %421 = vector.shape_cast %420 : vector<1x8x64xf32> to vector<8x64xf32>
    %422 = tpu.concatenate %421, %416 in 1 : vector<8x64xf32>, vector<8x32xf32> -> vector<8x96xf32>
    %cst_147 = arith.constant dense<0.000000e+00> : vector<8x128xf32>
    %423 = tpu.matmul %422, %392, %cst_147 {dimension_numbers = #tpu.dot_dimension_numbers<[1], [0], [0], [1], [0, 0, 1, 1], [], []>} : vector<8x96xf32>, vector<96x128xf32>, vector<8x128xf32> -> vector<8x128xf32>
    %424 = vector.broadcast %393 : vector<1x128xf32> to vector<8x128xf32>
    %425 = arith.addf %423, %424 : vector<8x128xf32>
    %426 = arith.negf %425 : vector<8x128xf32>
    %427 = math.exp %426 : vector<8x128xf32>
    %cst_148 = arith.constant 1.000000e+00 : f32
    %428 = vector.broadcast %cst_148 : f32 to vector<8x128xf32>
    %429 = arith.addf %428, %427 : vector<8x128xf32>
    %430 = arith.divf %428, %429 : vector<8x128xf32>
    %431 = math.tanh %425 : vector<8x128xf32>
    %432 = vector.extract_strided_slice %430 {offsets = [0, 0], sizes = [8, 32], strides = [1, 1]} : vector<8x128xf32> to vector<8x32xf32>
    %433 = vector.extract_strided_slice %430 {offsets = [0, 32], sizes = [8, 32], strides = [1, 1]} : vector<8x128xf32> to vector<8x32xf32>
    %434 = vector.extract_strided_slice %431 {offsets = [0, 64], sizes = [8, 32], strides = [1, 1]} : vector<8x128xf32> to vector<8x32xf32>
    %435 = vector.extract_strided_slice %430 {offsets = [0, 96], sizes = [8, 32], strides = [1, 1]} : vector<8x128xf32> to vector<8x32xf32>
    %436 = arith.mulf %433, %414 : vector<8x32xf32>
    %437 = arith.mulf %432, %434 : vector<8x32xf32>
    %438 = arith.addf %436, %437 : vector<8x32xf32>
    %439 = math.tanh %438 : vector<8x32xf32>
    %440 = arith.mulf %435, %439 : vector<8x32xf32>
    %c1_149 = arith.constant 1 : index
    %c0_150 = arith.constant 0 : index
    %c0_151 = arith.constant 0 : index
    %441 = vector.load %arg13[%c1_149, %c0_150, %c0_151] : memref<8x8x64xf32, #tpu.memory_space<vmem>>, vector<1x8x32xf32>
    %442 = vector.shape_cast %441 : vector<1x8x32xf32> to vector<8x32xf32>
    %443 = vector.shape_cast %440 : vector<8x32xf32> to vector<1x8x32xf32>
    tpu.vector_store %arg13[%c1_149, %c0_150, %c0_151], %443 {strides = array<i32>} : memref<8x8x64xf32, #tpu.memory_space<vmem>>, vector<1x8x32xf32>,
    %c2_152 = arith.constant 2 : index
    %c0_153 = arith.constant 0 : index
    %c0_154 = arith.constant 0 : index
    %444 = vector.load %arg12[%c2_152, %c0_153, %c0_154] : memref<8x8x64xf32, #tpu.memory_space<vmem>>, vector<1x8x64xf32>
    %445 = vector.shape_cast %444 : vector<1x8x64xf32> to vector<8x64xf32>
    %446 = tpu.concatenate %445, %440 in 1 : vector<8x64xf32>, vector<8x32xf32> -> vector<8x96xf32>
    %cst_155 = arith.constant dense<0.000000e+00> : vector<8x128xf32>
    %447 = tpu.matmul %446, %392, %cst_155 {dimension_numbers = #tpu.dot_dimension_numbers<[1], [0], [0], [1], [0, 0, 1, 1], [], []>} : vector<8x96xf32>, vector<96x128xf32>, vector<8x128xf32> -> vector<8x128xf32>
    %448 = vector.broadcast %393 : vector<1x128xf32> to vector<8x128xf32>
    %449 = arith.addf %447, %448 : vector<8x128xf32>
    %450 = arith.negf %449 : vector<8x128xf32>
    %451 = math.exp %450 : vector<8x128xf32>
    %cst_156 = arith.constant 1.000000e+00 : f32
    %452 = vector.broadcast %cst_156 : f32 to vector<8x128xf32>
    %453 = arith.addf %452, %451 : vector<8x128xf32>
    %454 = arith.divf %452, %453 : vector<8x128xf32>
    %455 = math.tanh %449 : vector<8x128xf32>
    %456 = vector.extract_strided_slice %454 {offsets = [0, 0], sizes = [8, 32], strides = [1, 1]} : vector<8x128xf32> to vector<8x32xf32>
    %457 = vector.extract_strided_slice %454 {offsets = [0, 32], sizes = [8, 32], strides = [1, 1]} : vector<8x128xf32> to vector<8x32xf32>
    %458 = vector.extract_strided_slice %455 {offsets = [0, 64], sizes = [8, 32], strides = [1, 1]} : vector<8x128xf32> to vector<8x32xf32>
    %459 = vector.extract_strided_slice %454 {offsets = [0, 96], sizes = [8, 32], strides = [1, 1]} : vector<8x128xf32> to vector<8x32xf32>
    %460 = arith.mulf %457, %438 : vector<8x32xf32>
    %461 = arith.mulf %456, %458 : vector<8x32xf32>
    %462 = arith.addf %460, %461 : vector<8x32xf32>
    %463 = math.tanh %462 : vector<8x32xf32>
    %464 = arith.mulf %459, %463 : vector<8x32xf32>
    %c2_157 = arith.constant 2 : index
    %c0_158 = arith.constant 0 : index
    %c0_159 = arith.constant 0 : index
    %465 = vector.load %arg13[%c2_157, %c0_158, %c0_159] : memref<8x8x64xf32, #tpu.memory_space<vmem>>, vector<1x8x32xf32>
    %466 = vector.shape_cast %465 : vector<1x8x32xf32> to vector<8x32xf32>
    %467 = vector.shape_cast %464 : vector<8x32xf32> to vector<1x8x32xf32>
    tpu.vector_store %arg13[%c2_157, %c0_158, %c0_159], %467 {strides = array<i32>} : memref<8x8x64xf32, #tpu.memory_space<vmem>>, vector<1x8x32xf32>,
    %c3_160 = arith.constant 3 : index
    %c0_161 = arith.constant 0 : index
    %c0_162 = arith.constant 0 : index
    %468 = vector.load %arg12[%c3_160, %c0_161, %c0_162] : memref<8x8x64xf32, #tpu.memory_space<vmem>>, vector<1x8x64xf32>
    %469 = vector.shape_cast %468 : vector<1x8x64xf32> to vector<8x64xf32>
    %470 = tpu.concatenate %469, %464 in 1 : vector<8x64xf32>, vector<8x32xf32> -> vector<8x96xf32>
    %cst_163 = arith.constant dense<0.000000e+00> : vector<8x128xf32>
    %471 = tpu.matmul %470, %392, %cst_163 {dimension_numbers = #tpu.dot_dimension_numbers<[1], [0], [0], [1], [0, 0, 1, 1], [], []>} : vector<8x96xf32>, vector<96x128xf32>, vector<8x128xf32> -> vector<8x128xf32>
    %472 = vector.broadcast %393 : vector<1x128xf32> to vector<8x128xf32>
    %473 = arith.addf %471, %472 : vector<8x128xf32>
    %474 = arith.negf %473 : vector<8x128xf32>
    %475 = math.exp %474 : vector<8x128xf32>
    %cst_164 = arith.constant 1.000000e+00 : f32
    %476 = vector.broadcast %cst_164 : f32 to vector<8x128xf32>
    %477 = arith.addf %476, %475 : vector<8x128xf32>
    %478 = arith.divf %476, %477 : vector<8x128xf32>
    %479 = math.tanh %473 : vector<8x128xf32>
    %480 = vector.extract_strided_slice %478 {offsets = [0, 0], sizes = [8, 32], strides = [1, 1]} : vector<8x128xf32> to vector<8x32xf32>
    %481 = vector.extract_strided_slice %478 {offsets = [0, 32], sizes = [8, 32], strides = [1, 1]} : vector<8x128xf32> to vector<8x32xf32>
    %482 = vector.extract_strided_slice %479 {offsets = [0, 64], sizes = [8, 32], strides = [1, 1]} : vector<8x128xf32> to vector<8x32xf32>
    %483 = vector.extract_strided_slice %478 {offsets = [0, 96], sizes = [8, 32], strides = [1, 1]} : vector<8x128xf32> to vector<8x32xf32>
    %484 = arith.mulf %481, %462 : vector<8x32xf32>
    %485 = arith.mulf %480, %482 : vector<8x32xf32>
    %486 = arith.addf %484, %485 : vector<8x32xf32>
    %487 = math.tanh %486 : vector<8x32xf32>
    %488 = arith.mulf %483, %487 : vector<8x32xf32>
    %c3_165 = arith.constant 3 : index
    %c0_166 = arith.constant 0 : index
    %c0_167 = arith.constant 0 : index
    %489 = vector.load %arg13[%c3_165, %c0_166, %c0_167] : memref<8x8x64xf32, #tpu.memory_space<vmem>>, vector<1x8x32xf32>
    %490 = vector.shape_cast %489 : vector<1x8x32xf32> to vector<8x32xf32>
    %491 = vector.shape_cast %488 : vector<8x32xf32> to vector<1x8x32xf32>
    tpu.vector_store %arg13[%c3_165, %c0_166, %c0_167], %491 {strides = array<i32>} : memref<8x8x64xf32, #tpu.memory_space<vmem>>, vector<1x8x32xf32>,
    %c4_168 = arith.constant 4 : index
    %c0_169 = arith.constant 0 : index
    %c0_170 = arith.constant 0 : index
    %492 = vector.load %arg12[%c4_168, %c0_169, %c0_170] : memref<8x8x64xf32, #tpu.memory_space<vmem>>, vector<1x8x64xf32>
    %493 = vector.shape_cast %492 : vector<1x8x64xf32> to vector<8x64xf32>
    %494 = tpu.concatenate %493, %488 in 1 : vector<8x64xf32>, vector<8x32xf32> -> vector<8x96xf32>
    %cst_171 = arith.constant dense<0.000000e+00> : vector<8x128xf32>
    %495 = tpu.matmul %494, %392, %cst_171 {dimension_numbers = #tpu.dot_dimension_numbers<[1], [0], [0], [1], [0, 0, 1, 1], [], []>} : vector<8x96xf32>, vector<96x128xf32>, vector<8x128xf32> -> vector<8x128xf32>
    %496 = vector.broadcast %393 : vector<1x128xf32> to vector<8x128xf32>
    %497 = arith.addf %495, %496 : vector<8x128xf32>
    %498 = arith.negf %497 : vector<8x128xf32>
    %499 = math.exp %498 : vector<8x128xf32>
    %cst_172 = arith.constant 1.000000e+00 : f32
    %500 = vector.broadcast %cst_172 : f32 to vector<8x128xf32>
    %501 = arith.addf %500, %499 : vector<8x128xf32>
    %502 = arith.divf %500, %501 : vector<8x128xf32>
    %503 = math.tanh %497 : vector<8x128xf32>
    %504 = vector.extract_strided_slice %502 {offsets = [0, 0], sizes = [8, 32], strides = [1, 1]} : vector<8x128xf32> to vector<8x32xf32>
    %505 = vector.extract_strided_slice %502 {offsets = [0, 32], sizes = [8, 32], strides = [1, 1]} : vector<8x128xf32> to vector<8x32xf32>
    %506 = vector.extract_strided_slice %503 {offsets = [0, 64], sizes = [8, 32], strides = [1, 1]} : vector<8x128xf32> to vector<8x32xf32>
    %507 = vector.extract_strided_slice %502 {offsets = [0, 96], sizes = [8, 32], strides = [1, 1]} : vector<8x128xf32> to vector<8x32xf32>
    %508 = arith.mulf %505, %486 : vector<8x32xf32>
    %509 = arith.mulf %504, %506 : vector<8x32xf32>
    %510 = arith.addf %508, %509 : vector<8x32xf32>
    %511 = math.tanh %510 : vector<8x32xf32>
    %512 = arith.mulf %507, %511 : vector<8x32xf32>
    %c4_173 = arith.constant 4 : index
    %c0_174 = arith.constant 0 : index
    %c0_175 = arith.constant 0 : index
    %513 = vector.load %arg13[%c4_173, %c0_174, %c0_175] : memref<8x8x64xf32, #tpu.memory_space<vmem>>, vector<1x8x32xf32>
    %514 = vector.shape_cast %513 : vector<1x8x32xf32> to vector<8x32xf32>
    %515 = vector.shape_cast %512 : vector<8x32xf32> to vector<1x8x32xf32>
    tpu.vector_store %arg13[%c4_173, %c0_174, %c0_175], %515 {strides = array<i32>} : memref<8x8x64xf32, #tpu.memory_space<vmem>>, vector<1x8x32xf32>,
    %c5_176 = arith.constant 5 : index
    %c0_177 = arith.constant 0 : index
    %c0_178 = arith.constant 0 : index
    %516 = vector.load %arg12[%c5_176, %c0_177, %c0_178] : memref<8x8x64xf32, #tpu.memory_space<vmem>>, vector<1x8x64xf32>
    %517 = vector.shape_cast %516 : vector<1x8x64xf32> to vector<8x64xf32>
    %518 = tpu.concatenate %517, %512 in 1 : vector<8x64xf32>, vector<8x32xf32> -> vector<8x96xf32>
    %cst_179 = arith.constant dense<0.000000e+00> : vector<8x128xf32>
    %519 = tpu.matmul %518, %392, %cst_179 {dimension_numbers = #tpu.dot_dimension_numbers<[1], [0], [0], [1], [0, 0, 1, 1], [], []>} : vector<8x96xf32>, vector<96x128xf32>, vector<8x128xf32> -> vector<8x128xf32>
    %520 = vector.broadcast %393 : vector<1x128xf32> to vector<8x128xf32>
    %521 = arith.addf %519, %520 : vector<8x128xf32>
    %522 = arith.negf %521 : vector<8x128xf32>
    %523 = math.exp %522 : vector<8x128xf32>
    %cst_180 = arith.constant 1.000000e+00 : f32
    %524 = vector.broadcast %cst_180 : f32 to vector<8x128xf32>
    %525 = arith.addf %524, %523 : vector<8x128xf32>
    %526 = arith.divf %524, %525 : vector<8x128xf32>
    %527 = math.tanh %521 : vector<8x128xf32>
    %528 = vector.extract_strided_slice %526 {offsets = [0, 0], sizes = [8, 32], strides = [1, 1]} : vector<8x128xf32> to vector<8x32xf32>
    %529 = vector.extract_strided_slice %526 {offsets = [0, 32], sizes = [8, 32], strides = [1, 1]} : vector<8x128xf32> to vector<8x32xf32>
    %530 = vector.extract_strided_slice %527 {offsets = [0, 64], sizes = [8, 32], strides = [1, 1]} : vector<8x128xf32> to vector<8x32xf32>
    %531 = vector.extract_strided_slice %526 {offsets = [0, 96], sizes = [8, 32], strides = [1, 1]} : vector<8x128xf32> to vector<8x32xf32>
    %532 = arith.mulf %529, %510 : vector<8x32xf32>
    %533 = arith.mulf %528, %530 : vector<8x32xf32>
    %534 = arith.addf %532, %533 : vector<8x32xf32>
    %535 = math.tanh %534 : vector<8x32xf32>
    %536 = arith.mulf %531, %535 : vector<8x32xf32>
    %c5_181 = arith.constant 5 : index
    %c0_182 = arith.constant 0 : index
    %c0_183 = arith.constant 0 : index
    %537 = vector.load %arg13[%c5_181, %c0_182, %c0_183] : memref<8x8x64xf32, #tpu.memory_space<vmem>>, vector<1x8x32xf32>
    %538 = vector.shape_cast %537 : vector<1x8x32xf32> to vector<8x32xf32>
    %539 = vector.shape_cast %536 : vector<8x32xf32> to vector<1x8x32xf32>
    tpu.vector_store %arg13[%c5_181, %c0_182, %c0_183], %539 {strides = array<i32>} : memref<8x8x64xf32, #tpu.memory_space<vmem>>, vector<1x8x32xf32>,
    %c6_184 = arith.constant 6 : index
    %c0_185 = arith.constant 0 : index
    %c0_186 = arith.constant 0 : index
    %540 = vector.load %arg12[%c6_184, %c0_185, %c0_186] : memref<8x8x64xf32, #tpu.memory_space<vmem>>, vector<1x8x64xf32>
    %541 = vector.shape_cast %540 : vector<1x8x64xf32> to vector<8x64xf32>
    %542 = tpu.concatenate %541, %536 in 1 : vector<8x64xf32>, vector<8x32xf32> -> vector<8x96xf32>
    %cst_187 = arith.constant dense<0.000000e+00> : vector<8x128xf32>
    %543 = tpu.matmul %542, %392, %cst_187 {dimension_numbers = #tpu.dot_dimension_numbers<[1], [0], [0], [1], [0, 0, 1, 1], [], []>} : vector<8x96xf32>, vector<96x128xf32>, vector<8x128xf32> -> vector<8x128xf32>
    %544 = vector.broadcast %393 : vector<1x128xf32> to vector<8x128xf32>
    %545 = arith.addf %543, %544 : vector<8x128xf32>
    %546 = arith.negf %545 : vector<8x128xf32>
    %547 = math.exp %546 : vector<8x128xf32>
    %cst_188 = arith.constant 1.000000e+00 : f32
    %548 = vector.broadcast %cst_188 : f32 to vector<8x128xf32>
    %549 = arith.addf %548, %547 : vector<8x128xf32>
    %550 = arith.divf %548, %549 : vector<8x128xf32>
    %551 = math.tanh %545 : vector<8x128xf32>
    %552 = vector.extract_strided_slice %550 {offsets = [0, 0], sizes = [8, 32], strides = [1, 1]} : vector<8x128xf32> to vector<8x32xf32>
    %553 = vector.extract_strided_slice %550 {offsets = [0, 32], sizes = [8, 32], strides = [1, 1]} : vector<8x128xf32> to vector<8x32xf32>
    %554 = vector.extract_strided_slice %551 {offsets = [0, 64], sizes = [8, 32], strides = [1, 1]} : vector<8x128xf32> to vector<8x32xf32>
    %555 = vector.extract_strided_slice %550 {offsets = [0, 96], sizes = [8, 32], strides = [1, 1]} : vector<8x128xf32> to vector<8x32xf32>
    %556 = arith.mulf %553, %534 : vector<8x32xf32>
    %557 = arith.mulf %552, %554 : vector<8x32xf32>
    %558 = arith.addf %556, %557 : vector<8x32xf32>
    %559 = math.tanh %558 : vector<8x32xf32>
    %560 = arith.mulf %555, %559 : vector<8x32xf32>
    %c6_189 = arith.constant 6 : index
    %c0_190 = arith.constant 0 : index
    %c0_191 = arith.constant 0 : index
    %561 = vector.load %arg13[%c6_189, %c0_190, %c0_191] : memref<8x8x64xf32, #tpu.memory_space<vmem>>, vector<1x8x32xf32>
    %562 = vector.shape_cast %561 : vector<1x8x32xf32> to vector<8x32xf32>
    %563 = vector.shape_cast %560 : vector<8x32xf32> to vector<1x8x32xf32>
    tpu.vector_store %arg13[%c6_189, %c0_190, %c0_191], %563 {strides = array<i32>} : memref<8x8x64xf32, #tpu.memory_space<vmem>>, vector<1x8x32xf32>,
    %c7_192 = arith.constant 7 : index
    %c0_193 = arith.constant 0 : index
    %c0_194 = arith.constant 0 : index
    %564 = vector.load %arg12[%c7_192, %c0_193, %c0_194] : memref<8x8x64xf32, #tpu.memory_space<vmem>>, vector<1x8x64xf32>
    %565 = vector.shape_cast %564 : vector<1x8x64xf32> to vector<8x64xf32>
    %566 = tpu.concatenate %565, %560 in 1 : vector<8x64xf32>, vector<8x32xf32> -> vector<8x96xf32>
    %cst_195 = arith.constant dense<0.000000e+00> : vector<8x128xf32>
    %567 = tpu.matmul %566, %392, %cst_195 {dimension_numbers = #tpu.dot_dimension_numbers<[1], [0], [0], [1], [0, 0, 1, 1], [], []>} : vector<8x96xf32>, vector<96x128xf32>, vector<8x128xf32> -> vector<8x128xf32>
    %568 = vector.broadcast %393 : vector<1x128xf32> to vector<8x128xf32>
    %569 = arith.addf %567, %568 : vector<8x128xf32>
    %570 = arith.negf %569 : vector<8x128xf32>
    %571 = math.exp %570 : vector<8x128xf32>
    %cst_196 = arith.constant 1.000000e+00 : f32
    %572 = vector.broadcast %cst_196 : f32 to vector<8x128xf32>
    %573 = arith.addf %572, %571 : vector<8x128xf32>
    %574 = arith.divf %572, %573 : vector<8x128xf32>
    %575 = math.tanh %569 : vector<8x128xf32>
    %576 = vector.extract_strided_slice %574 {offsets = [0, 0], sizes = [8, 32], strides = [1, 1]} : vector<8x128xf32> to vector<8x32xf32>
    %577 = vector.extract_strided_slice %574 {offsets = [0, 32], sizes = [8, 32], strides = [1, 1]} : vector<8x128xf32> to vector<8x32xf32>
    %578 = vector.extract_strided_slice %575 {offsets = [0, 64], sizes = [8, 32], strides = [1, 1]} : vector<8x128xf32> to vector<8x32xf32>
    %579 = vector.extract_strided_slice %574 {offsets = [0, 96], sizes = [8, 32], strides = [1, 1]} : vector<8x128xf32> to vector<8x32xf32>
    %580 = arith.mulf %577, %558 : vector<8x32xf32>
    %581 = arith.mulf %576, %578 : vector<8x32xf32>
    %582 = arith.addf %580, %581 : vector<8x32xf32>
    %583 = math.tanh %582 : vector<8x32xf32>
    %584 = arith.mulf %579, %583 : vector<8x32xf32>
    %c7_197 = arith.constant 7 : index
    %c0_198 = arith.constant 0 : index
    %c0_199 = arith.constant 0 : index
    %585 = vector.load %arg13[%c7_197, %c0_198, %c0_199] : memref<8x8x64xf32, #tpu.memory_space<vmem>>, vector<1x8x32xf32>
    %586 = vector.shape_cast %585 : vector<1x8x32xf32> to vector<8x32xf32>
    %587 = vector.shape_cast %584 : vector<8x32xf32> to vector<1x8x32xf32>
    tpu.vector_store %arg13[%c7_197, %c0_198, %c0_199], %587 {strides = array<i32>} : memref<8x8x64xf32, #tpu.memory_space<vmem>>, vector<1x8x32xf32>,
    %c0_200 = arith.constant 0 : index
    %c0_201 = arith.constant 0 : index
    %588 = vector.load %arg7[%c0_200, %c0_201] : memref<96x128xf32, #tpu.memory_space<vmem>>, vector<96x128xf32>
    %c0_202 = arith.constant 0 : index
    %c0_203 = arith.constant 0 : index
    %589 = vector.load %arg8[%c0_202, %c0_203] : memref<1x128xf32, #tpu.memory_space<vmem>>, vector<1x128xf32>
    %cst_204 = arith.constant 0.000000e+00 : f32
    %590 = vector.broadcast %cst_204 : f32 to vector<8x32xf32>
    %cst_205 = arith.constant 0.000000e+00 : f32
    %591 = vector.broadcast %cst_205 : f32 to vector<8x32xf32>
    %c7_206 = arith.constant 7 : index
    %c0_207 = arith.constant 0 : index
    %c0_208 = arith.constant 0 : index
    %592 = vector.load %arg12[%c7_206, %c0_207, %c0_208] : memref<8x8x64xf32, #tpu.memory_space<vmem>>, vector<1x8x64xf32>
    %593 = vector.shape_cast %592 : vector<1x8x64xf32> to vector<8x64xf32>
    %594 = tpu.concatenate %593, %590 in 1 : vector<8x64xf32>, vector<8x32xf32> -> vector<8x96xf32>
    %cst_209 = arith.constant dense<0.000000e+00> : vector<8x128xf32>
    %595 = tpu.matmul %594, %588, %cst_209 {dimension_numbers = #tpu.dot_dimension_numbers<[1], [0], [0], [1], [0, 0, 1, 1], [], []>} : vector<8x96xf32>, vector<96x128xf32>, vector<8x128xf32> -> vector<8x128xf32>
    %596 = vector.broadcast %589 : vector<1x128xf32> to vector<8x128xf32>
    %597 = arith.addf %595, %596 : vector<8x128xf32>
    %598 = arith.negf %597 : vector<8x128xf32>
    %599 = math.exp %598 : vector<8x128xf32>
    %cst_210 = arith.constant 1.000000e+00 : f32
    %600 = vector.broadcast %cst_210 : f32 to vector<8x128xf32>
    %601 = arith.addf %600, %599 : vector<8x128xf32>
    %602 = arith.divf %600, %601 : vector<8x128xf32>
    %603 = math.tanh %597 : vector<8x128xf32>
    %604 = vector.extract_strided_slice %602 {offsets = [0, 0], sizes = [8, 32], strides = [1, 1]} : vector<8x128xf32> to vector<8x32xf32>
    %605 = vector.extract_strided_slice %602 {offsets = [0, 32], sizes = [8, 32], strides = [1, 1]} : vector<8x128xf32> to vector<8x32xf32>
    %606 = vector.extract_strided_slice %603 {offsets = [0, 64], sizes = [8, 32], strides = [1, 1]} : vector<8x128xf32> to vector<8x32xf32>
    %607 = vector.extract_strided_slice %602 {offsets = [0, 96], sizes = [8, 32], strides = [1, 1]} : vector<8x128xf32> to vector<8x32xf32>
    %608 = arith.mulf %605, %591 : vector<8x32xf32>
    %609 = arith.mulf %604, %606 : vector<8x32xf32>
    %610 = arith.addf %608, %609 : vector<8x32xf32>
    %611 = math.tanh %610 : vector<8x32xf32>
    %612 = arith.mulf %607, %611 : vector<8x32xf32>
    %c7_211 = arith.constant 7 : index
    %c0_212 = arith.constant 0 : index
    %c32_213 = arith.constant 32 : index
    %613 = vector.load %arg13[%c7_211, %c0_212, %c32_213] : memref<8x8x64xf32, #tpu.memory_space<vmem>>, vector<1x8x32xf32>
    %614 = vector.shape_cast %613 : vector<1x8x32xf32> to vector<8x32xf32>
    %615 = vector.shape_cast %612 : vector<8x32xf32> to vector<1x8x32xf32>
    tpu.vector_store %arg13[%c7_211, %c0_212, %c32_213], %615 {strides = array<i32>} : memref<8x8x64xf32, #tpu.memory_space<vmem>>, vector<1x8x32xf32>,
    %c6_214 = arith.constant 6 : index
    %c0_215 = arith.constant 0 : index
    %c0_216 = arith.constant 0 : index
    %616 = vector.load %arg12[%c6_214, %c0_215, %c0_216] : memref<8x8x64xf32, #tpu.memory_space<vmem>>, vector<1x8x64xf32>
    %617 = vector.shape_cast %616 : vector<1x8x64xf32> to vector<8x64xf32>
    %618 = tpu.concatenate %617, %612 in 1 : vector<8x64xf32>, vector<8x32xf32> -> vector<8x96xf32>
    %cst_217 = arith.constant dense<0.000000e+00> : vector<8x128xf32>
    %619 = tpu.matmul %618, %588, %cst_217 {dimension_numbers = #tpu.dot_dimension_numbers<[1], [0], [0], [1], [0, 0, 1, 1], [], []>} : vector<8x96xf32>, vector<96x128xf32>, vector<8x128xf32> -> vector<8x128xf32>
    %620 = vector.broadcast %589 : vector<1x128xf32> to vector<8x128xf32>
    %621 = arith.addf %619, %620 : vector<8x128xf32>
    %622 = arith.negf %621 : vector<8x128xf32>
    %623 = math.exp %622 : vector<8x128xf32>
    %cst_218 = arith.constant 1.000000e+00 : f32
    %624 = vector.broadcast %cst_218 : f32 to vector<8x128xf32>
    %625 = arith.addf %624, %623 : vector<8x128xf32>
    %626 = arith.divf %624, %625 : vector<8x128xf32>
    %627 = math.tanh %621 : vector<8x128xf32>
    %628 = vector.extract_strided_slice %626 {offsets = [0, 0], sizes = [8, 32], strides = [1, 1]} : vector<8x128xf32> to vector<8x32xf32>
    %629 = vector.extract_strided_slice %626 {offsets = [0, 32], sizes = [8, 32], strides = [1, 1]} : vector<8x128xf32> to vector<8x32xf32>
    %630 = vector.extract_strided_slice %627 {offsets = [0, 64], sizes = [8, 32], strides = [1, 1]} : vector<8x128xf32> to vector<8x32xf32>
    %631 = vector.extract_strided_slice %626 {offsets = [0, 96], sizes = [8, 32], strides = [1, 1]} : vector<8x128xf32> to vector<8x32xf32>
    %632 = arith.mulf %629, %610 : vector<8x32xf32>
    %633 = arith.mulf %628, %630 : vector<8x32xf32>
    %634 = arith.addf %632, %633 : vector<8x32xf32>
    %635 = math.tanh %634 : vector<8x32xf32>
    %636 = arith.mulf %631, %635 : vector<8x32xf32>
    %c6_219 = arith.constant 6 : index
    %c0_220 = arith.constant 0 : index
    %c32_221 = arith.constant 32 : index
    %637 = vector.load %arg13[%c6_219, %c0_220, %c32_221] : memref<8x8x64xf32, #tpu.memory_space<vmem>>, vector<1x8x32xf32>
    %638 = vector.shape_cast %637 : vector<1x8x32xf32> to vector<8x32xf32>
    %639 = vector.shape_cast %636 : vector<8x32xf32> to vector<1x8x32xf32>
    tpu.vector_store %arg13[%c6_219, %c0_220, %c32_221], %639 {strides = array<i32>} : memref<8x8x64xf32, #tpu.memory_space<vmem>>, vector<1x8x32xf32>,
    %c5_222 = arith.constant 5 : index
    %c0_223 = arith.constant 0 : index
    %c0_224 = arith.constant 0 : index
    %640 = vector.load %arg12[%c5_222, %c0_223, %c0_224] : memref<8x8x64xf32, #tpu.memory_space<vmem>>, vector<1x8x64xf32>
    %641 = vector.shape_cast %640 : vector<1x8x64xf32> to vector<8x64xf32>
    %642 = tpu.concatenate %641, %636 in 1 : vector<8x64xf32>, vector<8x32xf32> -> vector<8x96xf32>
    %cst_225 = arith.constant dense<0.000000e+00> : vector<8x128xf32>
    %643 = tpu.matmul %642, %588, %cst_225 {dimension_numbers = #tpu.dot_dimension_numbers<[1], [0], [0], [1], [0, 0, 1, 1], [], []>} : vector<8x96xf32>, vector<96x128xf32>, vector<8x128xf32> -> vector<8x128xf32>
    %644 = vector.broadcast %589 : vector<1x128xf32> to vector<8x128xf32>
    %645 = arith.addf %643, %644 : vector<8x128xf32>
    %646 = arith.negf %645 : vector<8x128xf32>
    %647 = math.exp %646 : vector<8x128xf32>
    %cst_226 = arith.constant 1.000000e+00 : f32
    %648 = vector.broadcast %cst_226 : f32 to vector<8x128xf32>
    %649 = arith.addf %648, %647 : vector<8x128xf32>
    %650 = arith.divf %648, %649 : vector<8x128xf32>
    %651 = math.tanh %645 : vector<8x128xf32>
    %652 = vector.extract_strided_slice %650 {offsets = [0, 0], sizes = [8, 32], strides = [1, 1]} : vector<8x128xf32> to vector<8x32xf32>
    %653 = vector.extract_strided_slice %650 {offsets = [0, 32], sizes = [8, 32], strides = [1, 1]} : vector<8x128xf32> to vector<8x32xf32>
    %654 = vector.extract_strided_slice %651 {offsets = [0, 64], sizes = [8, 32], strides = [1, 1]} : vector<8x128xf32> to vector<8x32xf32>
    %655 = vector.extract_strided_slice %650 {offsets = [0, 96], sizes = [8, 32], strides = [1, 1]} : vector<8x128xf32> to vector<8x32xf32>
    %656 = arith.mulf %653, %634 : vector<8x32xf32>
    %657 = arith.mulf %652, %654 : vector<8x32xf32>
    %658 = arith.addf %656, %657 : vector<8x32xf32>
    %659 = math.tanh %658 : vector<8x32xf32>
    %660 = arith.mulf %655, %659 : vector<8x32xf32>
    %c5_227 = arith.constant 5 : index
    %c0_228 = arith.constant 0 : index
    %c32_229 = arith.constant 32 : index
    %661 = vector.load %arg13[%c5_227, %c0_228, %c32_229] : memref<8x8x64xf32, #tpu.memory_space<vmem>>, vector<1x8x32xf32>
    %662 = vector.shape_cast %661 : vector<1x8x32xf32> to vector<8x32xf32>
    %663 = vector.shape_cast %660 : vector<8x32xf32> to vector<1x8x32xf32>
    tpu.vector_store %arg13[%c5_227, %c0_228, %c32_229], %663 {strides = array<i32>} : memref<8x8x64xf32, #tpu.memory_space<vmem>>, vector<1x8x32xf32>,
    %c4_230 = arith.constant 4 : index
    %c0_231 = arith.constant 0 : index
    %c0_232 = arith.constant 0 : index
    %664 = vector.load %arg12[%c4_230, %c0_231, %c0_232] : memref<8x8x64xf32, #tpu.memory_space<vmem>>, vector<1x8x64xf32>
    %665 = vector.shape_cast %664 : vector<1x8x64xf32> to vector<8x64xf32>
    %666 = tpu.concatenate %665, %660 in 1 : vector<8x64xf32>, vector<8x32xf32> -> vector<8x96xf32>
    %cst_233 = arith.constant dense<0.000000e+00> : vector<8x128xf32>
    %667 = tpu.matmul %666, %588, %cst_233 {dimension_numbers = #tpu.dot_dimension_numbers<[1], [0], [0], [1], [0, 0, 1, 1], [], []>} : vector<8x96xf32>, vector<96x128xf32>, vector<8x128xf32> -> vector<8x128xf32>
    %668 = vector.broadcast %589 : vector<1x128xf32> to vector<8x128xf32>
    %669 = arith.addf %667, %668 : vector<8x128xf32>
    %670 = arith.negf %669 : vector<8x128xf32>
    %671 = math.exp %670 : vector<8x128xf32>
    %cst_234 = arith.constant 1.000000e+00 : f32
    %672 = vector.broadcast %cst_234 : f32 to vector<8x128xf32>
    %673 = arith.addf %672, %671 : vector<8x128xf32>
    %674 = arith.divf %672, %673 : vector<8x128xf32>
    %675 = math.tanh %669 : vector<8x128xf32>
    %676 = vector.extract_strided_slice %674 {offsets = [0, 0], sizes = [8, 32], strides = [1, 1]} : vector<8x128xf32> to vector<8x32xf32>
    %677 = vector.extract_strided_slice %674 {offsets = [0, 32], sizes = [8, 32], strides = [1, 1]} : vector<8x128xf32> to vector<8x32xf32>
    %678 = vector.extract_strided_slice %675 {offsets = [0, 64], sizes = [8, 32], strides = [1, 1]} : vector<8x128xf32> to vector<8x32xf32>
    %679 = vector.extract_strided_slice %674 {offsets = [0, 96], sizes = [8, 32], strides = [1, 1]} : vector<8x128xf32> to vector<8x32xf32>
    %680 = arith.mulf %677, %658 : vector<8x32xf32>
    %681 = arith.mulf %676, %678 : vector<8x32xf32>
    %682 = arith.addf %680, %681 : vector<8x32xf32>
    %683 = math.tanh %682 : vector<8x32xf32>
    %684 = arith.mulf %679, %683 : vector<8x32xf32>
    %c4_235 = arith.constant 4 : index
    %c0_236 = arith.constant 0 : index
    %c32_237 = arith.constant 32 : index
    %685 = vector.load %arg13[%c4_235, %c0_236, %c32_237] : memref<8x8x64xf32, #tpu.memory_space<vmem>>, vector<1x8x32xf32>
    %686 = vector.shape_cast %685 : vector<1x8x32xf32> to vector<8x32xf32>
    %687 = vector.shape_cast %684 : vector<8x32xf32> to vector<1x8x32xf32>
    tpu.vector_store %arg13[%c4_235, %c0_236, %c32_237], %687 {strides = array<i32>} : memref<8x8x64xf32, #tpu.memory_space<vmem>>, vector<1x8x32xf32>,
    %c3_238 = arith.constant 3 : index
    %c0_239 = arith.constant 0 : index
    %c0_240 = arith.constant 0 : index
    %688 = vector.load %arg12[%c3_238, %c0_239, %c0_240] : memref<8x8x64xf32, #tpu.memory_space<vmem>>, vector<1x8x64xf32>
    %689 = vector.shape_cast %688 : vector<1x8x64xf32> to vector<8x64xf32>
    %690 = tpu.concatenate %689, %684 in 1 : vector<8x64xf32>, vector<8x32xf32> -> vector<8x96xf32>
    %cst_241 = arith.constant dense<0.000000e+00> : vector<8x128xf32>
    %691 = tpu.matmul %690, %588, %cst_241 {dimension_numbers = #tpu.dot_dimension_numbers<[1], [0], [0], [1], [0, 0, 1, 1], [], []>} : vector<8x96xf32>, vector<96x128xf32>, vector<8x128xf32> -> vector<8x128xf32>
    %692 = vector.broadcast %589 : vector<1x128xf32> to vector<8x128xf32>
    %693 = arith.addf %691, %692 : vector<8x128xf32>
    %694 = arith.negf %693 : vector<8x128xf32>
    %695 = math.exp %694 : vector<8x128xf32>
    %cst_242 = arith.constant 1.000000e+00 : f32
    %696 = vector.broadcast %cst_242 : f32 to vector<8x128xf32>
    %697 = arith.addf %696, %695 : vector<8x128xf32>
    %698 = arith.divf %696, %697 : vector<8x128xf32>
    %699 = math.tanh %693 : vector<8x128xf32>
    %700 = vector.extract_strided_slice %698 {offsets = [0, 0], sizes = [8, 32], strides = [1, 1]} : vector<8x128xf32> to vector<8x32xf32>
    %701 = vector.extract_strided_slice %698 {offsets = [0, 32], sizes = [8, 32], strides = [1, 1]} : vector<8x128xf32> to vector<8x32xf32>
    %702 = vector.extract_strided_slice %699 {offsets = [0, 64], sizes = [8, 32], strides = [1, 1]} : vector<8x128xf32> to vector<8x32xf32>
    %703 = vector.extract_strided_slice %698 {offsets = [0, 96], sizes = [8, 32], strides = [1, 1]} : vector<8x128xf32> to vector<8x32xf32>
    %704 = arith.mulf %701, %682 : vector<8x32xf32>
    %705 = arith.mulf %700, %702 : vector<8x32xf32>
    %706 = arith.addf %704, %705 : vector<8x32xf32>
    %707 = math.tanh %706 : vector<8x32xf32>
    %708 = arith.mulf %703, %707 : vector<8x32xf32>
    %c3_243 = arith.constant 3 : index
    %c0_244 = arith.constant 0 : index
    %c32_245 = arith.constant 32 : index
    %709 = vector.load %arg13[%c3_243, %c0_244, %c32_245] : memref<8x8x64xf32, #tpu.memory_space<vmem>>, vector<1x8x32xf32>
    %710 = vector.shape_cast %709 : vector<1x8x32xf32> to vector<8x32xf32>
    %711 = vector.shape_cast %708 : vector<8x32xf32> to vector<1x8x32xf32>
    tpu.vector_store %arg13[%c3_243, %c0_244, %c32_245], %711 {strides = array<i32>} : memref<8x8x64xf32, #tpu.memory_space<vmem>>, vector<1x8x32xf32>,
    %c2_246 = arith.constant 2 : index
    %c0_247 = arith.constant 0 : index
    %c0_248 = arith.constant 0 : index
    %712 = vector.load %arg12[%c2_246, %c0_247, %c0_248] : memref<8x8x64xf32, #tpu.memory_space<vmem>>, vector<1x8x64xf32>
    %713 = vector.shape_cast %712 : vector<1x8x64xf32> to vector<8x64xf32>
    %714 = tpu.concatenate %713, %708 in 1 : vector<8x64xf32>, vector<8x32xf32> -> vector<8x96xf32>
    %cst_249 = arith.constant dense<0.000000e+00> : vector<8x128xf32>
    %715 = tpu.matmul %714, %588, %cst_249 {dimension_numbers = #tpu.dot_dimension_numbers<[1], [0], [0], [1], [0, 0, 1, 1], [], []>} : vector<8x96xf32>, vector<96x128xf32>, vector<8x128xf32> -> vector<8x128xf32>
    %716 = vector.broadcast %589 : vector<1x128xf32> to vector<8x128xf32>
    %717 = arith.addf %715, %716 : vector<8x128xf32>
    %718 = arith.negf %717 : vector<8x128xf32>
    %719 = math.exp %718 : vector<8x128xf32>
    %cst_250 = arith.constant 1.000000e+00 : f32
    %720 = vector.broadcast %cst_250 : f32 to vector<8x128xf32>
    %721 = arith.addf %720, %719 : vector<8x128xf32>
    %722 = arith.divf %720, %721 : vector<8x128xf32>
    %723 = math.tanh %717 : vector<8x128xf32>
    %724 = vector.extract_strided_slice %722 {offsets = [0, 0], sizes = [8, 32], strides = [1, 1]} : vector<8x128xf32> to vector<8x32xf32>
    %725 = vector.extract_strided_slice %722 {offsets = [0, 32], sizes = [8, 32], strides = [1, 1]} : vector<8x128xf32> to vector<8x32xf32>
    %726 = vector.extract_strided_slice %723 {offsets = [0, 64], sizes = [8, 32], strides = [1, 1]} : vector<8x128xf32> to vector<8x32xf32>
    %727 = vector.extract_strided_slice %722 {offsets = [0, 96], sizes = [8, 32], strides = [1, 1]} : vector<8x128xf32> to vector<8x32xf32>
    %728 = arith.mulf %725, %706 : vector<8x32xf32>
    %729 = arith.mulf %724, %726 : vector<8x32xf32>
    %730 = arith.addf %728, %729 : vector<8x32xf32>
    %731 = math.tanh %730 : vector<8x32xf32>
    %732 = arith.mulf %727, %731 : vector<8x32xf32>
    %c2_251 = arith.constant 2 : index
    %c0_252 = arith.constant 0 : index
    %c32_253 = arith.constant 32 : index
    %733 = vector.load %arg13[%c2_251, %c0_252, %c32_253] : memref<8x8x64xf32, #tpu.memory_space<vmem>>, vector<1x8x32xf32>
    %734 = vector.shape_cast %733 : vector<1x8x32xf32> to vector<8x32xf32>
    %735 = vector.shape_cast %732 : vector<8x32xf32> to vector<1x8x32xf32>
    tpu.vector_store %arg13[%c2_251, %c0_252, %c32_253], %735 {strides = array<i32>} : memref<8x8x64xf32, #tpu.memory_space<vmem>>, vector<1x8x32xf32>,
    %c1_254 = arith.constant 1 : index
    %c0_255 = arith.constant 0 : index
    %c0_256 = arith.constant 0 : index
    %736 = vector.load %arg12[%c1_254, %c0_255, %c0_256] : memref<8x8x64xf32, #tpu.memory_space<vmem>>, vector<1x8x64xf32>
    %737 = vector.shape_cast %736 : vector<1x8x64xf32> to vector<8x64xf32>
    %738 = tpu.concatenate %737, %732 in 1 : vector<8x64xf32>, vector<8x32xf32> -> vector<8x96xf32>
    %cst_257 = arith.constant dense<0.000000e+00> : vector<8x128xf32>
    %739 = tpu.matmul %738, %588, %cst_257 {dimension_numbers = #tpu.dot_dimension_numbers<[1], [0], [0], [1], [0, 0, 1, 1], [], []>} : vector<8x96xf32>, vector<96x128xf32>, vector<8x128xf32> -> vector<8x128xf32>
    %740 = vector.broadcast %589 : vector<1x128xf32> to vector<8x128xf32>
    %741 = arith.addf %739, %740 : vector<8x128xf32>
    %742 = arith.negf %741 : vector<8x128xf32>
    %743 = math.exp %742 : vector<8x128xf32>
    %cst_258 = arith.constant 1.000000e+00 : f32
    %744 = vector.broadcast %cst_258 : f32 to vector<8x128xf32>
    %745 = arith.addf %744, %743 : vector<8x128xf32>
    %746 = arith.divf %744, %745 : vector<8x128xf32>
    %747 = math.tanh %741 : vector<8x128xf32>
    %748 = vector.extract_strided_slice %746 {offsets = [0, 0], sizes = [8, 32], strides = [1, 1]} : vector<8x128xf32> to vector<8x32xf32>
    %749 = vector.extract_strided_slice %746 {offsets = [0, 32], sizes = [8, 32], strides = [1, 1]} : vector<8x128xf32> to vector<8x32xf32>
    %750 = vector.extract_strided_slice %747 {offsets = [0, 64], sizes = [8, 32], strides = [1, 1]} : vector<8x128xf32> to vector<8x32xf32>
    %751 = vector.extract_strided_slice %746 {offsets = [0, 96], sizes = [8, 32], strides = [1, 1]} : vector<8x128xf32> to vector<8x32xf32>
    %752 = arith.mulf %749, %730 : vector<8x32xf32>
    %753 = arith.mulf %748, %750 : vector<8x32xf32>
    %754 = arith.addf %752, %753 : vector<8x32xf32>
    %755 = math.tanh %754 : vector<8x32xf32>
    %756 = arith.mulf %751, %755 : vector<8x32xf32>
    %c1_259 = arith.constant 1 : index
    %c0_260 = arith.constant 0 : index
    %c32_261 = arith.constant 32 : index
    %757 = vector.load %arg13[%c1_259, %c0_260, %c32_261] : memref<8x8x64xf32, #tpu.memory_space<vmem>>, vector<1x8x32xf32>
    %758 = vector.shape_cast %757 : vector<1x8x32xf32> to vector<8x32xf32>
    %759 = vector.shape_cast %756 : vector<8x32xf32> to vector<1x8x32xf32>
    tpu.vector_store %arg13[%c1_259, %c0_260, %c32_261], %759 {strides = array<i32>} : memref<8x8x64xf32, #tpu.memory_space<vmem>>, vector<1x8x32xf32>,
    %c0_262 = arith.constant 0 : index
    %c0_263 = arith.constant 0 : index
    %c0_264 = arith.constant 0 : index
    %760 = vector.load %arg12[%c0_262, %c0_263, %c0_264] : memref<8x8x64xf32, #tpu.memory_space<vmem>>, vector<1x8x64xf32>
    %761 = vector.shape_cast %760 : vector<1x8x64xf32> to vector<8x64xf32>
    %762 = tpu.concatenate %761, %756 in 1 : vector<8x64xf32>, vector<8x32xf32> -> vector<8x96xf32>
    %cst_265 = arith.constant dense<0.000000e+00> : vector<8x128xf32>
    %763 = tpu.matmul %762, %588, %cst_265 {dimension_numbers = #tpu.dot_dimension_numbers<[1], [0], [0], [1], [0, 0, 1, 1], [], []>} : vector<8x96xf32>, vector<96x128xf32>, vector<8x128xf32> -> vector<8x128xf32>
    %764 = vector.broadcast %589 : vector<1x128xf32> to vector<8x128xf32>
    %765 = arith.addf %763, %764 : vector<8x128xf32>
    %766 = arith.negf %765 : vector<8x128xf32>
    %767 = math.exp %766 : vector<8x128xf32>
    %cst_266 = arith.constant 1.000000e+00 : f32
    %768 = vector.broadcast %cst_266 : f32 to vector<8x128xf32>
    %769 = arith.addf %768, %767 : vector<8x128xf32>
    %770 = arith.divf %768, %769 : vector<8x128xf32>
    %771 = math.tanh %765 : vector<8x128xf32>
    %772 = vector.extract_strided_slice %770 {offsets = [0, 0], sizes = [8, 32], strides = [1, 1]} : vector<8x128xf32> to vector<8x32xf32>
    %773 = vector.extract_strided_slice %770 {offsets = [0, 32], sizes = [8, 32], strides = [1, 1]} : vector<8x128xf32> to vector<8x32xf32>
    %774 = vector.extract_strided_slice %771 {offsets = [0, 64], sizes = [8, 32], strides = [1, 1]} : vector<8x128xf32> to vector<8x32xf32>
    %775 = vector.extract_strided_slice %770 {offsets = [0, 96], sizes = [8, 32], strides = [1, 1]} : vector<8x128xf32> to vector<8x32xf32>
    %776 = arith.mulf %773, %754 : vector<8x32xf32>
    %777 = arith.mulf %772, %774 : vector<8x32xf32>
    %778 = arith.addf %776, %777 : vector<8x32xf32>
    %779 = math.tanh %778 : vector<8x32xf32>
    %780 = arith.mulf %775, %779 : vector<8x32xf32>
    %c0_267 = arith.constant 0 : index
    %c0_268 = arith.constant 0 : index
    %c32_269 = arith.constant 32 : index
    %781 = vector.load %arg13[%c0_267, %c0_268, %c32_269] : memref<8x8x64xf32, #tpu.memory_space<vmem>>, vector<1x8x32xf32>
    %782 = vector.shape_cast %781 : vector<1x8x32xf32> to vector<8x32xf32>
    %783 = vector.shape_cast %780 : vector<8x32xf32> to vector<1x8x32xf32>
    tpu.vector_store %arg13[%c0_267, %c0_268, %c32_269], %783 {strides = array<i32>} : memref<8x8x64xf32, #tpu.memory_space<vmem>>, vector<1x8x32xf32>,
    %c0_270 = arith.constant 0 : index
    %c0_271 = arith.constant 0 : index
    %784 = vector.load %arg9[%c0_270, %c0_271] : memref<64x10xf32, #tpu.memory_space<vmem>>, vector<64x10xf32>
    %c0_272 = arith.constant 0 : index
    %c0_273 = arith.constant 0 : index
    %785 = vector.load %arg10[%c0_272, %c0_273] : memref<1x10xf32, #tpu.memory_space<vmem>>, vector<1x10xf32>
    %c0_274 = arith.constant 0 : index
    %c0_275 = arith.constant 0 : index
    %c0_276 = arith.constant 0 : index
    %786 = vector.load %arg13[%c0_274, %c0_275, %c0_276] : memref<8x8x64xf32, #tpu.memory_space<vmem>>, vector<1x8x64xf32>
    %787 = vector.shape_cast %786 : vector<1x8x64xf32> to vector<8x64xf32>
    %cst_277 = arith.constant dense<0.000000e+00> : vector<8x10xf32>
    %788 = tpu.matmul %787, %784, %cst_277 {dimension_numbers = #tpu.dot_dimension_numbers<[1], [0], [0], [1], [0, 0, 1, 1], [], []>} : vector<8x64xf32>, vector<64x10xf32>, vector<8x10xf32> -> vector<8x10xf32>
    %789 = vector.broadcast %785 : vector<1x10xf32> to vector<8x10xf32>
    %790 = arith.addf %788, %789 : vector<8x10xf32>
    %c0_278 = arith.constant 0 : index
    %c0_279 = arith.constant 0 : index
    %c0_280 = arith.constant 0 : index
    %791 = vector.load %arg11[%c0_278, %c0_279, %c0_280] : memref<8x8x10xf32, #tpu.memory_space<vmem>>, vector<1x8x10xf32>
    %792 = vector.shape_cast %791 : vector<1x8x10xf32> to vector<8x10xf32>
    %793 = vector.shape_cast %790 : vector<8x10xf32> to vector<1x8x10xf32>
    tpu.vector_store %arg11[%c0_278, %c0_279, %c0_280], %793 {strides = array<i32>} : memref<8x8x10xf32, #tpu.memory_space<vmem>>, vector<1x8x10xf32>,
    %c1_281 = arith.constant 1 : index
    %c0_282 = arith.constant 0 : index
    %c0_283 = arith.constant 0 : index
    %794 = vector.load %arg13[%c1_281, %c0_282, %c0_283] : memref<8x8x64xf32, #tpu.memory_space<vmem>>, vector<1x8x64xf32>
    %795 = vector.shape_cast %794 : vector<1x8x64xf32> to vector<8x64xf32>
    %cst_284 = arith.constant dense<0.000000e+00> : vector<8x10xf32>
    %796 = tpu.matmul %795, %784, %cst_284 {dimension_numbers = #tpu.dot_dimension_numbers<[1], [0], [0], [1], [0, 0, 1, 1], [], []>} : vector<8x64xf32>, vector<64x10xf32>, vector<8x10xf32> -> vector<8x10xf32>
    %797 = vector.broadcast %785 : vector<1x10xf32> to vector<8x10xf32>
    %798 = arith.addf %796, %797 : vector<8x10xf32>
    %c1_285 = arith.constant 1 : index
    %c0_286 = arith.constant 0 : index
    %c0_287 = arith.constant 0 : index
    %799 = vector.load %arg11[%c1_285, %c0_286, %c0_287] : memref<8x8x10xf32, #tpu.memory_space<vmem>>, vector<1x8x10xf32>
    %800 = vector.shape_cast %799 : vector<1x8x10xf32> to vector<8x10xf32>
    %801 = vector.shape_cast %798 : vector<8x10xf32> to vector<1x8x10xf32>
    tpu.vector_store %arg11[%c1_285, %c0_286, %c0_287], %801 {strides = array<i32>} : memref<8x8x10xf32, #tpu.memory_space<vmem>>, vector<1x8x10xf32>,
    %c2_288 = arith.constant 2 : index
    %c0_289 = arith.constant 0 : index
    %c0_290 = arith.constant 0 : index
    %802 = vector.load %arg13[%c2_288, %c0_289, %c0_290] : memref<8x8x64xf32, #tpu.memory_space<vmem>>, vector<1x8x64xf32>
    %803 = vector.shape_cast %802 : vector<1x8x64xf32> to vector<8x64xf32>
    %cst_291 = arith.constant dense<0.000000e+00> : vector<8x10xf32>
    %804 = tpu.matmul %803, %784, %cst_291 {dimension_numbers = #tpu.dot_dimension_numbers<[1], [0], [0], [1], [0, 0, 1, 1], [], []>} : vector<8x64xf32>, vector<64x10xf32>, vector<8x10xf32> -> vector<8x10xf32>
    %805 = vector.broadcast %785 : vector<1x10xf32> to vector<8x10xf32>
    %806 = arith.addf %804, %805 : vector<8x10xf32>
    %c2_292 = arith.constant 2 : index
    %c0_293 = arith.constant 0 : index
    %c0_294 = arith.constant 0 : index
    %807 = vector.load %arg11[%c2_292, %c0_293, %c0_294] : memref<8x8x10xf32, #tpu.memory_space<vmem>>, vector<1x8x10xf32>
    %808 = vector.shape_cast %807 : vector<1x8x10xf32> to vector<8x10xf32>
    %809 = vector.shape_cast %806 : vector<8x10xf32> to vector<1x8x10xf32>
    tpu.vector_store %arg11[%c2_292, %c0_293, %c0_294], %809 {strides = array<i32>} : memref<8x8x10xf32, #tpu.memory_space<vmem>>, vector<1x8x10xf32>,
    %c3_295 = arith.constant 3 : index
    %c0_296 = arith.constant 0 : index
    %c0_297 = arith.constant 0 : index
    %810 = vector.load %arg13[%c3_295, %c0_296, %c0_297] : memref<8x8x64xf32, #tpu.memory_space<vmem>>, vector<1x8x64xf32>
    %811 = vector.shape_cast %810 : vector<1x8x64xf32> to vector<8x64xf32>
    %cst_298 = arith.constant dense<0.000000e+00> : vector<8x10xf32>
    %812 = tpu.matmul %811, %784, %cst_298 {dimension_numbers = #tpu.dot_dimension_numbers<[1], [0], [0], [1], [0, 0, 1, 1], [], []>} : vector<8x64xf32>, vector<64x10xf32>, vector<8x10xf32> -> vector<8x10xf32>
    %813 = vector.broadcast %785 : vector<1x10xf32> to vector<8x10xf32>
    %814 = arith.addf %812, %813 : vector<8x10xf32>
    %c3_299 = arith.constant 3 : index
    %c0_300 = arith.constant 0 : index
    %c0_301 = arith.constant 0 : index
    %815 = vector.load %arg11[%c3_299, %c0_300, %c0_301] : memref<8x8x10xf32, #tpu.memory_space<vmem>>, vector<1x8x10xf32>
    %816 = vector.shape_cast %815 : vector<1x8x10xf32> to vector<8x10xf32>
    %817 = vector.shape_cast %814 : vector<8x10xf32> to vector<1x8x10xf32>
    tpu.vector_store %arg11[%c3_299, %c0_300, %c0_301], %817 {strides = array<i32>} : memref<8x8x10xf32, #tpu.memory_space<vmem>>, vector<1x8x10xf32>,
    %c4_302 = arith.constant 4 : index
    %c0_303 = arith.constant 0 : index
    %c0_304 = arith.constant 0 : index
    %818 = vector.load %arg13[%c4_302, %c0_303, %c0_304] : memref<8x8x64xf32, #tpu.memory_space<vmem>>, vector<1x8x64xf32>
    %819 = vector.shape_cast %818 : vector<1x8x64xf32> to vector<8x64xf32>
    %cst_305 = arith.constant dense<0.000000e+00> : vector<8x10xf32>
    %820 = tpu.matmul %819, %784, %cst_305 {dimension_numbers = #tpu.dot_dimension_numbers<[1], [0], [0], [1], [0, 0, 1, 1], [], []>} : vector<8x64xf32>, vector<64x10xf32>, vector<8x10xf32> -> vector<8x10xf32>
    %821 = vector.broadcast %785 : vector<1x10xf32> to vector<8x10xf32>
    %822 = arith.addf %820, %821 : vector<8x10xf32>
    %c4_306 = arith.constant 4 : index
    %c0_307 = arith.constant 0 : index
    %c0_308 = arith.constant 0 : index
    %823 = vector.load %arg11[%c4_306, %c0_307, %c0_308] : memref<8x8x10xf32, #tpu.memory_space<vmem>>, vector<1x8x10xf32>
    %824 = vector.shape_cast %823 : vector<1x8x10xf32> to vector<8x10xf32>
    %825 = vector.shape_cast %822 : vector<8x10xf32> to vector<1x8x10xf32>
    tpu.vector_store %arg11[%c4_306, %c0_307, %c0_308], %825 {strides = array<i32>} : memref<8x8x10xf32, #tpu.memory_space<vmem>>, vector<1x8x10xf32>,
    %c5_309 = arith.constant 5 : index
    %c0_310 = arith.constant 0 : index
    %c0_311 = arith.constant 0 : index
    %826 = vector.load %arg13[%c5_309, %c0_310, %c0_311] : memref<8x8x64xf32, #tpu.memory_space<vmem>>, vector<1x8x64xf32>
    %827 = vector.shape_cast %826 : vector<1x8x64xf32> to vector<8x64xf32>
    %cst_312 = arith.constant dense<0.000000e+00> : vector<8x10xf32>
    %828 = tpu.matmul %827, %784, %cst_312 {dimension_numbers = #tpu.dot_dimension_numbers<[1], [0], [0], [1], [0, 0, 1, 1], [], []>} : vector<8x64xf32>, vector<64x10xf32>, vector<8x10xf32> -> vector<8x10xf32>
    %829 = vector.broadcast %785 : vector<1x10xf32> to vector<8x10xf32>
    %830 = arith.addf %828, %829 : vector<8x10xf32>
    %c5_313 = arith.constant 5 : index
    %c0_314 = arith.constant 0 : index
    %c0_315 = arith.constant 0 : index
    %831 = vector.load %arg11[%c5_313, %c0_314, %c0_315] : memref<8x8x10xf32, #tpu.memory_space<vmem>>, vector<1x8x10xf32>
    %832 = vector.shape_cast %831 : vector<1x8x10xf32> to vector<8x10xf32>
    %833 = vector.shape_cast %830 : vector<8x10xf32> to vector<1x8x10xf32>
    tpu.vector_store %arg11[%c5_313, %c0_314, %c0_315], %833 {strides = array<i32>} : memref<8x8x10xf32, #tpu.memory_space<vmem>>, vector<1x8x10xf32>,
    %c6_316 = arith.constant 6 : index
    %c0_317 = arith.constant 0 : index
    %c0_318 = arith.constant 0 : index
    %834 = vector.load %arg13[%c6_316, %c0_317, %c0_318] : memref<8x8x64xf32, #tpu.memory_space<vmem>>, vector<1x8x64xf32>
    %835 = vector.shape_cast %834 : vector<1x8x64xf32> to vector<8x64xf32>
    %cst_319 = arith.constant dense<0.000000e+00> : vector<8x10xf32>
    %836 = tpu.matmul %835, %784, %cst_319 {dimension_numbers = #tpu.dot_dimension_numbers<[1], [0], [0], [1], [0, 0, 1, 1], [], []>} : vector<8x64xf32>, vector<64x10xf32>, vector<8x10xf32> -> vector<8x10xf32>
    %837 = vector.broadcast %785 : vector<1x10xf32> to vector<8x10xf32>
    %838 = arith.addf %836, %837 : vector<8x10xf32>
    %c6_320 = arith.constant 6 : index
    %c0_321 = arith.constant 0 : index
    %c0_322 = arith.constant 0 : index
    %839 = vector.load %arg11[%c6_320, %c0_321, %c0_322] : memref<8x8x10xf32, #tpu.memory_space<vmem>>, vector<1x8x10xf32>
    %840 = vector.shape_cast %839 : vector<1x8x10xf32> to vector<8x10xf32>
    %841 = vector.shape_cast %838 : vector<8x10xf32> to vector<1x8x10xf32>
    tpu.vector_store %arg11[%c6_320, %c0_321, %c0_322], %841 {strides = array<i32>} : memref<8x8x10xf32, #tpu.memory_space<vmem>>, vector<1x8x10xf32>,
    %c7_323 = arith.constant 7 : index
    %c0_324 = arith.constant 0 : index
    %c0_325 = arith.constant 0 : index
    %842 = vector.load %arg13[%c7_323, %c0_324, %c0_325] : memref<8x8x64xf32, #tpu.memory_space<vmem>>, vector<1x8x64xf32>
    %843 = vector.shape_cast %842 : vector<1x8x64xf32> to vector<8x64xf32>
    %cst_326 = arith.constant dense<0.000000e+00> : vector<8x10xf32>
    %844 = tpu.matmul %843, %784, %cst_326 {dimension_numbers = #tpu.dot_dimension_numbers<[1], [0], [0], [1], [0, 0, 1, 1], [], []>} : vector<8x64xf32>, vector<64x10xf32>, vector<8x10xf32> -> vector<8x10xf32>
    %845 = vector.broadcast %785 : vector<1x10xf32> to vector<8x10xf32>
    %846 = arith.addf %844, %845 : vector<8x10xf32>
    %c7_327 = arith.constant 7 : index
    %c0_328 = arith.constant 0 : index
    %c0_329 = arith.constant 0 : index
    %847 = vector.load %arg11[%c7_327, %c0_328, %c0_329] : memref<8x8x10xf32, #tpu.memory_space<vmem>>, vector<1x8x10xf32>
    %848 = vector.shape_cast %847 : vector<1x8x10xf32> to vector<8x10xf32>
    %849 = vector.shape_cast %846 : vector<8x10xf32> to vector<1x8x10xf32>
    tpu.vector_store %arg11[%c7_327, %c0_328, %c0_329], %849 {strides = array<i32>} : memref<8x8x10xf32, #tpu.memory_space<vmem>>, vector<1x8x10xf32>,
    return
  }
}

</mosaic_0001>

<bundles_post_ra>
// kernel: seq_tagger_forward.1
= control target key start
LH: loop header
LB: loop body
LE: loop exit
PB: predicated region body
PF: predicated region fallthrough
CT: control target
= control target key end

     0   :  { %v6400_v0 = vmov 0.0|0.0   ;;  %vm6401_vm0 = vmmov 0   ;;  %v6402_v4 = vmov 0.0   ;;  %vm48_vm1 = vcmask 261120   ;;  %s6403_s17 = smov 64   ;;  %s6404_s18 = smov 32   ;;  %s7687_s1 = inlined_call_operand.vmem [shape: f32[64,128], index: 1, kind: input, shape index: {}]   ;;  %s7688_s0 = inlined_call_operand.vmem [shape: f32[8,8,32], index: 0, kind: input, shape index: {}]   ;;  %s7689_s2 = inlined_call_operand.vmem [shape: f32[1,128], index: 2, kind: input, shape index: {}]   ;;  %s7690_s3 = inlined_call_operand.vmem [shape: f32[64,128], index: 3, kind: input, shape index: {}]   ;;  %s7691_s4 = inlined_call_operand.vmem [shape: f32[1,128], index: 4, kind: input, shape index: {}]   ;;  %s7692_s5 = inlined_call_operand.vmem [shape: f32[96,128], index: 5, kind: input, shape index: {}]   ;;  %s7693_s6 = inlined_call_operand.vmem [shape: f32[1,128], index: 6, kind: input, shape index: {}]   ;;  %s7694_s7 = inlined_call_operand.vmem [shape: f32[96,128], index: 7, kind: input, shape index: {}]   ;;  %s7695_s8 = inlined_call_operand.vmem [shape: f32[1,128], index: 8, kind: input, shape index: {}]   ;;  %s7696_s9 = inlined_call_operand.vmem [shape: f32[64,10], index: 9, kind: input, shape index: {}]   ;;  %s7697_s10 = inlined_call_operand.vmem [shape: f32[1,10], index: 10, kind: input, shape index: {}]   ;;  %s7698_s11 = inlined_call_operand.vmem [shape: f32[8,8,10], index: 11, kind: output, shape index: {}]  }
   0x1   :  { %5559 = vmatprep.subr.bf16.mxu0 %v6400_v0  ;;  %v38_v1 = vld [vmem:[%s7687_s1] sm:$0xff]  ;;  %v39_v2 = vld [vmem:[%s7687_s1 + $0x8] sm:$0xff]  ;;  %v40_v3 = vld [vmem:[%s7687_s1 + $0x10] sm:$0xff]  ;;  %4687 = vmatprep.mubr.msk.f32.mxu0 %vm6401_vm0, %v6402_v4  ;;  %vm56_vm2 = vcmask 523264   ;;  %vm1040_vm3 = vcmask 523520   ;;  %vm1791_vm4 = vcmask 785408  }
   0x2   :  { %v6478_v5 = vpack.c.bf16 %v39_v2, %v38_v1  ;;  %v41_v6 = vld [vmem:[%s7687_s1 + $0x18] sm:$0xff]  ;;  %5571 = vmatprep.subr.bf16.mxu1 %v6400_v0  ;;  %4706 = vmatprep.mubr.msk.f32.mxu1 %vm6401_vm0, %v6402_v4  ;;  %v42_v8 = vld [vmem:[%s7687_s1 + $0x20] sm:$0xff]  ;;  %v43_v9 = vld [vmem:[%s7687_s1 + $0x28] sm:$0xff]  ;;  %s6405_s16 = smov 96   ;;  %vm3611_vm5 = vcmask 80896  }
   0x3   :  { %v6487_v7 = vpack.c.bf16 %v41_v6, %v40_v3  ;;  %v6499_v10 = vpack.c.bf16 %v43_v9, %v42_v8  ;;  %v44_v11 = vld [vmem:[%s7687_s1 + $0x30] sm:$0xff]  ;;  %v45_v12 = vld [vmem:[%s7687_s1 + $0x38] sm:$0xff]  ;;  %v47_v14 = vld [vmem:[%s7688_s0] sm:$0xff] }
   0x4   :  { %5561 = vmatpush3.bf16.msra.mxu0 %v6478_v5  ;;  %5573 = vmatpush3.bf16.msra.mxu1 %v6478_v5  ;;  %v6511_v13 = vpack.c.bf16 %v45_v12, %v44_v11  ;;  %v49_v15 = vsel %vm48_vm1, %v47_v14, 0.0  ;;  %v6538_v16 = vld [vmem:[%s7689_s2] ss:$0 sm:$0xff]  ;;  %v6551_v33 = vld [vmem:[%s7688_s0 + $0x8] sm:$0xff]  ;;  %v6577_v52 = vld [vmem:[%s7688_s0 + $0x10] sm:$0xff] }
   0x5   :  { %5562 = vmatprep.subr.bf16.mxu0 %v6400_v0  ;;  %5574 = vmatprep.subr.bf16.mxu1 %v6400_v0  ;;  %v6603_v12 = vld [vmem:[%s7688_s0 + $0x18] sm:$0xff] }
   0x8   :  { %5564 = vmatpush3.bf16.msra.mxu0 %v6487_v7  ;;  %5576 = vmatpush3.bf16.msra.mxu1 %v6487_v7 }
   0x9   :  { %5565 = vmatprep.subr.bf16.mxu0 %v6400_v0  ;;  %5577 = vmatprep.subr.bf16.mxu1 %v6400_v0 }
   0xc   :  { %5567 = vmatpush3.bf16.msra.mxu0 %v6499_v10  ;;  %5579 = vmatpush3.bf16.msra.mxu1 %v6499_v10 }
   0xd   :  { %5568 = vmatprep.subr.bf16.mxu0 %v6400_v0  ;;  %5580 = vmatprep.subr.bf16.mxu1 %v6400_v0 }
  0x10   :  { %5570 = vmatpush3.bf16.msra.mxu0 %v6511_v13  ;;  %5582 = vmatpush3.bf16.msra.mxu1 %v6511_v13 }
  0x11   :  { %5583 = vmatprep.subr.bf16.mxu0 %v6400_v0  ;;  %5595 = vmatprep.subr.bf16.mxu1 %v6400_v0 }
  0x13   :  { %4688 = vmatmul.mubr.msk.f32.vlgmr.msra.gmra.mrb[0].mxu0 %vm56_vm2, %v49_v15 }
  0x14   :  { %5585 = vmatpush3.bf16.msra.mxu0 %v6478_v5  ;;  %4725 = vmatprep.mubr.msk.f32.mxu0 %vm6401_vm0, %v6402_v4 }
  0x15   :  { %5586 = vmatprep.subr.bf16.mxu0 %v6400_v0 }
  0x18   :  { %5588 = vmatpush3.bf16.msra.mxu0 %v6487_v7 }
  0x19   :  { %5589 = vmatprep.subr.bf16.mxu0 %v6400_v0 }
  0x1c   :  { %5591 = vmatpush3.bf16.msra.mxu0 %v6499_v10 }
  0x1d   :  { %5592 = vmatprep.subr.bf16.mxu0 %v6400_v0 }
  0x20   :  { %5594 = vmatpush3.bf16.msra.mxu0 %v6511_v13 }
  0x21   :  { %5607 = vmatprep.subr.bf16.mxu0 %v6400_v0 }
  0xe6   :  { %v126_v17 = vpop.f32.mrb[0].mxu0 }
  0xe7   :  { %v127_v18 = vadd.f32 %v6538_v16, %v126_v17  ;;  %v4689_v19 = vpop.f32.mrb[1].mxu0 }
  0xe9   :  { %6141 = vtanh.f32 %v127_v18  ;;  %v4151_v21 = vmul.f32 -1.442695, %v127_v18 }
  0xeb   :  { %6143 = vpow2.f32 %v4151_v21 }
  0xf3   :  { %v6142_v20 = vpop.eup %6141 }
  0xf4   :  { %139 = vrot.lane.b32.xlu0 %v6142_v20, %s6403_s17 }
  0xf5   :  { %v6144_v22 = vpop.eup %6143 }
  0xf6   :  { %v133_v23 = vadd.f32 1.0, %v6144_v22 }
  0xf8   :  { %6145 = vrcp.f32 %v133_v23 }
 0x102   :  { %v6146_v24 = vpop.eup %6145 }
 0x103   :  { %v137_v27 = vmul.f32 0.0, %v6146_v24 }
 0x166   :  { %v140_v25 = vpop.permute.xlu0 %139 }
 0x167   :  { %v142_v26 = vmul.f32 %v6146_v24, %v140_v25 }
 0x169   :  { %144 = vrot.lane.b32.xlu0 %v142_v26, %s6404_s18 }
 0x1db   :  { %v145_v28 = vpop.permute.xlu0 %144 }
 0x1dc   :  { %v147_v29 = vadd.f32 %v145_v28, %v137_v27 }
 0x1de   :  { %6147 = vtanh.f32 %v147_v29 }
 0x1e8   :  { %v6148_v30 = vpop.eup %6147 }
 0x1e9   :  { %150 = vrot.lane.b32.xlu1 %v6148_v30, %s6403_s17 }
 0x25b   :  { %v151_v31 = vpop.permute.xlu1 %150 }
 0x25c   :  { %v6544_v32 = vmul.f32 %v6146_v24, %v151_v31 }
 0x25e   :  { %161 = vrot.lane.b32.xlu1 %v6544_v32, %s6403_s17 }
 0x2d0   :  { %v162_v34 = vpop.permute.xlu1 %161 }
 0x2d1   :  { %v164_v35 = vsel %vm48_vm1, %v6551_v33, %v162_v34 }
 0x2d2   :  { %4707 = vmatmul.mubr.msk.f32.vlgmr.msra.gmra.mrb[0].mxu1 %vm56_vm2, %v164_v35  ;;  %v6629_v35 = vld [vmem:[%s7688_s0 + $0x20] sm:$0xff] }
 0x2d3   :  { %5597 = vmatpush3.bf16.msra.mxu1 %v6478_v5  ;;  %4744 = vmatprep.mubr.msk.f32.mxu1 %vm6401_vm0, %v6402_v4 }
 0x2d4   :  { %5598 = vmatprep.subr.bf16.mxu1 %v6400_v0 }
 0x2d7   :  { %5600 = vmatpush3.bf16.msra.mxu1 %v6487_v7 }
 0x2d8   :  { %5601 = vmatprep.subr.bf16.mxu1 %v6400_v0 }
 0x2db   :  { %5603 = vmatpush3.bf16.msra.mxu1 %v6499_v10 }
 0x2dc   :  { %5604 = vmatprep.subr.bf16.mxu1 %v6400_v0 }
 0x2df   :  { %5606 = vmatpush3.bf16.msra.mxu1 %v6511_v13 }
 0x2e0   :  { %5619 = vmatprep.subr.bf16.mxu1 %v6400_v0 }
 0x3a5   :  { %v234_v36 = vpop.f32.mrb[0].mxu1 }
 0x3a6   :  { %v235_v37 = vadd.f32 %v6538_v16, %v234_v36  ;;  %v4708_v38 = vpop.f32.mrb[1].mxu1 }
 0x3a8   :  { %6149 = vtanh.f32 %v235_v37  ;;  %v4154_v40 = vmul.f32 -1.442695, %v235_v37 }
 0x3aa   :  { %6151 = vpow2.f32 %v4154_v40 }
 0x3b2   :  { %v6150_v39 = vpop.eup %6149 }
 0x3b3   :  { %247 = vrot.lane.b32.xlu0 %v6150_v39, %s6403_s17 }
 0x3b4   :  { %v6152_v41 = vpop.eup %6151 }
 0x3b5   :  { %v241_v42 = vadd.f32 1.0, %v6152_v41 }
 0x3b7   :  { %6153 = vrcp.f32 %v241_v42 }
 0x3c1   :  { %v6154_v43 = vpop.eup %6153 }
 0x3c2   :  { %v245_v46 = vmul.f32 %v6154_v43, %v147_v29 }
 0x425   :  { %v248_v44 = vpop.permute.xlu0 %247 }
 0x426   :  { %v250_v45 = vmul.f32 %v6154_v43, %v248_v44 }
 0x428   :  { %252 = vrot.lane.b32.xlu1 %v250_v45, %s6404_s18 }
 0x49a   :  { %v253_v47 = vpop.permute.xlu1 %252 }
 0x49b   :  { %v255_v48 = vadd.f32 %v253_v47, %v245_v46 }
 0x49d   :  { %6155 = vtanh.f32 %v255_v48 }
 0x4a7   :  { %v6156_v49 = vpop.eup %6155 }
 0x4a8   :  { %258 = vrot.lane.b32.xlu0 %v6156_v49, %s6403_s17 }
 0x51a   :  { %v259_v50 = vpop.permute.xlu0 %258 }
 0x51b   :  { %v6570_v51 = vmul.f32 %v6154_v43, %v259_v50 }
 0x51d   :  { %270 = vrot.lane.b32.xlu1 %v6570_v51, %s6403_s17 }
 0x58f   :  { %v271_v53 = vpop.permute.xlu1 %270 }
 0x590   :  { %v273_v54 = vsel %vm48_vm1, %v6577_v52, %v271_v53 }
 0x591   :  { %4726 = vmatmul.mubr.msk.f32.vlgmr.msra.gmra.mrb[2].mxu0 %vm56_vm2, %v273_v54 }
 0x592   :  { %5609 = vmatpush3.bf16.msra.mxu0 %v6478_v5  ;;  %4763 = vmatprep.mubr.msk.f32.mxu0 %vm6401_vm0, %v6402_v4 }
 0x593   :  { %5610 = vmatprep.subr.bf16.mxu0 %v6400_v0 }
 0x596   :  { %5612 = vmatpush3.bf16.msra.mxu0 %v6487_v7 }
 0x597   :  { %5613 = vmatprep.subr.bf16.mxu0 %v6400_v0 }
 0x59a   :  { %5615 = vmatpush3.bf16.msra.mxu0 %v6499_v10 }
 0x59b   :  { %5616 = vmatprep.subr.bf16.mxu0 %v6400_v0 }
 0x59e   :  { %5618 = vmatpush3.bf16.msra.mxu0 %v6511_v13 }
 0x59f   :  { %5631 = vmatprep.subr.bf16.mxu0 %v6400_v0 }
 0x664   :  { %v343_v55 = vpop.f32.mrb[2].mxu0 }
 0x665   :  { %v344_v56 = vadd.f32 %v6538_v16, %v343_v55  ;;  %v4727_v57 = vpop.f32.mrb[3].mxu0 }
 0x667   :  { %6157 = vtanh.f32 %v344_v56  ;;  %v4157_v59 = vmul.f32 -1.442695, %v344_v56  ;;  %v6655_v56 = vld [vmem:[%s7688_s0 + $0x28] sm:$0xff] }
 0x669   :  { %6159 = vpow2.f32 %v4157_v59 }
 0x671   :  { %v6158_v58 = vpop.eup %6157 }
 0x672   :  { %356 = vrot.lane.b32.xlu0 %v6158_v58, %s6403_s17 }
 0x673   :  { %v6160_v60 = vpop.eup %6159 }
 0x674   :  { %v350_v61 = vadd.f32 1.0, %v6160_v60 }
 0x676   :  { %6161 = vrcp.f32 %v350_v61 }
 0x680   :  { %v6162_v62 = vpop.eup %6161 }
 0x681   :  { %v354_v2 = vmul.f32 %v6162_v62, %v255_v48 }
 0x6e4   :  { %v357_v63 = vpop.permute.xlu0 %356 }
 0x6e5   :  { %v359_v1 = vmul.f32 %v6162_v62, %v357_v63 }
 0x6e7   :  { %361 = vrot.lane.b32.xlu1 %v359_v1, %s6404_s18 }
 0x759   :  { %v362_v3 = vpop.permute.xlu1 %361 }
 0x75a   :  { %v364_v6 = vadd.f32 %v362_v3, %v354_v2 }
 0x75c   :  { %6163 = vtanh.f32 %v364_v6 }
 0x766   :  { %v6164_v8 = vpop.eup %6163 }
 0x767   :  { %367 = vrot.lane.b32.xlu0 %v6164_v8, %s6403_s17 }
 0x7d9   :  { %v368_v9 = vpop.permute.xlu0 %367 }
 0x7da   :  { %v6596_v11 = vmul.f32 %v6162_v62, %v368_v9 }
 0x7dc   :  { %379 = vrot.lane.b32.xlu1 %v6596_v11, %s6403_s17 }
 0x84e   :  { %v380_v14 = vpop.permute.xlu1 %379 }
 0x84f   :  { %v382_v15 = vsel %vm48_vm1, %v6603_v12, %v380_v14 }
 0x850   :  { %4745 = vmatmul.mubr.msk.f32.vlgmr.msra.gmra.mrb[2].mxu1 %vm56_vm2, %v382_v15  ;;  %v922_v15 = vld [vmem:[%s7690_s3] sm:$0xff] }
 0x851   :  { %5621 = vmatpush3.bf16.msra.mxu1 %v6478_v5  ;;  %4782 = vmatprep.mubr.msk.f32.mxu1 %vm6401_vm0, %v6402_v4 }
 0x852   :  { %5622 = vmatprep.subr.bf16.mxu1 %v6400_v0 }
 0x855   :  { %5624 = vmatpush3.bf16.msra.mxu1 %v6487_v7 }
 0x856   :  { %5625 = vmatprep.subr.bf16.mxu1 %v6400_v0 }
 0x859   :  { %5627 = vmatpush3.bf16.msra.mxu1 %v6499_v10 }
 0x85a   :  { %5628 = vmatprep.subr.bf16.mxu1 %v6400_v0 }
 0x85d   :  { %5630 = vmatpush3.bf16.msra.mxu1 %v6511_v13 }
 0x85e   :  { %5643 = vmatprep.subr.bf16.mxu1 %v6400_v0 }
 0x923   :  { %v452_v17 = vpop.f32.mrb[2].mxu1 }
 0x924   :  { %v453_v18 = vadd.f32 %v6538_v16, %v452_v17  ;;  %v4746_v19 = vpop.f32.mrb[3].mxu1  ;;  %v923_v17 = vld [vmem:[%s7690_s3 + $0x8] sm:$0xff] }
 0x925   :  { %v6692_v19 = vpack.c.bf16 %v923_v17, %v922_v15 }
 0x926   :  { %6165 = vtanh.f32 %v453_v18  ;;  %v4160_v21 = vmul.f32 -1.442695, %v453_v18  ;;  %v6690_v18 = vld [vmem:[%s7688_s0 + $0x30] sm:$0xff] }
 0x928   :  { %6167 = vpow2.f32 %v4160_v21  ;;  %v924_v21 = vld [vmem:[%s7690_s3 + $0x10] sm:$0xff] }
 0x930   :  { %v6166_v20 = vpop.eup %6165 }
 0x931   :  { %465 = vrot.lane.b32.xlu0 %v6166_v20, %s6403_s17 }
 0x932   :  { %v6168_v22 = vpop.eup %6167 }
 0x933   :  { %v459_v23 = vadd.f32 1.0, %v6168_v22  ;;  %v925_v22 = vld [vmem:[%s7690_s3 + $0x18] sm:$0xff] }
 0x935   :  { %6169 = vrcp.f32 %v459_v23 }
 0x93f   :  { %v6170_v24 = vpop.eup %6169 }
 0x940   :  { %v463_v27 = vmul.f32 %v6170_v24, %v364_v6 }
 0x9a3   :  { %v466_v25 = vpop.permute.xlu0 %465 }
 0x9a4   :  { %v468_v26 = vmul.f32 %v6170_v24, %v466_v25  ;;  %v926_v25 = vld [vmem:[%s7690_s3 + $0x20] sm:$0xff] }
 0x9a6   :  { %470 = vrot.lane.b32.xlu1 %v468_v26, %s6404_s18  ;;  %v927_v26 = vld [vmem:[%s7690_s3 + $0x28] sm:$0xff] }
 0xa18   :  { %v471_v28 = vpop.permute.xlu1 %470 }
 0xa19   :  { %v473_v29 = vadd.f32 %v471_v28, %v463_v27  ;;  %v6716_v27 = vpack.c.bf16 %v927_v26, %v926_v25  ;;  %v928_v28 = vld [vmem:[%s7690_s3 + $0x30] sm:$0xff] }
 0xa1b   :  { %6171 = vtanh.f32 %v473_v29 }
 0xa25   :  { %v6172_v30 = vpop.eup %6171 }
 0xa26   :  { %476 = vrot.lane.b32.xlu0 %v6172_v30, %s6403_s17 }
 0xa98   :  { %v477_v31 = vpop.permute.xlu0 %476 }
 0xa99   :  { %v6622_v34 = vmul.f32 %v6170_v24, %v477_v31  ;;  %v6704_v24 = vpack.c.bf16 %v925_v22, %v924_v21  ;;  %v6732_v31 = vld [vmem:[%s7688_s0 + $0x38] sm:$0xff] }
 0xa9b   :  { %488 = vrot.lane.b32.xlu1 %v6622_v34, %s6403_s17 }
 0xb0d   :  { %v489_v36 = vpop.permute.xlu1 %488 }
 0xb0e   :  { %v491_v37 = vsel %vm48_vm1, %v6629_v35, %v489_v36  ;;  %v932_v36 = vsel %vm48_vm1, %v6732_v31, 0.0 }
 0xb0f   :  { %4764 = vmatmul.mubr.msk.f32.vlgmr.msra.gmra.mrb[4].mxu0 %vm56_vm2, %v491_v37 }
 0xb10   :  { %5633 = vmatpush3.bf16.msra.mxu0 %v6478_v5  ;;  %4801 = vmatprep.mubr.msk.f32.mxu0 %vm6401_vm0, %v6402_v4 }
 0xb11   :  { %5634 = vmatprep.subr.bf16.mxu0 %v6400_v0 }
 0xb14   :  { %5636 = vmatpush3.bf16.msra.mxu0 %v6487_v7 }
 0xb15   :  { %5637 = vmatprep.subr.bf16.mxu0 %v6400_v0 }
 0xb18   :  { %5639 = vmatpush3.bf16.msra.mxu0 %v6499_v10 }
 0xb19   :  { %5640 = vmatprep.subr.bf16.mxu0 %v6400_v0 }
 0xb1c   :  { %5642 = vmatpush3.bf16.msra.mxu0 %v6511_v13 }
 0xb1d   :  { %5655 = vmatprep.subr.bf16.mxu0 %v6400_v0 }
 0xbe2   :  { %v561_v38 = vpop.f32.mrb[4].mxu0 }
 0xbe3   :  { %v562_v39 = vadd.f32 %v6538_v16, %v561_v38  ;;  %v4765_v40 = vpop.f32.mrb[5].mxu0 }
 0xbe5   :  { %6173 = vtanh.f32 %v562_v39  ;;  %v4163_v42 = vmul.f32 -1.442695, %v562_v39 }
 0xbe7   :  { %6175 = vpow2.f32 %v4163_v42 }
 0xbef   :  { %v6174_v41 = vpop.eup %6173 }
 0xbf0   :  { %574 = vrot.lane.b32.xlu0 %v6174_v41, %s6403_s17  ;;  %v6754_v41 = vld [vmem:[%s7691_s4] ss:$0 sm:$0xff] }
 0xbf1   :  { %v6176_v43 = vpop.eup %6175 }
 0xbf2   :  { %v568_v44 = vadd.f32 1.0, %v6176_v43 }
 0xbf4   :  { %6177 = vrcp.f32 %v568_v44 }
 0xbfe   :  { %v6178_v45 = vpop.eup %6177 }
 0xbff   :  { %v572_v48 = vmul.f32 %v6178_v45, %v473_v29  ;;  %v929_v29 = vld [vmem:[%s7690_s3 + $0x38] sm:$0xff] }
 0xc00   :  { %v6726_v30 = vpack.c.bf16 %v929_v29, %v928_v28 }
 0xc62   :  { %v575_v46 = vpop.permute.xlu0 %574 }
 0xc63   :  { %v577_v47 = vmul.f32 %v6178_v45, %v575_v46 }
 0xc65   :  { %579 = vrot.lane.b32.xlu1 %v577_v47, %s6404_s18 }
 0xcd7   :  { %v580_v49 = vpop.permute.xlu1 %579 }
 0xcd8   :  { %v582_v50 = vadd.f32 %v580_v49, %v572_v48 }
 0xcda   :  { %6179 = vtanh.f32 %v582_v50 }
 0xce4   :  { %v6180_v53 = vpop.eup %6179 }
 0xce5   :  { %585 = vrot.lane.b32.xlu0 %v6180_v53, %s6403_s17 }
 0xd57   :  { %v586_v54 = vpop.permute.xlu0 %585 }
 0xd58   :  { %v6648_v55 = vmul.f32 %v6178_v45, %v586_v54 }
 0xd5a   :  { %597 = vrot.lane.b32.xlu1 %v6648_v55, %s6403_s17 }
 0xdcc   :  { %v598_v57 = vpop.permute.xlu1 %597 }
 0xdcd   :  { %v600_v58 = vsel %vm48_vm1, %v6655_v56, %v598_v57 }
 0xdce   :  { %4783 = vmatmul.mubr.msk.f32.vlgmr.msra.gmra.mrb[4].mxu1 %vm56_vm2, %v600_v58 }
 0xdcf   :  { %5645 = vmatpush3.bf16.msra.mxu1 %v6478_v5  ;;  %4820 = vmatprep.mubr.msk.f32.mxu1 %vm6401_vm0, %v6402_v4 }
 0xdd0   :  { %5646 = vmatprep.subr.bf16.mxu1 %v6400_v0 }
 0xdd3   :  { %5648 = vmatpush3.bf16.msra.mxu1 %v6487_v7 }
 0xdd4   :  { %5649 = vmatprep.subr.bf16.mxu1 %v6400_v0 }
 0xdd7   :  { %5651 = vmatpush3.bf16.msra.mxu1 %v6499_v10 }
 0xdd8   :  { %5652 = vmatprep.subr.bf16.mxu1 %v6400_v0 }
 0xddb   :  { %5654 = vmatpush3.bf16.msra.mxu1 %v6511_v13 }
 0xddc   :  { %5667 = vmatprep.subr.bf16.mxu1 %v6400_v0 }
 0xea1   :  { %v670_v59 = vpop.f32.mrb[4].mxu1 }
 0xea2   :  { %v671_v5 = vadd.f32 %v6538_v16, %v670_v59  ;;  %v4784_v60 = vpop.f32.mrb[5].mxu1 }
 0xea4   :  { %6181 = vtanh.f32 %v671_v5  ;;  %v4166_v62 = vmul.f32 -1.442695, %v671_v5 }
 0xea6   :  { %6183 = vpow2.f32 %v4166_v62 }
 0xeae   :  { %v6182_v61 = vpop.eup %6181 }
 0xeaf   :  { %683 = vrot.lane.b32.xlu0 %v6182_v61, %s6403_s17 }
 0xeb0   :  { %v6184_v7 = vpop.eup %6183 }
 0xeb1   :  { %v677_v63 = vadd.f32 1.0, %v6184_v7 }
 0xeb3   :  { %6185 = vrcp.f32 %v677_v63 }
 0xebd   :  { %v6186_v10 = vpop.eup %6185 }
 0xebe   :  { %v681_v13 = vmul.f32 %v6186_v10, %v582_v50 }
 0xf21   :  { %v684_v1 = vpop.permute.xlu0 %683 }
 0xf22   :  { %v686_v2 = vmul.f32 %v6186_v10, %v684_v1 }
 0xf24   :  { %688 = vrot.lane.b32.xlu1 %v686_v2, %s6404_s18 }
 0xf96   :  { %v689_v3 = vpop.permute.xlu1 %688 }
 0xf97   :  { %v6673_v6 = vadd.f32 %v689_v3, %v681_v13 }
 0xf99   :  { %6187 = vtanh.f32 %v6673_v6 }
 0xfa3   :  { %v6188_v8 = vpop.eup %6187 }
 0xfa4   :  { %694 = vrot.lane.b32.xlu0 %v6188_v8, %s6403_s17 }
0x1016   :  { %v695_v9 = vpop.permute.xlu0 %694 }
0x1017   :  { %v6677_v14 = vmul.f32 %v6186_v10, %v695_v9 }
0x1019   :  { %706 = vrot.lane.b32.xlu1 %v6677_v14, %s6403_s17 }
0x108b   :  { %v707_v20 = vpop.permute.xlu1 %706 }
0x108c   :  { %v709_v23 = vsel %vm48_vm1, %v6690_v18, %v707_v20 }
0x108d   :  { %4802 = vmatmul.mubr.msk.f32.vlgmr.msra.gmra.mrb[6].mxu0 %vm56_vm2, %v709_v23 }
0x108e   :  { %5657 = vmatpush3.bf16.msra.mxu0 %v6692_v19  ;;  %4839 = vmatprep.mubr.msk.f32.mxu0 %vm6401_vm0, %v6402_v4 }
0x108f   :  { %5658 = vmatprep.subr.bf16.mxu0 %v6400_v0 }
0x1092   :  { %5660 = vmatpush3.bf16.msra.mxu0 %v6704_v24 }
0x1093   :  { %5661 = vmatprep.subr.bf16.mxu0 %v6400_v0 }
0x1096   :  { %5663 = vmatpush3.bf16.msra.mxu0 %v6716_v27 }
0x1097   :  { %5664 = vmatprep.subr.bf16.mxu0 %v6400_v0 }
0x109a   :  { %5666 = vmatpush3.bf16.msra.mxu0 %v6726_v30 }
0x109b   :  { %5679 = vmatprep.subr.bf16.mxu0 %v6400_v0 }
0x109d   :  { %4840 = vmatmul.mubr.msk.f32.vlgmr.msra.gmra.mrb[8].mxu0 %vm56_vm2, %v932_v36 }
0x109e   :  { %5681 = vmatpush3.bf16.msra.mxu0 %v6692_v19  ;;  %4877 = vmatprep.mubr.msk.f32.mxu0 %vm6401_vm0, %v6402_v4 }
0x109f   :  { %5682 = vmatprep.subr.bf16.mxu0 %v6400_v0 }
0x10a2   :  { %5684 = vmatpush3.bf16.msra.mxu0 %v6704_v24 }
0x10a3   :  { %5685 = vmatprep.subr.bf16.mxu0 %v6400_v0 }
0x10a6   :  { %5687 = vmatpush3.bf16.msra.mxu0 %v6716_v27 }
0x10a7   :  { %5688 = vmatprep.subr.bf16.mxu0 %v6400_v0 }
0x10aa   :  { %5690 = vmatpush3.bf16.msra.mxu0 %v6726_v30 }
0x10ab   :  { %5703 = vmatprep.subr.bf16.mxu0 %v6400_v0 }
0x1160   :  { %v779_v37 = vpop.f32.mrb[6].mxu0 }
0x1161   :  { %v780_v38 = vadd.f32 %v6538_v16, %v779_v37  ;;  %v4803_v39 = vpop.f32.mrb[7].mxu0 }
0x1163   :  { %6189 = vtanh.f32 %v780_v38  ;;  %v4169_v46 = vmul.f32 -1.442695, %v780_v38 }
0x116d   :  { %v6190_v40 = vpop.eup %6189 }
0x116e   :  { %792 = vrot.lane.b32.xlu0 %v6190_v40, %s6403_s17 }
0x1170   :  { %v1008_v42 = vpop.f32.mrb[8].mxu0 }
0x1171   :  { %v1009_v43 = vadd.f32 %v6754_v41, %v1008_v42  ;;  %v4841_v44 = vpop.f32.mrb[9].mxu0 }
0x1173   :  { %6191 = vtanh.f32 %v1009_v43  ;;  %v4176_v47 = vmul.f32 -1.442695, %v1009_v43 }
0x1174   :  { %6193 = vpow2.f32 %v4169_v46 }
0x1175   :  { %6195 = vpow2.f32 %v4176_v47 }
0x117d   :  { %v6192_v45 = vpop.eup %6191 }
0x117e   :  { %1021 = vrot.lane.b32.xlu1 %v6192_v45, %s6403_s17  ;;  %v6194_v16 = vpop.eup %6193 }
0x117f   :  { %v786_v48 = vadd.f32 1.0, %v6194_v16  ;;  %v6196_v49 = vpop.eup %6195 }
0x1180   :  { %v1015_v57 = vadd.f32 1.0, %v6196_v49 }
0x1181   :  { %6197 = vrcp.f32 %v786_v48 }
0x1182   :  { %6199 = vrcp.f32 %v1015_v57 }
0x118b   :  { %v6198_v50 = vpop.eup %6197 }
0x118c   :  { %v6200_v58 = vpop.eup %6199  ;;  %v790_v60 = vmul.f32 %v6198_v50, %v6673_v6 }
0x118d   :  { %v1019_v63 = vmul.f32 0.0, %v6200_v58 }
0x11e0   :  { %v793_v53 = vpop.permute.xlu0 %792 }
0x11e1   :  { %v795_v54 = vmul.f32 %v6198_v50, %v793_v53 }
0x11e3   :  { %797 = vrot.lane.b32.xlu0 %v795_v54, %s6404_s18 }
0x11f0   :  { %v1022_v59 = vpop.permute.xlu1 %1021 }
0x11f1   :  { %v1024_v5 = vmul.f32 %v6200_v58, %v1022_v59 }
0x11f3   :  { %1026 = vrot.lane.b32.xlu1 %v1024_v5, %s6404_s18 }
0x1255   :  { %v798_v61 = vpop.permute.xlu0 %797 }
0x1256   :  { %v6761_v62 = vadd.f32 %v798_v61, %v790_v60 }
0x1258   :  { %6201 = vtanh.f32 %v6761_v62 }
0x1262   :  { %v6202_v7 = vpop.eup %6201 }
0x1263   :  { %803 = vrot.lane.b32.xlu0 %v6202_v7, %s6403_s17 }
0x1265   :  { %v1027_v10 = vpop.permute.xlu1 %1026 }
0x1266   :  { %v1029_v1 = vadd.f32 %v1027_v10, %v1019_v63 }
0x1268   :  { %6203 = vtanh.f32 %v1029_v1 }
0x1272   :  { %v6204_v2 = vpop.eup %6203 }
0x1273   :  { %1032 = vrot.lane.b32.xlu1 %v6204_v2, %s6403_s17 }
0x12d5   :  { %v804_v13 = vpop.permute.xlu0 %803 }
0x12d6   :  { %v6766_v3 = vmul.f32 %v6198_v50, %v804_v13 }
0x12d8   :  { %815 = vrot.lane.b32.xlu0 %v6766_v3, %s6403_s17 }
0x12e5   :  { %v1033_v6 = vpop.permute.xlu1 %1032 }
0x12e6   :  { %v1035_v8 = vmul.f32 %v6200_v58, %v1033_v6 }
0x12e8   :  { %1037 = vrot.lane.b32.xlu1 %v1035_v8, %s6403_s17 }
0x134a   :  { %v816_v9 = vpop.permute.xlu0 %815 }
0x134b   :  { %v818_v15 = vsel %vm48_vm1, %v6732_v31, %v816_v9 }
0x134c   :  { %4821 = vmatmul.mubr.msk.f32.vlgmr.msra.gmra.mrb[6].mxu1 %vm56_vm2, %v818_v15 }
0x134d   :  { %5669 = vmatpush3.bf16.msra.mxu1 %v6692_v19  ;;  %4858 = vmatprep.mubr.msk.f32.mxu1 %vm6401_vm0, %v6402_v4 }
0x134e   :  { %5670 = vmatprep.subr.bf16.mxu1 %v6400_v0 }
0x1351   :  { %5672 = vmatpush3.bf16.msra.mxu1 %v6704_v24 }
0x1352   :  { %5673 = vmatprep.subr.bf16.mxu1 %v6400_v0 }
0x1355   :  { %5675 = vmatpush3.bf16.msra.mxu1 %v6716_v27 }
0x1356   :  { %5676 = vmatprep.subr.bf16.mxu1 %v6400_v0 }
0x1359   :  { %5678 = vmatpush3.bf16.msra.mxu1 %v6726_v30 }
0x135a   :  { %v6783_v17 = vpop.permute.xlu1 %1037  ;;  %5691 = vmatprep.subr.bf16.mxu1 %v6400_v0 }
0x135b   :  { %v1043_v20 = vsel %vm48_vm1, %v6690_v18, %v6783_v17 }
0x135c   :  { %4859 = vmatmul.mubr.msk.f32.vlgmr.msra.gmra.mrb[8].mxu1 %vm56_vm2, %v1043_v20 }
0x135d   :  { %5693 = vmatpush3.bf16.msra.mxu1 %v6692_v19  ;;  %4896 = vmatprep.mubr.msk.f32.mxu1 %vm6401_vm0, %v6402_v4 }
0x135e   :  { %5694 = vmatprep.subr.bf16.mxu1 %v6400_v0 }
0x1361   :  { %5696 = vmatpush3.bf16.msra.mxu1 %v6704_v24 }
0x1362   :  { %5697 = vmatprep.subr.bf16.mxu1 %v6400_v0 }
0x1365   :  { %5699 = vmatpush3.bf16.msra.mxu1 %v6716_v27 }
0x1366   :  { %5700 = vmatprep.subr.bf16.mxu1 %v6400_v0 }
0x1369   :  { %5702 = vmatpush3.bf16.msra.mxu1 %v6726_v30 }
0x136a   :  { %5715 = vmatprep.subr.bf16.mxu1 %v6400_v0 }
0x141f   :  { %v6800_v18 = vpop.f32.mrb[6].mxu1 }
0x1420   :  { %v4822_v21 = vpop.f32.mrb[7].mxu1 }
0x142f   :  { %v1113_v22 = vpop.f32.mrb[8].mxu1 }
0x1430   :  { %v1114_v23 = vadd.f32 %v6754_v41, %v1113_v22  ;;  %v4860_v25 = vpop.f32.mrb[9].mxu1 }
0x1432   :  { %6205 = vtanh.f32 %v1114_v23  ;;  %v4179_v28 = vmul.f32 -1.442695, %v1114_v23 }
0x1434   :  { %6207 = vpow2.f32 %v4179_v28 }
0x143c   :  { %v6206_v26 = vpop.eup %6205 }
0x143d   :  { %1126 = vrot.lane.b32.xlu0 %v6206_v26, %s6403_s17 }
0x143e   :  { %v6208_v29 = vpop.eup %6207 }
0x143f   :  { %v1120_v31 = vadd.f32 1.0, %v6208_v29 }
0x1441   :  { %6209 = vrcp.f32 %v1120_v31 }
0x144b   :  { %v6210_v36 = vpop.eup %6209 }
0x144c   :  { %v1124_v39 = vmul.f32 %v6210_v36, %v1029_v1 }
0x14af   :  { %v1127_v37 = vpop.permute.xlu0 %1126 }
0x14b0   :  { %v1129_v38 = vmul.f32 %v6210_v36, %v1127_v37 }
0x14b2   :  { %1131 = vrot.lane.b32.xlu1 %v1129_v38, %s6404_s18 }
0x1524   :  { %v1132_v40 = vpop.permute.xlu1 %1131 }
0x1525   :  { %v1134_v42 = vadd.f32 %v1132_v40, %v1124_v39 }
0x1527   :  { %6211 = vtanh.f32 %v1134_v42 }
0x1531   :  { %v6212_v43 = vpop.eup %6211 }
0x1532   :  { %1137 = vrot.lane.b32.xlu0 %v6212_v43, %s6403_s17 }
0x15a4   :  { %v1138_v44 = vpop.permute.xlu0 %1137 }
0x15a5   :  { %v1140_v45 = vmul.f32 %v6210_v36, %v1138_v44 }
0x15a7   :  { %1142 = vrot.lane.b32.xlu1 %v1140_v45, %s6403_s17 }
0x1619   :  { %v6807_v46 = vpop.permute.xlu1 %1142 }
0x161a   :  { %v1147_v16 = vsel %vm48_vm1, %v6655_v56, %v6807_v46 }
0x161b   :  { %4878 = vmatmul.mubr.msk.f32.vlgmr.msra.gmra.mrb[10].mxu0 %vm56_vm2, %v1147_v16 }
0x161c   :  { %5705 = vmatpush3.bf16.msra.mxu0 %v6692_v19  ;;  %4915 = vmatprep.mubr.msk.f32.mxu0 %vm6401_vm0, %v6402_v4 }
0x161d   :  { %5706 = vmatprep.subr.bf16.mxu0 %v6400_v0 }
0x1620   :  { %5708 = vmatpush3.bf16.msra.mxu0 %v6704_v24 }
0x1621   :  { %5709 = vmatprep.subr.bf16.mxu0 %v6400_v0 }
0x1624   :  { %5711 = vmatpush3.bf16.msra.mxu0 %v6716_v27 }
0x1625   :  { %5712 = vmatprep.subr.bf16.mxu0 %v6400_v0 }
0x1628   :  { %5714 = vmatpush3.bf16.msra.mxu0 %v6726_v30 }
0x1629   :  { %5727 = vmatprep.subr.bf16.mxu0 %v6400_v0 }
0x16ee   :  { %v1217_v56 = vpop.f32.mrb[10].mxu0 }
0x16ef   :  { %v1218_v47 = vadd.f32 %v6754_v41, %v1217_v56  ;;  %v4879_v48 = vpop.f32.mrb[11].mxu0 }
0x16f1   :  { %6213 = vtanh.f32 %v1218_v47  ;;  %v4182_v50 = vmul.f32 -1.442695, %v1218_v47 }
0x16f3   :  { %6215 = vpow2.f32 %v4182_v50 }
0x16fb   :  { %v6214_v49 = vpop.eup %6213 }
0x16fc   :  { %1230 = vrot.lane.b32.xlu0 %v6214_v49, %s6403_s17 }
0x16fd   :  { %v6216_v53 = vpop.eup %6215 }
0x16fe   :  { %v1224_v54 = vadd.f32 1.0, %v6216_v53 }
0x1700   :  { %6217 = vrcp.f32 %v1224_v54 }
0x170a   :  { %v6218_v57 = vpop.eup %6217 }
0x170b   :  { %v1228_v5 = vmul.f32 %v6218_v57, %v1134_v42 }
0x176e   :  { %v1231_v58 = vpop.permute.xlu0 %1230 }
0x176f   :  { %v1233_v59 = vmul.f32 %v6218_v57, %v1231_v58 }
0x1771   :  { %1235 = vrot.lane.b32.xlu1 %v1233_v59, %s6404_s18 }
0x17e3   :  { %v1236_v60 = vpop.permute.xlu1 %1235 }
0x17e4   :  { %v1238_v61 = vadd.f32 %v1236_v60, %v1228_v5 }
0x17e6   :  { %6219 = vtanh.f32 %v1238_v61 }
0x17f0   :  { %v6220_v7 = vpop.eup %6219 }
0x17f1   :  { %1241 = vrot.lane.b32.xlu0 %v6220_v7, %s6403_s17 }
0x1863   :  { %v1242_v63 = vpop.permute.xlu0 %1241 }
0x1864   :  { %v1244_v10 = vmul.f32 %v6218_v57, %v1242_v63 }
0x1866   :  { %1246 = vrot.lane.b32.xlu1 %v1244_v10, %s6403_s17 }
0x18d8   :  { %v6828_v1 = vpop.permute.xlu1 %1246 }
0x18d9   :  { %v1251_v2 = vsel %vm48_vm1, %v6629_v35, %v6828_v1 }
0x18da   :  { %4897 = vmatmul.mubr.msk.f32.vlgmr.msra.gmra.mrb[10].mxu1 %vm56_vm2, %v1251_v2 }
0x18db   :  { %5717 = vmatpush3.bf16.msra.mxu1 %v6692_v19  ;;  %4934 = vmatprep.mubr.msk.f32.mxu1 %vm6401_vm0, %v6402_v4 }
0x18dc   :  { %5718 = vmatprep.subr.bf16.mxu1 %v6400_v0 }
0x18df   :  { %5720 = vmatpush3.bf16.msra.mxu1 %v6704_v24 }
0x18e0   :  { %5721 = vmatprep.subr.bf16.mxu1 %v6400_v0 }
0x18e3   :  { %5723 = vmatpush3.bf16.msra.mxu1 %v6716_v27 }
0x18e4   :  { %5724 = vmatprep.subr.bf16.mxu1 %v6400_v0 }
0x18e7   :  { %5726 = vmatpush3.bf16.msra.mxu1 %v6726_v30 }
0x18e8   :  { %5739 = vmatprep.subr.bf16.mxu1 %v6400_v0 }
0x19ad   :  { %v1321_v35 = vpop.f32.mrb[10].mxu1 }
0x19ae   :  { %v1322_v13 = vadd.f32 %v6754_v41, %v1321_v35  ;;  %v4898_v6 = vpop.f32.mrb[11].mxu1 }
0x19b0   :  { %6221 = vtanh.f32 %v1322_v13  ;;  %v4185_v9 = vmul.f32 -1.442695, %v1322_v13 }
0x19b2   :  { %6223 = vpow2.f32 %v4185_v9 }
0x19ba   :  { %v6222_v8 = vpop.eup %6221 }
0x19bb   :  { %1334 = vrot.lane.b32.xlu0 %v6222_v8, %s6403_s17 }
0x19bc   :  { %v6224_v15 = vpop.eup %6223 }
0x19bd   :  { %v1328_v20 = vadd.f32 1.0, %v6224_v15 }
0x19bf   :  { %6225 = vrcp.f32 %v1328_v20 }
0x19c9   :  { %v6226_v21 = vpop.eup %6225 }
0x19ca   :  { %v1332_v25 = vmul.f32 %v6226_v21, %v1238_v61 }
0x1a2d   :  { %v1335_v22 = vpop.permute.xlu0 %1334 }
0x1a2e   :  { %v1337_v23 = vmul.f32 %v6226_v21, %v1335_v22 }
0x1a30   :  { %1339 = vrot.lane.b32.xlu1 %v1337_v23, %s6404_s18 }
0x1aa2   :  { %v1340_v26 = vpop.permute.xlu1 %1339 }
0x1aa3   :  { %v1342_v28 = vadd.f32 %v1340_v26, %v1332_v25 }
0x1aa5   :  { %6227 = vtanh.f32 %v1342_v28 }
0x1aaf   :  { %v6228_v29 = vpop.eup %6227 }
0x1ab0   :  { %1345 = vrot.lane.b32.xlu0 %v6228_v29, %s6403_s17 }
0x1b22   :  { %v1346_v31 = vpop.permute.xlu0 %1345 }
0x1b23   :  { %v1348_v36 = vmul.f32 %v6226_v21, %v1346_v31 }
0x1b25   :  { %1350 = vrot.lane.b32.xlu1 %v1348_v36, %s6403_s17 }
0x1b97   :  { %v6849_v37 = vpop.permute.xlu1 %1350 }
0x1b98   :  { %v1355_v38 = vsel %vm48_vm1, %v6603_v12, %v6849_v37 }
0x1b99   :  { %4916 = vmatmul.mubr.msk.f32.vlgmr.msra.gmra.mrb[12].mxu0 %vm56_vm2, %v1355_v38 }
0x1b9a   :  { %5729 = vmatpush3.bf16.msra.mxu0 %v6692_v19  ;;  %4953 = vmatprep.mubr.msk.f32.mxu0 %vm6401_vm0, %v6402_v4 }
0x1b9b   :  { %5730 = vmatprep.subr.bf16.mxu0 %v6400_v0 }
0x1b9e   :  { %5732 = vmatpush3.bf16.msra.mxu0 %v6704_v24 }
0x1b9f   :  { %5733 = vmatprep.subr.bf16.mxu0 %v6400_v0 }
0x1ba2   :  { %5735 = vmatpush3.bf16.msra.mxu0 %v6716_v27 }
0x1ba3   :  { %5736 = vmatprep.subr.bf16.mxu0 %v6400_v0 }
0x1ba6   :  { %5738 = vmatpush3.bf16.msra.mxu0 %v6726_v30 }
0x1ba7   :  { %5751 = vmatprep.subr.bf16.mxu0 %v6400_v0 }
0x1c6c   :  { %v1425_v12 = vpop.f32.mrb[12].mxu0 }
0x1c6d   :  { %v1426_v39 = vadd.f32 %v6754_v41, %v1425_v12  ;;  %v4917_v40 = vpop.f32.mrb[13].mxu0 }
0x1c6f   :  { %6229 = vtanh.f32 %v1426_v39  ;;  %v4188_v43 = vmul.f32 -1.442695, %v1426_v39 }
0x1c71   :  { %6231 = vpow2.f32 %v4188_v43 }
0x1c79   :  { %v6230_v42 = vpop.eup %6229 }
0x1c7a   :  { %1438 = vrot.lane.b32.xlu0 %v6230_v42, %s6403_s17 }
0x1c7b   :  { %v6232_v44 = vpop.eup %6231 }
0x1c7c   :  { %v1432_v45 = vadd.f32 1.0, %v6232_v44  ;;  %v6397_v44 = vld [vmem:[%s7688_s0] sm:$0xff] }
0x1c7e   :  { %6233 = vrcp.f32 %v1432_v45 }
0x1c88   :  { %v6234_v16 = vpop.eup %6233 }
0x1c89   :  { %v1436_v48 = vmul.f32 %v6234_v16, %v1342_v28 }
0x1cec   :  { %v1439_v56 = vpop.permute.xlu0 %1438 }
0x1ced   :  { %v1441_v47 = vmul.f32 %v6234_v16, %v1439_v56 }
0x1cef   :  { %1443 = vrot.lane.b32.xlu1 %v1441_v47, %s6404_s18 }
0x1d61   :  { %v1444_v49 = vpop.permute.xlu1 %1443 }
0x1d62   :  { %v1446_v50 = vadd.f32 %v1444_v49, %v1436_v48 }
0x1d64   :  { %6235 = vtanh.f32 %v1446_v50 }
0x1d6e   :  { %v6236_v53 = vpop.eup %6235 }
0x1d6f   :  { %1449 = vrot.lane.b32.xlu0 %v6236_v53, %s6403_s17 }
0x1de1   :  { %v1450_v54 = vpop.permute.xlu0 %1449 }
0x1de2   :  { %v1452_v57 = vmul.f32 %v6234_v16, %v1450_v54 }
0x1de4   :  { %1454 = vrot.lane.b32.xlu1 %v1452_v57, %s6403_s17 }
0x1e56   :  { %v6870_v58 = vpop.permute.xlu1 %1454 }
0x1e57   :  { %v1459_v59 = vsel %vm48_vm1, %v6577_v52, %v6870_v58 }
0x1e58   :  { %4935 = vmatmul.mubr.msk.f32.vlgmr.msra.gmra.mrb[12].mxu1 %vm56_vm2, %v1459_v59 }
0x1e59   :  { %5741 = vmatpush3.bf16.msra.mxu1 %v6692_v19  ;;  %4972 = vmatprep.mubr.msk.f32.mxu1 %vm6401_vm0, %v6402_v4 }
0x1e5a   :  { %5742 = vmatprep.subr.bf16.mxu1 %v6400_v0 }
0x1e5d   :  { %5744 = vmatpush3.bf16.msra.mxu1 %v6704_v24 }
0x1e5e   :  { %5745 = vmatprep.subr.bf16.mxu1 %v6400_v0 }
0x1e61   :  { %5747 = vmatpush3.bf16.msra.mxu1 %v6716_v27 }
0x1e62   :  { %5748 = vmatprep.subr.bf16.mxu1 %v6400_v0 }
0x1e65   :  { %5750 = vmatpush3.bf16.msra.mxu1 %v6726_v30 }
0x1e66   :  { %5769 = vmatprep.subr.bf16.mxu1 %v6400_v0 }
0x1f2b   :  { %v1529_v52 = vpop.f32.mrb[12].mxu1 }
0x1f2c   :  { %v1530_v19 = vadd.f32 %v6754_v41, %v1529_v52  ;;  %v4936_v5 = vpop.f32.mrb[13].mxu1 }
0x1f2e   :  { %6237 = vtanh.f32 %v1530_v19  ;;  %v4191_v61 = vmul.f32 -1.442695, %v1530_v19 }
0x1f30   :  { %6239 = vpow2.f32 %v4191_v61  ;;  %v1771_v61 = vld [vmem:[%s7692_s5 + $0x8] sm:$0xff] }
0x1f38   :  { %v6238_v60 = vpop.eup %6237 }
0x1f39   :  { %1542 = vrot.lane.b32.xlu0 %v6238_v60, %s6403_s17  ;;  %v1770_v60 = vld [vmem:[%s7692_s5] sm:$0xff] }
0x1f3a   :  { %v6240_v24 = vpop.eup %6239 }
0x1f3b   :  { %v1536_v7 = vadd.f32 1.0, %v6240_v24  ;;  %v1772_v24 = vld [vmem:[%s7692_s5 + $0x10] sm:$0xff] }
0x1f3d   :  { %6241 = vrcp.f32 %v1536_v7  ;;  %v1773_v7 = vld [vmem:[%s7692_s5 + $0x18] sm:$0xff] }
0x1f47   :  { %v6242_v27 = vpop.eup %6241 }
0x1f48   :  { %v1540_v30 = vmul.f32 %v6242_v27, %v1446_v50 }
0x1fab   :  { %v1543_v63 = vpop.permute.xlu0 %1542 }
0x1fac   :  { %v1545_v10 = vmul.f32 %v6242_v27, %v1543_v63  ;;  %v1774_v63 = vld [vmem:[%s7692_s5 + $0x20] sm:$0xff] }
0x1fae   :  { %1547 = vrot.lane.b32.xlu1 %v1545_v10, %s6404_s18  ;;  %v1775_v10 = vld [vmem:[%s7692_s5 + $0x28] sm:$0xff] }
0x2020   :  { %v1548_v2 = vpop.permute.xlu1 %1547 }
0x2021   :  { %v1550_v35 = vadd.f32 %v1548_v2, %v1540_v30  ;;  %v6947_v30 = vpack.c.bf16 %v1775_v10, %v1774_v63  ;;  %v1776_v2 = vld [vmem:[%s7692_s5 + $0x30] sm:$0xff] }
0x2023   :  { %6243 = vtanh.f32 %v1550_v35 }
0x202d   :  { %v6244_v13 = vpop.eup %6243 }
0x202e   :  { %1553 = vrot.lane.b32.xlu0 %v6244_v13, %s6403_s17 }
0x20a0   :  { %v1554_v6 = vpop.permute.xlu0 %1553 }
0x20a1   :  { %v1556_v8 = vmul.f32 %v6242_v27, %v1554_v6  ;;  %v6935_v27 = vpack.c.bf16 %v1773_v7, %v1772_v24 }
0x20a3   :  { %1558 = vrot.lane.b32.xlu1 %v1556_v8, %s6403_s17  ;;  %v1778_v8 = vld [vmem:[%s7692_s5 + $0x40] sm:$0xff] }
0x2115   :  { %v6891_v9 = vpop.permute.xlu1 %1558 }
0x2116   :  { %v1563_v15 = vsel %vm48_vm1, %v6551_v33, %v6891_v9 }
0x2117   :  { %4954 = vmatmul.mubr.msk.f32.vlgmr.msra.gmra.mrb[14].mxu0 %vm56_vm2, %v1563_v15  ;;  %v1779_v15 = vld [vmem:[%s7692_s5 + $0x48] sm:$0xff] }
0x2118   :  { %4999 = vmatprep.mubr.msk.f32.mxu0 %vm6401_vm0, %v6402_v4 }
0x21ea   :  { %v1633_v20 = vpop.f32.mrb[14].mxu0 }
0x21eb   :  { %v1634_v21 = vadd.f32 %v6754_v41, %v1633_v20  ;;  %v4955_v22 = vpop.f32.mrb[15].mxu0  ;;  %v6975_v20 = vpack.c.bf16 %v1779_v15, %v1778_v8 }
0x21ec   :  { %v1781_v22 = vld [vmem:[%s7692_s5 + $0x58] sm:$0xff] }
0x21ed   :  { %6245 = vtanh.f32 %v1634_v21  ;;  %v4194_v25 = vmul.f32 -1.442695, %v1634_v21  ;;  %v1780_v21 = vld [vmem:[%s7692_s5 + $0x50] sm:$0xff] }
0x21ef   :  { %6247 = vpow2.f32 %v4194_v25 }
0x21f7   :  { %v6246_v23 = vpop.eup %6245 }
0x21f8   :  { %1646 = vrot.lane.b32.xlu0 %v6246_v23, %s6403_s17  ;;  %v6984_v23 = vpack.c.bf16 %v1781_v22, %v1780_v21 }
0x21f9   :  { %v6248_v26 = vpop.eup %6247 }
0x21fa   :  { %v1640_v28 = vadd.f32 1.0, %v6248_v26 }
0x21fc   :  { %6249 = vrcp.f32 %v1640_v28 }
0x2206   :  { %v6250_v29 = vpop.eup %6249 }
0x2207   :  { %v1644_v36 = vmul.f32 %v6250_v29, %v1550_v35  ;;  %v1777_v35 = vld [vmem:[%s7692_s5 + $0x38] sm:$0xff] }
0x2208   :  { %v6960_v6 = vpack.c.bf16 %v1777_v35, %v1776_v2 }
0x226a   :  { %v1647_v33 = vpop.permute.xlu0 %1646 }
0x226b   :  { %v1649_v31 = vmul.f32 %v6250_v29, %v1647_v33 }
0x226d   :  { %1651 = vrot.lane.b32.xlu1 %v1649_v31, %s6404_s18  ;;  %v7014_v31 = vld [vmem:[%s7693_s6] ss:$0 sm:$0xff] }
0x22df   :  { %v1652_v38 = vpop.permute.xlu1 %1651 }
0x22e0   :  { %v1654_v12 = vadd.f32 %v1652_v38, %v1644_v36 }
0x22e2   :  { %6251 = vtanh.f32 %v1654_v12 }
0x22ec   :  { %v6252_v39 = vpop.eup %6251 }
0x22ed   :  { %1657 = vrot.lane.b32.xlu0 %v6252_v39, %s6403_s17 }
0x235f   :  { %v1658_v40 = vpop.permute.xlu0 %1657 }
0x2360   :  { %v1660_v42 = vmul.f32 %v6250_v29, %v1658_v40 }
0x2362   :  { %1662 = vrot.lane.b32.xlu1 %v1660_v42, %s6403_s17 }
0x23d4   :  { %v6904_v43 = vpop.permute.xlu1 %1662 }
0x23d5   :  { %v1667_v45 = vsel %vm48_vm1, %v6397_v44, %v6904_v43 }
0x23d6   :  { %4973 = vmatmul.mubr.msk.f32.vlgmr.msra.gmra.mrb[14].mxu1 %vm56_vm2, %v1667_v45 }
0x23d7   :  { %5026 = vmatprep.mubr.msk.f32.mxu1 %vm6401_vm0, %v6402_v4 }
0x24a9   :  { %v1737_v16 = vpop.f32.mrb[14].mxu1 }
0x24aa   :  { %v1738_v56 = vadd.f32 %v6754_v41, %v1737_v16  ;;  %v4974_v47 = vpop.f32.mrb[15].mxu1 }
0x24ac   :  { %6253 = vtanh.f32 %v1738_v56  ;;  %v4196_v49 = vmul.f32 -1.442695, %v1738_v56 }
0x24ae   :  { %6255 = vpow2.f32 %v4196_v49 }
0x24b6   :  { %v6254_v48 = vpop.eup %6253 }
0x24b7   :  { %1750 = vrot.lane.b32.xlu0 %v6254_v48, %s6403_s17 }
0x24b8   :  { %v6256_v50 = vpop.eup %6255 }
0x24b9   :  { %v1744_v53 = vadd.f32 1.0, %v6256_v50 }
0x24bb   :  { %6257 = vrcp.f32 %v1744_v53 }
0x24c5   :  { %v6258_v54 = vpop.eup %6257 }
0x24c6   :  { %v1748_v52 = vmul.f32 %v6258_v54, %v1654_v12 }
0x2529   :  { %v1751_v57 = vpop.permute.xlu0 %1750 }
0x252a   :  { %v1753_v59 = vmul.f32 %v6258_v54, %v1751_v57 }
0x252c   :  { %1755 = vrot.lane.b32.xlu1 %v1753_v59, %s6404_s18 }
0x2530   :  { %155 = vrot.lane.b32.xlu1 %v6544_v32, %s6404_s18  ;;  %v6929_v32 = vpack.c.bf16 %v1771_v61, %v1770_v60 }
0x2532   :  { %5753 = vmatpush3.bf16.msra.mxu0 %v6929_v32  ;;  %5771 = vmatpush3.bf16.msra.mxu1 %v6929_v32 }
0x2533   :  { %5754 = vmatprep.subr.bf16.mxu0 %v6400_v0  ;;  %5772 = vmatprep.subr.bf16.mxu1 %v6400_v0 }
0x2536   :  { %5756 = vmatpush3.bf16.msra.mxu0 %v6935_v27  ;;  %5774 = vmatpush3.bf16.msra.mxu1 %v6935_v27 }
0x2537   :  { %5757 = vmatprep.subr.bf16.mxu0 %v6400_v0  ;;  %5775 = vmatprep.subr.bf16.mxu1 %v6400_v0 }
0x253a   :  { %5759 = vmatpush3.bf16.msra.mxu0 %v6947_v30  ;;  %5777 = vmatpush3.bf16.msra.mxu1 %v6947_v30 }
0x253b   :  { %5760 = vmatprep.subr.bf16.mxu0 %v6400_v0  ;;  %5778 = vmatprep.subr.bf16.mxu1 %v6400_v0 }
0x253e   :  { %5762 = vmatpush3.bf16.msra.mxu0 %v6960_v6  ;;  %5780 = vmatpush3.bf16.msra.mxu1 %v6960_v6 }
0x253f   :  { %5763 = vmatprep.subr.bf16.mxu0 %v6400_v0  ;;  %5781 = vmatprep.subr.bf16.mxu1 %v6400_v0 }
0x2542   :  { %5765 = vmatpush3.bf16.msra.mxu0 %v6975_v20  ;;  %5783 = vmatpush3.bf16.msra.mxu1 %v6975_v20 }
0x2543   :  { %5766 = vmatprep.subr.bf16.mxu0 %v6400_v0  ;;  %5784 = vmatprep.subr.bf16.mxu1 %v6400_v0 }
0x2546   :  { %5768 = vmatpush3.bf16.msra.mxu0 %v6984_v23  ;;  %5786 = vmatpush3.bf16.msra.mxu1 %v6984_v23 }
0x2547   :  { %5787 = vmatprep.subr.bf16.mxu0 %v6400_v0  ;;  %5805 = vmatprep.subr.bf16.mxu1 %v6400_v0 }
0x259e   :  { %v1756_v41 = vpop.permute.xlu1 %1755 }
0x259f   :  { %v1758_v19 = vadd.f32 %v1756_v41, %v1748_v52 }
0x25a1   :  { %6259 = vtanh.f32 %v1758_v19 }
0x25a2   :  { %v156_v5 = vpop.permute.xlu1 %155 }
0x25a3   :  { %158 = vst.msk [vmem:[#allocation2] sm:$0xff] %vm48_vm1, %v156_v5 }
0x25ab   :  { %v6260_v13 = vpop.eup %6259 }
0x25ac   :  { %1761 = vrot.lane.b32.xlu0 %v6260_v13, %s6403_s17 }
0x261e   :  { %v1762_v25 = vpop.permute.xlu0 %1761 }
0x261f   :  { %v1764_v26 = vmul.f32 %v6258_v54, %v1762_v25 }
0x2621   :  { %1766 = vrot.lane.b32.xlu0 %v1764_v26, %s6403_s17 }
0x2693   :  { %v1767_v28 = vpop.permute.xlu0 %1766 }
0x2694   :  { %1769 = vst.msk [vmem:[#allocation2] sm:$0xff] %vm1040_vm3, %v1767_v28 }
0x269b   :  { %v1783_v29 = vld [vmem:[#allocation2] sm:$0xff] }
0x269c   :  { %v1784_v33 = vsel %vm56_vm2, %v1783_v29, 0.0 }
0x269d   :  { %5000 = vmatmul.mubr.msk.f32.vlgmr.msra.gmra.mrb[16].mxu0 %vm1791_vm4, %v1784_v33 }
0x269e   :  { %5789 = vmatpush3.bf16.msra.mxu0 %v6929_v32  ;;  %5053 = vmatprep.mubr.msk.f32.mxu0 %vm6401_vm0, %v6402_v4 }
0x269f   :  { %5790 = vmatprep.subr.bf16.mxu0 %v6400_v0 }
0x26a2   :  { %5792 = vmatpush3.bf16.msra.mxu0 %v6935_v27 }
0x26a3   :  { %5793 = vmatprep.subr.bf16.mxu0 %v6400_v0 }
0x26a6   :  { %5795 = vmatpush3.bf16.msra.mxu0 %v6947_v30 }
0x26a7   :  { %5796 = vmatprep.subr.bf16.mxu0 %v6400_v0 }
0x26aa   :  { %5798 = vmatpush3.bf16.msra.mxu0 %v6960_v6 }
0x26ab   :  { %5799 = vmatprep.subr.bf16.mxu0 %v6400_v0 }
0x26ae   :  { %5801 = vmatpush3.bf16.msra.mxu0 %v6975_v20 }
0x26af   :  { %5802 = vmatprep.subr.bf16.mxu0 %v6400_v0 }
0x26b2   :  { %5804 = vmatpush3.bf16.msra.mxu0 %v6984_v23 }
0x26b3   :  { %5823 = vmatprep.subr.bf16.mxu0 %v6400_v0 }
0x2770   :  { %v1861_v36 = vpop.f32.mrb[16].mxu0 }
0x2771   :  { %v1862_v38 = vadd.f32 %v7014_v31, %v1861_v36  ;;  %v5001_v12 = vpop.f32.mrb[17].mxu0 }
0x2773   :  { %6261 = vtanh.f32 %v1862_v38  ;;  %v4199_v40 = vmul.f32 -1.442695, %v1862_v38 }
0x2775   :  { %6263 = vpow2.f32 %v4199_v40 }
0x277d   :  { %v6262_v39 = vpop.eup %6261 }
0x277e   :  { %1874 = vrot.lane.b32.xlu1 %v6262_v39, %s6403_s17 }
0x277f   :  { %v6264_v42 = vpop.eup %6263 }
0x2780   :  { %v1868_v44 = vadd.f32 1.0, %v6264_v42 }
0x2782   :  { %6265 = vrcp.f32 %v1868_v44 }
0x278c   :  { %v6266_v45 = vpop.eup %6265 }
0x278d   :  { %v1872_v47 = vmul.f32 0.0, %v6266_v45 }
0x27f0   :  { %v1875_v16 = vpop.permute.xlu1 %1874 }
0x27f1   :  { %v1877_v56 = vmul.f32 %v6266_v45, %v1875_v16 }
0x27f3   :  { %1879 = vrot.lane.b32.xlu0 %v1877_v56, %s6404_s18 }
0x27f7   :  { %263 = vrot.lane.b32.xlu0 %v6570_v51, %s6404_s18 }
0x2865   :  { %v1880_v48 = vpop.permute.xlu0 %1879 }
0x2866   :  { %v1882_v49 = vadd.f32 %v1880_v48, %v1872_v47 }
0x2868   :  { %6267 = vtanh.f32 %v1882_v49 }
0x2869   :  { %v264_v50 = vpop.permute.xlu0 %263 }
0x286a   :  { %267 = vst.msk [vmem:[#allocation2 + $0x8] sm:$0xff] %vm48_vm1, %v264_v50 }
0x286b   :  { %1665 = vst.msk [vmem:[#allocation2 + $0x8] sm:$0xff] %vm1040_vm3, %v6904_v43 }
0x2872   :  { %v6268_v53 = vpop.eup %6267  ;;  %v1894_v51 = vld [vmem:[#allocation2 + $0x8] sm:$0xff] }
0x2873   :  { %1885 = vrot.lane.b32.xlu1 %v6268_v53, %s6403_s17 }
0x28e5   :  { %v1886_v54 = vpop.permute.xlu1 %1885 }
0x28e6   :  { %v7025_v57 = vmul.f32 %v6266_v45, %v1886_v54 }
0x28e8   :  { %1895 = vrot.lane.b32.xlu1 %v7025_v57, %s6405_s16 }
0x295a   :  { %v1896_v59 = vpop.permute.xlu1 %1895 }
0x295b   :  { %v1898_v52 = vsel %vm56_vm2, %v1894_v51, %v1896_v59 }
0x295c   :  { %5027 = vmatmul.mubr.msk.f32.vlgmr.msra.gmra.mrb[16].mxu1 %vm1791_vm4, %v1898_v52 }
0x295d   :  { %5807 = vmatpush3.bf16.msra.mxu1 %v6929_v32  ;;  %5080 = vmatprep.mubr.msk.f32.mxu1 %vm6401_vm0, %v6402_v4 }
0x295e   :  { %5808 = vmatprep.subr.bf16.mxu1 %v6400_v0 }
0x2961   :  { %5810 = vmatpush3.bf16.msra.mxu1 %v6935_v27 }
0x2962   :  { %5811 = vmatprep.subr.bf16.mxu1 %v6400_v0 }
0x2965   :  { %5813 = vmatpush3.bf16.msra.mxu1 %v6947_v30 }
0x2966   :  { %5814 = vmatprep.subr.bf16.mxu1 %v6400_v0 }
0x2969   :  { %5816 = vmatpush3.bf16.msra.mxu1 %v6960_v6 }
0x296a   :  { %5817 = vmatprep.subr.bf16.mxu1 %v6400_v0 }
0x296d   :  { %5819 = vmatpush3.bf16.msra.mxu1 %v6975_v20 }
0x296e   :  { %5820 = vmatprep.subr.bf16.mxu1 %v6400_v0 }
0x2971   :  { %5822 = vmatpush3.bf16.msra.mxu1 %v6984_v23 }
0x2972   :  { %5841 = vmatprep.subr.bf16.mxu1 %v6400_v0 }
0x2a2f   :  { %v1968_v43 = vpop.f32.mrb[16].mxu1 }
0x2a30   :  { %v1969_v41 = vadd.f32 %v7014_v31, %v1968_v43  ;;  %v5028_v19 = vpop.f32.mrb[17].mxu1 }
0x2a32   :  { %6269 = vtanh.f32 %v1969_v41  ;;  %v4201_v60 = vmul.f32 -1.442695, %v1969_v41 }
0x2a34   :  { %6271 = vpow2.f32 %v4201_v60 }
0x2a3c   :  { %v6270_v5 = vpop.eup %6269 }
0x2a3d   :  { %1981 = vrot.lane.b32.xlu0 %v6270_v5, %s6403_s17 }
0x2a3e   :  { %v6272_v61 = vpop.eup %6271 }
0x2a3f   :  { %v1975_v24 = vadd.f32 1.0, %v6272_v61 }
0x2a41   :  { %6273 = vrcp.f32 %v1975_v24 }
0x2a4b   :  { %v6274_v7 = vpop.eup %6273 }
0x2a4c   :  { %v1979_v2 = vmul.f32 %v6274_v7, %v1882_v49 }
0x2aaf   :  { %v1982_v63 = vpop.permute.xlu0 %1981 }
0x2ab0   :  { %v1984_v10 = vmul.f32 %v6274_v7, %v1982_v63 }
0x2ab2   :  { %1986 = vrot.lane.b32.xlu1 %v1984_v10, %s6404_s18 }
0x2ab6   :  { %372 = vrot.lane.b32.xlu1 %v6596_v11, %s6404_s18 }
0x2b24   :  { %v1987_v35 = vpop.permute.xlu1 %1986 }
0x2b25   :  { %v1989_v13 = vadd.f32 %v1987_v35, %v1979_v2 }
0x2b27   :  { %6275 = vtanh.f32 %v1989_v13 }
0x2b28   :  { %v373_v8 = vpop.permute.xlu1 %372 }
0x2b29   :  { %376 = vst.msk [vmem:[#allocation2 + $0x10] sm:$0xff] %vm48_vm1, %v373_v8 }
0x2b2a   :  { %1561 = vst.msk [vmem:[#allocation2 + $0x10] sm:$0xff] %vm1040_vm3, %v6891_v9 }
0x2b31   :  { %v6276_v15 = vpop.eup %6275  ;;  %v7058_v11 = vld [vmem:[#allocation2 + $0x10] sm:$0xff] }
0x2b32   :  { %1992 = vrot.lane.b32.xlu0 %v6276_v15, %s6403_s17 }
0x2ba4   :  { %v1993_v21 = vpop.permute.xlu0 %1992 }
0x2ba5   :  { %v7054_v22 = vmul.f32 %v6274_v7, %v1993_v21 }
0x2ba7   :  { %2003 = vrot.lane.b32.xlu0 %v7054_v22, %s6405_s16 }
0x2c19   :  { %v2004_v25 = vpop.permute.xlu0 %2003 }
0x2c1a   :  { %v2006_v26 = vsel %vm56_vm2, %v7058_v11, %v2004_v25 }
0x2c1b   :  { %5054 = vmatmul.mubr.msk.f32.vlgmr.msra.gmra.mrb[18].mxu0 %vm1791_vm4, %v2006_v26 }
0x2c1c   :  { %5825 = vmatpush3.bf16.msra.mxu0 %v6929_v32  ;;  %5107 = vmatprep.mubr.msk.f32.mxu0 %vm6401_vm0, %v6402_v4 }
0x2c1d   :  { %5826 = vmatprep.subr.bf16.mxu0 %v6400_v0 }
0x2c20   :  { %5828 = vmatpush3.bf16.msra.mxu0 %v6935_v27 }
0x2c21   :  { %5829 = vmatprep.subr.bf16.mxu0 %v6400_v0 }
0x2c24   :  { %5831 = vmatpush3.bf16.msra.mxu0 %v6947_v30 }
0x2c25   :  { %5832 = vmatprep.subr.bf16.mxu0 %v6400_v0 }
0x2c28   :  { %5834 = vmatpush3.bf16.msra.mxu0 %v6960_v6 }
0x2c29   :  { %5835 = vmatprep.subr.bf16.mxu0 %v6400_v0 }
0x2c2c   :  { %5837 = vmatpush3.bf16.msra.mxu0 %v6975_v20 }
0x2c2d   :  { %5838 = vmatprep.subr.bf16.mxu0 %v6400_v0 }
0x2c30   :  { %5840 = vmatpush3.bf16.msra.mxu0 %v6984_v23 }
0x2c31   :  { %5859 = vmatprep.subr.bf16.mxu0 %v6400_v0 }
0x2cee   :  { %v2076_v9 = vpop.f32.mrb[18].mxu0 }
0x2cef   :  { %v2077_v28 = vadd.f32 %v7014_v31, %v2076_v9  ;;  %v5055_v29 = vpop.f32.mrb[19].mxu0 }
0x2cf1   :  { %6277 = vtanh.f32 %v2077_v28  ;;  %v4203_v36 = vmul.f32 -1.442695, %v2077_v28 }
0x2cf3   :  { %6279 = vpow2.f32 %v4203_v36 }
0x2cfb   :  { %v6278_v33 = vpop.eup %6277 }
0x2cfc   :  { %2089 = vrot.lane.b32.xlu1 %v6278_v33, %s6403_s17 }
0x2cfd   :  { %v6280_v38 = vpop.eup %6279 }
0x2cfe   :  { %v2083_v12 = vadd.f32 1.0, %v6280_v38 }
0x2d00   :  { %6281 = vrcp.f32 %v2083_v12 }
0x2d0a   :  { %v6282_v39 = vpop.eup %6281 }
0x2d0b   :  { %v2087_v44 = vmul.f32 %v6282_v39, %v1989_v13 }
0x2d6e   :  { %v2090_v40 = vpop.permute.xlu1 %2089 }
0x2d6f   :  { %v2092_v42 = vmul.f32 %v6282_v39, %v2090_v40 }
0x2d71   :  { %2094 = vrot.lane.b32.xlu0 %v2092_v42, %s6404_s18 }
0x2d75   :  { %481 = vrot.lane.b32.xlu0 %v6622_v34, %s6404_s18 }
0x2de3   :  { %v2095_v45 = vpop.permute.xlu0 %2094 }
0x2de4   :  { %v2097_v16 = vadd.f32 %v2095_v45, %v2087_v44  ;;  %v6398_v44 = vld [vmem:[%s7689_s2] ss:$0 sm:$0xff] }
0x2de5   :  { %v889_v45 = vadd.f32 %v6398_v44, %v6800_v18  ;;  %v2659_v44 = vld [vmem:[%s7694_s7 + $0x48] sm:$0xff] }
0x2de6   :  { %6283 = vtanh.f32 %v2097_v16 }
0x2de7   :  { %v482_v56 = vpop.permute.xlu0 %481 }
0x2de8   :  { %485 = vst.msk [vmem:[#allocation2 + $0x18] sm:$0xff] %vm48_vm1, %v482_v56 }
0x2de9   :  { %1457 = vst.msk [vmem:[#allocation2 + $0x18] sm:$0xff] %vm1040_vm3, %v6870_v58 }
0x2df0   :  { %v6284_v47 = vpop.eup %6283  ;;  %v7090_v34 = vld [vmem:[#allocation2 + $0x18] sm:$0xff] }
0x2df1   :  { %2100 = vrot.lane.b32.xlu1 %v6284_v47, %s6403_s17 }
0x2e63   :  { %v2101_v48 = vpop.permute.xlu1 %2100 }
0x2e64   :  { %v7086_v49 = vmul.f32 %v6282_v39, %v2101_v48 }
0x2e66   :  { %2111 = vrot.lane.b32.xlu1 %v7086_v49, %s6405_s16 }
0x2ed8   :  { %v2112_v50 = vpop.permute.xlu1 %2111 }
0x2ed9   :  { %v2114_v53 = vsel %vm56_vm2, %v7090_v34, %v2112_v50 }
0x2eda   :  { %5081 = vmatmul.mubr.msk.f32.vlgmr.msra.gmra.mrb[18].mxu1 %vm1791_vm4, %v2114_v53 }
0x2edb   :  { %5843 = vmatpush3.bf16.msra.mxu1 %v6929_v32  ;;  %5134 = vmatprep.mubr.msk.f32.mxu1 %vm6401_vm0, %v6402_v4 }
0x2edc   :  { %5844 = vmatprep.subr.bf16.mxu1 %v6400_v0 }
0x2edf   :  { %5846 = vmatpush3.bf16.msra.mxu1 %v6935_v27 }
0x2ee0   :  { %5847 = vmatprep.subr.bf16.mxu1 %v6400_v0 }
0x2ee3   :  { %5849 = vmatpush3.bf16.msra.mxu1 %v6947_v30 }
0x2ee4   :  { %5850 = vmatprep.subr.bf16.mxu1 %v6400_v0 }
0x2ee7   :  { %5852 = vmatpush3.bf16.msra.mxu1 %v6960_v6 }
0x2ee8   :  { %5853 = vmatprep.subr.bf16.mxu1 %v6400_v0 }
0x2eeb   :  { %5855 = vmatpush3.bf16.msra.mxu1 %v6975_v20 }
0x2eec   :  { %5856 = vmatprep.subr.bf16.mxu1 %v6400_v0 }
0x2eef   :  { %5858 = vmatpush3.bf16.msra.mxu1 %v6984_v23 }
0x2ef0   :  { %5877 = vmatprep.subr.bf16.mxu1 %v6400_v0 }
0x2fad   :  { %v2184_v58 = vpop.f32.mrb[18].mxu1 }
0x2fae   :  { %v2185_v54 = vadd.f32 %v7014_v31, %v2184_v58  ;;  %v5082_v51 = vpop.f32.mrb[19].mxu1 }
0x2fb0   :  { %6285 = vtanh.f32 %v2185_v54  ;;  %v4205_v52 = vmul.f32 -1.442695, %v2185_v54 }
0x2fb2   :  { %6287 = vpow2.f32 %v4205_v52 }
0x2fba   :  { %v6286_v59 = vpop.eup %6285 }
0x2fbb   :  { %2197 = vrot.lane.b32.xlu0 %v6286_v59, %s6403_s17 }
0x2fbc   :  { %v6288_v43 = vpop.eup %6287 }
0x2fbd   :  { %v2191_v41 = vadd.f32 1.0, %v6288_v43 }
0x2fbf   :  { %6289 = vrcp.f32 %v2191_v41 }
0x2fc9   :  { %v6290_v19 = vpop.eup %6289 }
0x2fca   :  { %v2195_v61 = vmul.f32 %v6290_v19, %v2097_v16 }
0x302d   :  { %v2198_v5 = vpop.permute.xlu0 %2197 }
0x302e   :  { %v2200_v60 = vmul.f32 %v6290_v19, %v2198_v5 }
0x3030   :  { %2202 = vrot.lane.b32.xlu1 %v2200_v60, %s6404_s18 }
0x3034   :  { %590 = vrot.lane.b32.xlu1 %v6648_v55, %s6404_s18 }
0x30a2   :  { %v2203_v24 = vpop.permute.xlu1 %2202 }
0x30a3   :  { %v2205_v7 = vadd.f32 %v2203_v24, %v2195_v61 }
0x30a5   :  { %6291 = vtanh.f32 %v2205_v7 }
0x30a6   :  { %v591_v63 = vpop.permute.xlu1 %590 }
0x30a7   :  { %594 = vst.msk [vmem:[#allocation2 + $0x20] sm:$0xff] %vm48_vm1, %v591_v63 }
0x30a8   :  { %1353 = vst.msk [vmem:[#allocation2 + $0x20] sm:$0xff] %vm1040_vm3, %v6849_v37 }
0x30af   :  { %v6292_v10 = vpop.eup %6291  ;;  %v7122_v55 = vld [vmem:[#allocation2 + $0x20] sm:$0xff] }
0x30b0   :  { %2208 = vrot.lane.b32.xlu0 %v6292_v10, %s6403_s17 }
0x3122   :  { %v2209_v2 = vpop.permute.xlu0 %2208 }
0x3123   :  { %v7118_v35 = vmul.f32 %v6290_v19, %v2209_v2 }
0x3125   :  { %2219 = vrot.lane.b32.xlu0 %v7118_v35, %s6405_s16 }
0x3197   :  { %v2220_v13 = vpop.permute.xlu0 %2219 }
0x3198   :  { %v2222_v8 = vsel %vm56_vm2, %v7122_v55, %v2220_v13 }
0x3199   :  { %5108 = vmatmul.mubr.msk.f32.vlgmr.msra.gmra.mrb[20].mxu0 %vm1791_vm4, %v2222_v8 }
0x319a   :  { %5861 = vmatpush3.bf16.msra.mxu0 %v6929_v32  ;;  %5161 = vmatprep.mubr.msk.f32.mxu0 %vm6401_vm0, %v6402_v4 }
0x319b   :  { %5862 = vmatprep.subr.bf16.mxu0 %v6400_v0 }
0x319e   :  { %5864 = vmatpush3.bf16.msra.mxu0 %v6935_v27 }
0x319f   :  { %5865 = vmatprep.subr.bf16.mxu0 %v6400_v0 }
0x31a2   :  { %5867 = vmatpush3.bf16.msra.mxu0 %v6947_v30 }
0x31a3   :  { %5868 = vmatprep.subr.bf16.mxu0 %v6400_v0 }
0x31a6   :  { %5870 = vmatpush3.bf16.msra.mxu0 %v6960_v6 }
0x31a7   :  { %5871 = vmatprep.subr.bf16.mxu0 %v6400_v0 }
0x31aa   :  { %5873 = vmatpush3.bf16.msra.mxu0 %v6975_v20 }
0x31ab   :  { %5874 = vmatprep.subr.bf16.mxu0 %v6400_v0 }
0x31ae   :  { %5876 = vmatpush3.bf16.msra.mxu0 %v6984_v23 }
0x31af   :  { %5895 = vmatprep.subr.bf16.mxu0 %v6400_v0 }
0x326c   :  { %v2292_v37 = vpop.f32.mrb[20].mxu0 }
0x326d   :  { %v2293_v15 = vadd.f32 %v7014_v31, %v2292_v37  ;;  %v5109_v21 = vpop.f32.mrb[21].mxu0 }
0x326e   :  { %v2651_v21 = vld [vmem:[%s7694_s7 + $0x8] sm:$0xff] }
0x326f   :  { %6293 = vtanh.f32 %v2293_v15  ;;  %v4207_v26 = vmul.f32 -1.442695, %v2293_v15 }
0x3271   :  { %6295 = vpow2.f32 %v4207_v26 }
0x3279   :  { %v6294_v25 = vpop.eup %6293 }
0x327a   :  { %2305 = vrot.lane.b32.xlu1 %v6294_v25, %s6403_s17 }
0x327b   :  { %v6296_v9 = vpop.eup %6295 }
0x327c   :  { %v2299_v28 = vadd.f32 1.0, %v6296_v9 }
0x327e   :  { %6297 = vrcp.f32 %v2299_v28 }
0x3288   :  { %v6298_v29 = vpop.eup %6297 }
0x3289   :  { %v2303_v38 = vmul.f32 %v6298_v29, %v2205_v7 }
0x32ec   :  { %v2306_v33 = vpop.permute.xlu1 %2305 }
0x32ed   :  { %v2308_v36 = vmul.f32 %v6298_v29, %v2306_v33  ;;  %v2654_v33 = vld [vmem:[%s7694_s7 + $0x20] sm:$0xff] }
0x32ef   :  { %2310 = vrot.lane.b32.xlu0 %v2308_v36, %s6404_s18  ;;  %v2655_v36 = vld [vmem:[%s7694_s7 + $0x28] sm:$0xff] }
0x32f3   :  { %699 = vrot.lane.b32.xlu0 %v6677_v14, %s6404_s18 }
0x3361   :  { %v2311_v12 = vpop.permute.xlu0 %2310 }
0x3362   :  { %v2313_v39 = vadd.f32 %v2311_v12, %v2303_v38  ;;  %v7233_v38 = vpack.c.bf16 %v2655_v36, %v2654_v33  ;;  %v2656_v12 = vld [vmem:[%s7694_s7 + $0x30] sm:$0xff] }
0x3364   :  { %6299 = vtanh.f32 %v2313_v39 }
0x3365   :  { %v700_v40 = vpop.permute.xlu0 %699  ;;  %6301 = vtanh.f32 %v889_v45 }
0x3366   :  { %703 = vst.msk [vmem:[#allocation2 + $0x28] sm:$0xff] %vm48_vm1, %v700_v40 }
0x3367   :  { %1249 = vst.msk [vmem:[#allocation2 + $0x28] sm:$0xff] %vm1040_vm3, %v6828_v1  ;;  %v4172_v1 = vmul.f32 -1.442695, %v889_v45 }
0x3369   :  { %6303 = vpow2.f32 %v4172_v1 }
0x336e   :  { %v6300_v42 = vpop.eup %6299  ;;  %v7159_v50 = vld [vmem:[#allocation2 + $0x28] sm:$0xff] }
0x336f   :  { %2316 = vrot.lane.b32.xlu1 %v6300_v42, %s6403_s17  ;;  %v6302_v56 = vpop.eup %6301  ;;  %v2658_v42 = vld [vmem:[%s7694_s7 + $0x40] sm:$0xff] }
0x3370   :  { %v7253_v45 = vpack.c.bf16 %v2659_v44, %v2658_v42 }
0x3373   :  { %v6304_v47 = vpop.eup %6303 }
0x3374   :  { %v895_v48 = vadd.f32 1.0, %v6304_v47 }
0x3376   :  { %6305 = vrcp.f32 %v895_v48 }
0x3380   :  { %v6306_v58 = vpop.eup %6305 }
0x33e1   :  { %v2317_v14 = vpop.permute.xlu1 %2316 }
0x33e2   :  { %v7154_v16 = vmul.f32 %v6298_v29, %v2317_v14  ;;  %v2660_v14 = vld [vmem:[%s7694_s7 + $0x50] sm:$0xff] }
0x33e4   :  { %2327 = vrot.lane.b32.xlu1 %v7154_v16, %s6405_s16 }
0x33e8   :  { %901 = vrot.lane.b32.xlu1 %v6302_v56, %s6403_s17  ;;  %v2661_v56 = vld [vmem:[%s7694_s7 + $0x58] sm:$0xff] }
0x33e9   :  { %v7263_v1 = vpack.c.bf16 %v2661_v56, %v2660_v14 }
0x3456   :  { %v2328_v53 = vpop.permute.xlu1 %2327 }
0x3457   :  { %v2330_v18 = vsel %vm56_vm2, %v7159_v50, %v2328_v53 }
0x3458   :  { %5135 = vmatmul.mubr.msk.f32.vlgmr.msra.gmra.mrb[20].mxu1 %vm1791_vm4, %v2330_v18 }
0x3459   :  { %5879 = vmatpush3.bf16.msra.mxu1 %v6929_v32  ;;  %5188 = vmatprep.mubr.msk.f32.mxu1 %vm6401_vm0, %v6402_v4  ;;  %v899_v32 = vmul.f32 %v6306_v58, %v6761_v62 }
0x345a   :  { %v902_v54 = vpop.permute.xlu1 %901  ;;  %5880 = vmatprep.subr.bf16.mxu1 %v6400_v0 }
0x345b   :  { %v904_v51 = vmul.f32 %v6306_v58, %v902_v54 }
0x345d   :  { %906 = vrot.lane.b32.xlu1 %v904_v51, %s6404_s18  ;;  %5882 = vmatpush3.bf16.msra.mxu1 %v6935_v27  ;;  %v7292_v51 = vld [vmem:[%s7695_s8] ss:$0 sm:$0xff] }
0x345e   :  { %5883 = vmatprep.subr.bf16.mxu1 %v6400_v0 }
0x3461   :  { %5885 = vmatpush3.bf16.msra.mxu1 %v6947_v30 }
0x3462   :  { %5886 = vmatprep.subr.bf16.mxu1 %v6400_v0 }
0x3465   :  { %5888 = vmatpush3.bf16.msra.mxu1 %v6960_v6 }
0x3466   :  { %5889 = vmatprep.subr.bf16.mxu1 %v6400_v0 }
0x3469   :  { %5891 = vmatpush3.bf16.msra.mxu1 %v6975_v20 }
0x346a   :  { %5892 = vmatprep.subr.bf16.mxu1 %v6400_v0 }
0x346d   :  { %5894 = vmatpush3.bf16.msra.mxu1 %v6984_v23 }
0x346e   :  { %5913 = vmatprep.subr.bf16.mxu1 %v6400_v0 }
0x34cf   :  { %v907_v27 = vpop.permute.xlu1 %906 }
0x34d0   :  { %v909_v59 = vadd.f32 %v907_v27, %v899_v32 }
0x34d2   :  { %6307 = vtanh.f32 %v909_v59 }
0x34dc   :  { %v6308_v30 = vpop.eup %6307 }
0x34dd   :  { %912 = vrot.lane.b32.xlu1 %v6308_v30, %s6403_s17 }
0x352b   :  { %v2400_v52 = vpop.f32.mrb[20].mxu1 }
0x352c   :  { %v2401_v6 = vadd.f32 %v7014_v31, %v2400_v52  ;;  %v5136_v43 = vpop.f32.mrb[21].mxu1 }
0x352e   :  { %6309 = vtanh.f32 %v2401_v6  ;;  %v4209_v41 = vmul.f32 -1.442695, %v2401_v6 }
0x3530   :  { %6311 = vpow2.f32 %v4209_v41 }
0x3538   :  { %v6310_v20 = vpop.eup %6309 }
0x3539   :  { %2413 = vrot.lane.b32.xlu0 %v6310_v20, %s6403_s17 }
0x353a   :  { %v6312_v23 = vpop.eup %6311 }
0x353b   :  { %v2407_v19 = vadd.f32 1.0, %v6312_v23 }
0x353d   :  { %6313 = vrcp.f32 %v2407_v19 }
0x3547   :  { %v6314_v62 = vpop.eup %6313 }
0x3548   :  { %v2411_v61 = vmul.f32 %v6314_v62, %v2313_v39  ;;  %v2657_v39 = vld [vmem:[%s7694_s7 + $0x38] sm:$0xff] }
0x3549   :  { %v7243_v40 = vpack.c.bf16 %v2657_v39, %v2656_v12 }
0x354f   :  { %v913_v10 = vpop.permute.xlu1 %912 }
0x3550   :  { %v915_v2 = vmul.f32 %v6306_v58, %v913_v10 }
0x35ab   :  { %v2414_v5 = vpop.permute.xlu0 %2413 }
0x35ac   :  { %v2416_v60 = vmul.f32 %v6314_v62, %v2414_v5 }
0x35ae   :  { %2418 = vrot.lane.b32.xlu0 %v2416_v60, %s6404_s18 }
0x3620   :  { %v2419_v24 = vpop.permute.xlu0 %2418 }
0x3621   :  { %v7184_v7 = vadd.f32 %v2419_v24, %v2411_v61 }
0x3623   :  { %6315 = vtanh.f32 %v7184_v7 }
0x362d   :  { %v6316_v63 = vpop.eup %6315 }
0x362e   :  { %2424 = vrot.lane.b32.xlu0 %v6316_v63, %s6403_s17 }
0x3632   :  { %808 = vrot.lane.b32.xlu0 %v6766_v3, %s6404_s18  ;;  %v2650_v3 = vld [vmem:[%s7694_s7] sm:$0xff] }
0x3633   :  { %v7207_v25 = vpack.c.bf16 %v2651_v21, %v2650_v3 }
0x3636   :  { %917 = vrot.lane.b32.xlu0 %v915_v2, %s6404_s18 }
0x36a0   :  { %v2425_v13 = vpop.permute.xlu0 %2424 }
0x36a1   :  { %v7191_v8 = vmul.f32 %v6314_v62, %v2425_v13 }
0x36a3   :  { %2435 = vrot.lane.b32.xlu1 %v7191_v8, %s6405_s16 }
0x36a4   :  { %v809_v37 = vpop.permute.xlu0 %808 }
0x36a5   :  { %812 = vst.msk [vmem:[#allocation2 + $0x30] sm:$0xff] %vm48_vm1, %v809_v37 }
0x36a6   :  { %1145 = vst.msk [vmem:[#allocation2 + $0x30] sm:$0xff] %vm1040_vm3, %v6807_v46  ;;  %v2652_v46 = vld [vmem:[%s7694_s7 + $0x10] sm:$0xff] }
0x36a8   :  { %v918_v15 = vpop.permute.xlu0 %917 }
0x36a9   :  { %921 = vst.msk [vmem:[#allocation2 + $0x38] sm:$0xff] %vm48_vm1, %v918_v15 }
0x36aa   :  { %1041 = vst.msk [vmem:[#allocation2 + $0x38] sm:$0xff] %vm1040_vm3, %v6783_v17  ;;  %v2653_v17 = vld [vmem:[%s7694_s7 + $0x18] sm:$0xff] }
0x36ab   :  { %v7221_v29 = vpack.c.bf16 %v2653_v17, %v2652_v46 }
0x36ad   :  { %v7209_v26 = vld [vmem:[#allocation2 + $0x30] sm:$0xff] }
0x36b1   :  { %v7266_v47 = vld [vmem:[#allocation2 + $0x38] sm:$0xff] }
0x36b2   :  { %v2664_v48 = vsel %vm56_vm2, %v7266_v47, 0.0 }
0x3715   :  { %v2436_v9 = vpop.permute.xlu1 %2435 }
0x3716   :  { %v2438_v28 = vsel %vm56_vm2, %v7209_v26, %v2436_v9 }
0x3717   :  { %5162 = vmatmul.mubr.msk.f32.vlgmr.msra.gmra.mrb[22].mxu0 %vm1791_vm4, %v2438_v28 }
0x3718   :  { %5897 = vmatpush3.bf16.msra.mxu0 %v7207_v25  ;;  %5215 = vmatprep.mubr.msk.f32.mxu0 %vm6401_vm0, %v6402_v4 }
0x3719   :  { %5898 = vmatprep.subr.bf16.mxu0 %v6400_v0 }
0x371c   :  { %5900 = vmatpush3.bf16.msra.mxu0 %v7221_v29 }
0x371d   :  { %5901 = vmatprep.subr.bf16.mxu0 %v6400_v0 }
0x3720   :  { %5903 = vmatpush3.bf16.msra.mxu0 %v7233_v38 }
0x3721   :  { %5904 = vmatprep.subr.bf16.mxu0 %v6400_v0 }
0x3724   :  { %5906 = vmatpush3.bf16.msra.mxu0 %v7243_v40 }
0x3725   :  { %5907 = vmatprep.subr.bf16.mxu0 %v6400_v0 }
0x3728   :  { %5909 = vmatpush3.bf16.msra.mxu0 %v7253_v45 }
0x3729   :  { %5910 = vmatprep.subr.bf16.mxu0 %v6400_v0 }
0x372c   :  { %5912 = vmatpush3.bf16.msra.mxu0 %v7263_v1 }
0x372d   :  { %5931 = vmatprep.subr.bf16.mxu0 %v6400_v0 }
0x372f   :  { %5216 = vmatmul.mubr.msk.f32.vlgmr.msra.gmra.mrb[24].mxu0 %vm1791_vm4, %v2664_v48 }
0x3730   :  { %5933 = vmatpush3.bf16.msra.mxu0 %v7207_v25  ;;  %5269 = vmatprep.mubr.msk.f32.mxu0 %vm6401_vm0, %v6402_v4 }
0x3731   :  { %5934 = vmatprep.subr.bf16.mxu0 %v6400_v0 }
0x3734   :  { %5936 = vmatpush3.bf16.msra.mxu0 %v7221_v29 }
0x3735   :  { %5937 = vmatprep.subr.bf16.mxu0 %v6400_v0 }
0x3738   :  { %5939 = vmatpush3.bf16.msra.mxu0 %v7233_v38 }
0x3739   :  { %5940 = vmatprep.subr.bf16.mxu0 %v6400_v0 }
0x373c   :  { %5942 = vmatpush3.bf16.msra.mxu0 %v7243_v40 }
0x373d   :  { %5943 = vmatprep.subr.bf16.mxu0 %v6400_v0 }
0x3740   :  { %5945 = vmatpush3.bf16.msra.mxu0 %v7253_v45 }
0x3741   :  { %5946 = vmatprep.subr.bf16.mxu0 %v6400_v0 }
0x3744   :  { %5948 = vmatpush3.bf16.msra.mxu0 %v7263_v1 }
0x3745   :  { %5967 = vmatprep.subr.bf16.mxu0 %v6400_v0 }
0x37ea   :  { %v2508_v53 = vpop.f32.mrb[22].mxu0 }
0x37eb   :  { %v2509_v18 = vadd.f32 %v7014_v31, %v2508_v53  ;;  %v5163_v58 = vpop.f32.mrb[23].mxu0 }
0x37ed   :  { %6317 = vtanh.f32 %v2509_v18  ;;  %v4211_v52 = vmul.f32 -1.442695, %v2509_v18 }
0x37f7   :  { %v6318_v54 = vpop.eup %6317 }
0x37f8   :  { %2521 = vrot.lane.b32.xlu1 %v6318_v54, %s6403_s17 }
0x3802   :  { %v2740_v32 = vpop.f32.mrb[24].mxu0 }
0x3803   :  { %v2741_v27 = vadd.f32 %v7292_v51, %v2740_v32  ;;  %v5217_v59 = vpop.f32.mrb[25].mxu0 }
0x3805   :  { %6319 = vtanh.f32 %v2741_v27  ;;  %v4216_v43 = vmul.f32 -1.442695, %v2741_v27 }
0x3806   :  { %6321 = vpow2.f32 %v4211_v52 }
0x380f   :  { %v6320_v30 = vpop.eup %6319 }
0x3810   :  { %2753 = vrot.lane.b32.xlu0 %v6320_v30, %s6403_s17  ;;  %v6322_v31 = vpop.eup %6321 }
0x3811   :  { %v2515_v6 = vadd.f32 1.0, %v6322_v31 }
0x3813   :  { %6323 = vrcp.f32 %v2515_v6 }
0x3814   :  { %6325 = vpow2.f32 %v4216_v43 }
0x381d   :  { %v6324_v20 = vpop.eup %6323 }
0x381e   :  { %v6326_v19 = vpop.eup %6325  ;;  %v2519_v24 = vmul.f32 %v6324_v20, %v7184_v7 }
0x381f   :  { %v2747_v62 = vadd.f32 1.0, %v6326_v19 }
0x3821   :  { %6327 = vrcp.f32 %v2747_v62 }
0x382b   :  { %v6328_v5 = vpop.eup %6327 }
0x382c   :  { %v2751_v13 = vmul.f32 0.0, %v6328_v5 }
0x386a   :  { %v2522_v41 = vpop.permute.xlu1 %2521 }
0x386b   :  { %v2524_v23 = vmul.f32 %v6324_v20, %v2522_v41 }
0x386d   :  { %2526 = vrot.lane.b32.xlu1 %v2524_v23, %s6404_s18 }
0x3882   :  { %v2754_v60 = vpop.permute.xlu0 %2753 }
0x3883   :  { %v2756_v61 = vmul.f32 %v6328_v5, %v2754_v60 }
0x3885   :  { %2758 = vrot.lane.b32.xlu0 %v2756_v61, %s6404_s18 }
0x38df   :  { %v2527_v63 = vpop.permute.xlu1 %2526 }
0x38e0   :  { %v7299_v10 = vadd.f32 %v2527_v63, %v2519_v24 }
0x38e2   :  { %6329 = vtanh.f32 %v7299_v10 }
0x38ec   :  { %v6330_v2 = vpop.eup %6329 }
0x38ed   :  { %2532 = vrot.lane.b32.xlu1 %v6330_v2, %s6403_s17 }
0x38f7   :  { %v2759_v37 = vpop.permute.xlu0 %2758 }
0x38f8   :  { %v2761_v15 = vadd.f32 %v2759_v37, %v2751_v13 }
0x38fa   :  { %6331 = vtanh.f32 %v2761_v15 }
0x3904   :  { %v6332_v3 = vpop.eup %6331 }
0x3905   :  { %2764 = vrot.lane.b32.xlu0 %v6332_v3, %s6403_s17 }
0x395f   :  { %v2533_v21 = vpop.permute.xlu1 %2532 }
0x3960   :  { %v7304_v9 = vmul.f32 %v6324_v20, %v2533_v21 }
0x3962   :  { %2543 = vrot.lane.b32.xlu1 %v7304_v9, %s6405_s16 }
0x3977   :  { %v2765_v7 = vpop.permute.xlu0 %2764 }
0x3978   :  { %v7308_v46 = vmul.f32 %v6328_v5, %v2765_v7 }
0x397a   :  { %2774 = vrot.lane.b32.xlu0 %v7308_v46, %s6405_s16 }
0x39d4   :  { %v2544_v17 = vpop.permute.xlu1 %2543 }
0x39d5   :  { %v2546_v28 = vsel %vm56_vm2, %v7266_v47, %v2544_v17 }
0x39d6   :  { %5189 = vmatmul.mubr.msk.f32.vlgmr.msra.gmra.mrb[22].mxu1 %vm1791_vm4, %v2546_v28 }
0x39d7   :  { %5915 = vmatpush3.bf16.msra.mxu1 %v7207_v25  ;;  %5242 = vmatprep.mubr.msk.f32.mxu1 %vm6401_vm0, %v6402_v4 }
0x39d8   :  { %5916 = vmatprep.subr.bf16.mxu1 %v6400_v0 }
0x39db   :  { %5918 = vmatpush3.bf16.msra.mxu1 %v7221_v29 }
0x39dc   :  { %5919 = vmatprep.subr.bf16.mxu1 %v6400_v0 }
0x39df   :  { %5921 = vmatpush3.bf16.msra.mxu1 %v7233_v38 }
0x39e0   :  { %5922 = vmatprep.subr.bf16.mxu1 %v6400_v0 }
0x39e3   :  { %5924 = vmatpush3.bf16.msra.mxu1 %v7243_v40 }
0x39e4   :  { %5925 = vmatprep.subr.bf16.mxu1 %v6400_v0 }
0x39e7   :  { %5927 = vmatpush3.bf16.msra.mxu1 %v7253_v45 }
0x39e8   :  { %5928 = vmatprep.subr.bf16.mxu1 %v6400_v0 }
0x39eb   :  { %5930 = vmatpush3.bf16.msra.mxu1 %v7263_v1 }
0x39ec   :  { %v2775_v33 = vpop.permute.xlu0 %2774  ;;  %5949 = vmatprep.subr.bf16.mxu1 %v6400_v0 }
0x39ed   :  { %v2777_v36 = vsel %vm56_vm2, %v7209_v26, %v2775_v33 }
0x39ee   :  { %5243 = vmatmul.mubr.msk.f32.vlgmr.msra.gmra.mrb[24].mxu1 %vm1791_vm4, %v2777_v36 }
0x39ef   :  { %5951 = vmatpush3.bf16.msra.mxu1 %v7207_v25  ;;  %5296 = vmatprep.mubr.msk.f32.mxu1 %vm6401_vm0, %v6402_v4 }
0x39f0   :  { %5952 = vmatprep.subr.bf16.mxu1 %v6400_v0 }
0x39f3   :  { %5954 = vmatpush3.bf16.msra.mxu1 %v7221_v29 }
0x39f4   :  { %5955 = vmatprep.subr.bf16.mxu1 %v6400_v0 }
0x39f7   :  { %5957 = vmatpush3.bf16.msra.mxu1 %v7233_v38 }
0x39f8   :  { %5958 = vmatprep.subr.bf16.mxu1 %v6400_v0 }
0x39fb   :  { %5960 = vmatpush3.bf16.msra.mxu1 %v7243_v40 }
0x39fc   :  { %5961 = vmatprep.subr.bf16.mxu1 %v6400_v0 }
0x39ff   :  { %5963 = vmatpush3.bf16.msra.mxu1 %v7253_v45 }
0x3a00   :  { %5964 = vmatprep.subr.bf16.mxu1 %v6400_v0 }
0x3a03   :  { %5966 = vmatpush3.bf16.msra.mxu1 %v7263_v1 }
0x3a04   :  { %5985 = vmatprep.subr.bf16.mxu1 %v6400_v0 }
0x3aa9   :  { %v7346_v26 = vpop.f32.mrb[22].mxu1 }
0x3aaa   :  { %v5190_v12 = vpop.f32.mrb[23].mxu1 }
0x3ac1   :  { %v2847_v39 = vpop.f32.mrb[24].mxu1 }
0x3ac2   :  { %v2848_v42 = vadd.f32 %v7292_v51, %v2847_v39  ;;  %v5244_v44 = vpop.f32.mrb[25].mxu1 }
0x3ac4   :  { %6333 = vtanh.f32 %v2848_v42  ;;  %v4218_v56 = vmul.f32 -1.442695, %v2848_v42 }
0x3ac6   :  { %6335 = vpow2.f32 %v4218_v56 }
0x3ace   :  { %v6334_v14 = vpop.eup %6333 }
0x3acf   :  { %2860 = vrot.lane.b32.xlu1 %v6334_v14, %s6403_s17 }
0x3ad0   :  { %v6336_v47 = vpop.eup %6335 }
0x3ad1   :  { %v2854_v48 = vadd.f32 1.0, %v6336_v47 }
0x3ad3   :  { %6337 = vrcp.f32 %v2854_v48 }
0x3add   :  { %v6338_v53 = vpop.eup %6337 }
0x3ade   :  { %v2858_v54 = vmul.f32 %v6338_v53, %v2761_v15 }
0x3b41   :  { %v2861_v18 = vpop.permute.xlu1 %2860 }
0x3b42   :  { %v2863_v58 = vmul.f32 %v6338_v53, %v2861_v18 }
0x3b44   :  { %2865 = vrot.lane.b32.xlu0 %v2863_v58, %s6404_s18 }
0x3bb6   :  { %v2866_v32 = vpop.permute.xlu0 %2865 }
0x3bb7   :  { %v2868_v27 = vadd.f32 %v2866_v32, %v2858_v54 }
0x3bb9   :  { %6339 = vtanh.f32 %v2868_v27 }
0x3bc3   :  { %v6340_v59 = vpop.eup %6339 }
0x3bc4   :  { %2871 = vrot.lane.b32.xlu1 %v6340_v59, %s6403_s17 }
0x3c36   :  { %v2872_v30 = vpop.permute.xlu1 %2871 }
0x3c37   :  { %v7352_v52 = vmul.f32 %v6338_v53, %v2872_v30 }
0x3c39   :  { %2881 = vrot.lane.b32.xlu0 %v7352_v52, %s6405_s16 }
0x3cab   :  { %v2882_v31 = vpop.permute.xlu0 %2881 }
0x3cac   :  { %v2884_v6 = vsel %vm56_vm2, %v7159_v50, %v2882_v31 }
0x3cad   :  { %5270 = vmatmul.mubr.msk.f32.vlgmr.msra.gmra.mrb[26].mxu0 %vm1791_vm4, %v2884_v6 }
0x3cae   :  { %5969 = vmatpush3.bf16.msra.mxu0 %v7207_v25  ;;  %5323 = vmatprep.mubr.msk.f32.mxu0 %vm6401_vm0, %v6402_v4 }
0x3caf   :  { %5970 = vmatprep.subr.bf16.mxu0 %v6400_v0 }
0x3cb2   :  { %5972 = vmatpush3.bf16.msra.mxu0 %v7221_v29 }
0x3cb3   :  { %5973 = vmatprep.subr.bf16.mxu0 %v6400_v0 }
0x3cb6   :  { %5975 = vmatpush3.bf16.msra.mxu0 %v7233_v38 }
0x3cb7   :  { %5976 = vmatprep.subr.bf16.mxu0 %v6400_v0 }
0x3cba   :  { %5978 = vmatpush3.bf16.msra.mxu0 %v7243_v40 }
0x3cbb   :  { %5979 = vmatprep.subr.bf16.mxu0 %v6400_v0 }
0x3cbe   :  { %5981 = vmatpush3.bf16.msra.mxu0 %v7253_v45 }
0x3cbf   :  { %5982 = vmatprep.subr.bf16.mxu0 %v6400_v0 }
0x3cc2   :  { %5984 = vmatpush3.bf16.msra.mxu0 %v7263_v1 }
0x3cc3   :  { %6003 = vmatprep.subr.bf16.mxu0 %v6400_v0 }
0x3d80   :  { %v2954_v50 = vpop.f32.mrb[26].mxu0 }
0x3d81   :  { %v2955_v43 = vadd.f32 %v7292_v51, %v2954_v50  ;;  %v5271_v20 = vpop.f32.mrb[27].mxu0 }
0x3d83   :  { %6341 = vtanh.f32 %v2955_v43  ;;  %v4220_v23 = vmul.f32 -1.442695, %v2955_v43 }
0x3d85   :  { %6343 = vpow2.f32 %v4220_v23 }
0x3d8d   :  { %v6342_v41 = vpop.eup %6341 }
0x3d8e   :  { %2967 = vrot.lane.b32.xlu1 %v6342_v41, %s6403_s17 }
0x3d8f   :  { %v6344_v19 = vpop.eup %6343 }
0x3d90   :  { %v2961_v62 = vadd.f32 1.0, %v6344_v19 }
0x3d92   :  { %6345 = vrcp.f32 %v2961_v62 }
0x3d9c   :  { %v6346_v5 = vpop.eup %6345 }
0x3d9d   :  { %v2965_v24 = vmul.f32 %v6346_v5, %v2868_v27 }
0x3e00   :  { %v2968_v60 = vpop.permute.xlu1 %2967 }
0x3e01   :  { %v2970_v61 = vmul.f32 %v6346_v5, %v2968_v60 }
0x3e03   :  { %2972 = vrot.lane.b32.xlu0 %v2970_v61, %s6404_s18 }
0x3e75   :  { %v2973_v63 = vpop.permute.xlu0 %2972 }
0x3e76   :  { %v2975_v2 = vadd.f32 %v2973_v63, %v2965_v24 }
0x3e78   :  { %6347 = vtanh.f32 %v2975_v2 }
0x3e82   :  { %v6348_v13 = vpop.eup %6347 }
0x3e83   :  { %2978 = vrot.lane.b32.xlu1 %v6348_v13, %s6403_s17 }
0x3ef5   :  { %v2979_v37 = vpop.permute.xlu1 %2978 }
0x3ef6   :  { %v7377_v15 = vmul.f32 %v6346_v5, %v2979_v37 }
0x3ef8   :  { %2988 = vrot.lane.b32.xlu0 %v7377_v15, %s6405_s16 }
0x3f6a   :  { %v2989_v3 = vpop.permute.xlu0 %2988 }
0x3f6b   :  { %v2991_v21 = vsel %vm56_vm2, %v7122_v55, %v2989_v3 }
0x3f6c   :  { %5297 = vmatmul.mubr.msk.f32.vlgmr.msra.gmra.mrb[26].mxu1 %vm1791_vm4, %v2991_v21 }
0x3f6d   :  { %5987 = vmatpush3.bf16.msra.mxu1 %v7207_v25  ;;  %5350 = vmatprep.mubr.msk.f32.mxu1 %vm6401_vm0, %v6402_v4 }
0x3f6e   :  { %5988 = vmatprep.subr.bf16.mxu1 %v6400_v0 }
0x3f71   :  { %5990 = vmatpush3.bf16.msra.mxu1 %v7221_v29 }
0x3f72   :  { %5991 = vmatprep.subr.bf16.mxu1 %v6400_v0 }
0x3f75   :  { %5993 = vmatpush3.bf16.msra.mxu1 %v7233_v38 }
0x3f76   :  { %5994 = vmatprep.subr.bf16.mxu1 %v6400_v0 }
0x3f79   :  { %5996 = vmatpush3.bf16.msra.mxu1 %v7243_v40 }
0x3f7a   :  { %5997 = vmatprep.subr.bf16.mxu1 %v6400_v0 }
0x3f7d   :  { %5999 = vmatpush3.bf16.msra.mxu1 %v7253_v45 }
0x3f7e   :  { %6000 = vmatprep.subr.bf16.mxu1 %v6400_v0 }
0x3f81   :  { %6002 = vmatpush3.bf16.msra.mxu1 %v7263_v1 }
0x3f82   :  { %6021 = vmatprep.subr.bf16.mxu1 %v6400_v0 }
0x403f   :  { %v3061_v55 = vpop.f32.mrb[26].mxu1 }
0x4040   :  { %v3062_v7 = vadd.f32 %v7292_v51, %v3061_v55  ;;  %v5298_v17 = vpop.f32.mrb[27].mxu1 }
0x4042   :  { %6349 = vtanh.f32 %v3062_v7  ;;  %v4222_v33 = vmul.f32 -1.442695, %v3062_v7 }
0x4044   :  { %6351 = vpow2.f32 %v4222_v33 }
0x404c   :  { %v6350_v28 = vpop.eup %6349 }
0x404d   :  { %3074 = vrot.lane.b32.xlu1 %v6350_v28, %s6403_s17  ;;  %v3308_v28 = vld [vmem:[#allocation2 + $0x8] sm:$0xff] }
0x404e   :  { %v6352_v36 = vpop.eup %6351 }
0x404f   :  { %v3068_v12 = vadd.f32 1.0, %v6352_v36 }
0x4051   :  { %6353 = vrcp.f32 %v3068_v12 }
0x405b   :  { %v6354_v39 = vpop.eup %6353 }
0x405c   :  { %v3072_v14 = vmul.f32 %v6354_v39, %v2975_v2 }
0x40bf   :  { %v3075_v42 = vpop.permute.xlu1 %3074 }
0x40c0   :  { %v3077_v44 = vmul.f32 %v6354_v39, %v3075_v42 }
0x40c2   :  { %3079 = vrot.lane.b32.xlu0 %v3077_v44, %s6404_s18 }
0x4134   :  { %v3080_v56 = vpop.permute.xlu0 %3079 }
0x4135   :  { %v3082_v47 = vadd.f32 %v3080_v56, %v3072_v14 }
0x4137   :  { %6355 = vtanh.f32 %v3082_v47 }
0x4141   :  { %v6356_v48 = vpop.eup %6355 }
0x4142   :  { %3085 = vrot.lane.b32.xlu1 %v6356_v48, %s6403_s17 }
0x41b4   :  { %v3086_v53 = vpop.permute.xlu1 %3085 }
0x41b5   :  { %v7402_v18 = vmul.f32 %v6354_v39, %v3086_v53 }
0x41b7   :  { %3095 = vrot.lane.b32.xlu0 %v7402_v18, %s6405_s16 }
0x4229   :  { %v3096_v58 = vpop.permute.xlu0 %3095 }
0x422a   :  { %v3098_v54 = vsel %vm56_vm2, %v7090_v34, %v3096_v58 }
0x422b   :  { %5324 = vmatmul.mubr.msk.f32.vlgmr.msra.gmra.mrb[28].mxu0 %vm1791_vm4, %v3098_v54 }
0x422c   :  { %6005 = vmatpush3.bf16.msra.mxu0 %v7207_v25  ;;  %5377 = vmatprep.mubr.msk.f32.mxu0 %vm6401_vm0, %v6402_v4 }
0x422d   :  { %6006 = vmatprep.subr.bf16.mxu0 %v6400_v0 }
0x4230   :  { %6008 = vmatpush3.bf16.msra.mxu0 %v7221_v29 }
0x4231   :  { %6009 = vmatprep.subr.bf16.mxu0 %v6400_v0 }
0x4234   :  { %6011 = vmatpush3.bf16.msra.mxu0 %v7233_v38 }
0x4235   :  { %6012 = vmatprep.subr.bf16.mxu0 %v6400_v0 }
0x4238   :  { %6014 = vmatpush3.bf16.msra.mxu0 %v7243_v40 }
0x4239   :  { %6015 = vmatprep.subr.bf16.mxu0 %v6400_v0 }
0x423c   :  { %6017 = vmatpush3.bf16.msra.mxu0 %v7253_v45 }
0x423d   :  { %6018 = vmatprep.subr.bf16.mxu0 %v6400_v0 }
0x4240   :  { %6020 = vmatpush3.bf16.msra.mxu0 %v7263_v1 }
0x4241   :  { %6039 = vmatprep.subr.bf16.mxu0 %v6400_v0 }
0x42fe   :  { %v3168_v34 = vpop.f32.mrb[28].mxu0 }
0x42ff   :  { %v3169_v32 = vadd.f32 %v7292_v51, %v3168_v34  ;;  %v5325_v27 = vpop.f32.mrb[29].mxu0 }
0x4301   :  { %6357 = vtanh.f32 %v3169_v32  ;;  %v4224_v30 = vmul.f32 -1.442695, %v3169_v32 }
0x4303   :  { %6359 = vpow2.f32 %v4224_v30 }
0x430b   :  { %v6358_v59 = vpop.eup %6357 }
0x430c   :  { %3181 = vrot.lane.b32.xlu1 %v6358_v59, %s6403_s17  ;;  %v6399_v59 = vld [vmem:[%s7693_s6] ss:$0 sm:$0xff] }
0x430d   :  { %v6360_v31 = vpop.eup %6359  ;;  %v2617_v30 = vadd.f32 %v6399_v59, %v7346_v26 }
0x430e   :  { %v3175_v6 = vadd.f32 1.0, %v6360_v31 }
0x4310   :  { %6361 = vrcp.f32 %v3175_v6 }
0x431a   :  { %v6362_v50 = vpop.eup %6361 }
0x431b   :  { %v3179_v41 = vmul.f32 %v6362_v50, %v3082_v47 }
0x437e   :  { %v3182_v43 = vpop.permute.xlu1 %3181 }
0x437f   :  { %v3184_v20 = vmul.f32 %v6362_v50, %v3182_v43  ;;  %v4213_v43 = vmul.f32 -1.442695, %v2617_v30 }
0x4381   :  { %3186 = vrot.lane.b32.xlu0 %v3184_v20, %s6404_s18 }
0x43f3   :  { %v3187_v23 = vpop.permute.xlu0 %3186 }
0x43f4   :  { %v3189_v19 = vadd.f32 %v3187_v23, %v3179_v41  ;;  %v3415_v23 = vld [vmem:[#allocation2] sm:$0xff] }
0x43f6   :  { %6363 = vtanh.f32 %v3189_v19 }
0x4400   :  { %v6364_v62 = vpop.eup %6363 }
0x4401   :  { %3192 = vrot.lane.b32.xlu1 %v6364_v62, %s6403_s17 }
0x4473   :  { %v3193_v5 = vpop.permute.xlu1 %3192 }
0x4474   :  { %v7427_v60 = vmul.f32 %v6362_v50, %v3193_v5 }
0x4476   :  { %3202 = vrot.lane.b32.xlu0 %v7427_v60, %s6405_s16 }
0x44e8   :  { %v3203_v61 = vpop.permute.xlu0 %3202 }
0x44e9   :  { %v3205_v24 = vsel %vm56_vm2, %v7058_v11, %v3203_v61 }
0x44ea   :  { %5351 = vmatmul.mubr.msk.f32.vlgmr.msra.gmra.mrb[28].mxu1 %vm1791_vm4, %v3205_v24 }
0x44eb   :  { %6023 = vmatpush3.bf16.msra.mxu1 %v7207_v25  ;;  %5404 = vmatprep.mubr.msk.f32.mxu1 %vm6401_vm0, %v6402_v4 }
0x44ec   :  { %6024 = vmatprep.subr.bf16.mxu1 %v6400_v0 }
0x44ef   :  { %6026 = vmatpush3.bf16.msra.mxu1 %v7221_v29 }
0x44f0   :  { %6027 = vmatprep.subr.bf16.mxu1 %v6400_v0 }
0x44f3   :  { %6029 = vmatpush3.bf16.msra.mxu1 %v7233_v38 }
0x44f4   :  { %6030 = vmatprep.subr.bf16.mxu1 %v6400_v0 }
0x44f7   :  { %6032 = vmatpush3.bf16.msra.mxu1 %v7243_v40 }
0x44f8   :  { %6033 = vmatprep.subr.bf16.mxu1 %v6400_v0 }
0x44fb   :  { %6035 = vmatpush3.bf16.msra.mxu1 %v7253_v45 }
0x44fc   :  { %6036 = vmatprep.subr.bf16.mxu1 %v6400_v0 }
0x44ff   :  { %6038 = vmatpush3.bf16.msra.mxu1 %v7263_v1 }
0x4500   :  { %6051 = vmatprep.subr.bf16.mxu1 %v6400_v0 }
0x45bd   :  { %v3275_v11 = vpop.f32.mrb[28].mxu1 }
0x45be   :  { %v3276_v25 = vadd.f32 %v7292_v51, %v3275_v11  ;;  %v5352_v29 = vpop.f32.mrb[29].mxu1 }
0x45c0   :  { %6365 = vtanh.f32 %v3276_v25  ;;  %v4226_v63 = vmul.f32 -1.442695, %v3276_v25 }
0x45c2   :  { %6367 = vpow2.f32 %v4226_v63 }
0x45ca   :  { %v6366_v38 = vpop.eup %6365 }
0x45cb   :  { %3288 = vrot.lane.b32.xlu1 %v6366_v38, %s6403_s17 }
0x45cc   :  { %v6368_v40 = vpop.eup %6367 }
0x45cd   :  { %v3282_v2 = vadd.f32 1.0, %v6368_v40 }
0x45cf   :  { %6369 = vrcp.f32 %v3282_v2 }
0x45d9   :  { %v6370_v45 = vpop.eup %6369 }
0x45da   :  { %v3286_v1 = vmul.f32 %v6370_v45, %v3189_v19 }
0x463d   :  { %v3289_v13 = vpop.permute.xlu1 %3288 }
0x463e   :  { %v3291_v37 = vmul.f32 %v6370_v45, %v3289_v13 }
0x4640   :  { %3293 = vrot.lane.b32.xlu0 %v3291_v37, %s6404_s18 }
0x46b2   :  { %v3294_v3 = vpop.permute.xlu0 %3293 }
0x46b3   :  { %v3296_v21 = vadd.f32 %v3294_v3, %v3286_v1 }
0x46b5   :  { %6371 = vtanh.f32 %v3296_v21 }
0x46bf   :  { %v6372_v55 = vpop.eup %6371 }
0x46c0   :  { %3299 = vrot.lane.b32.xlu1 %v6372_v55, %s6403_s17  ;;  %v3522_v55 = vld [vmem:[%s7696_s9] sm:$0xff] }
0x4732   :  { %v3300_v7 = vpop.permute.xlu1 %3299 }
0x4733   :  { %v7452_v17 = vmul.f32 %v6370_v45, %v3300_v7  ;;  %v3523_v7 = vld [vmem:[%s7696_s9 + $0x8] sm:$0xff] }
0x4735   :  { %3309 = vrot.lane.b32.xlu0 %v7452_v17, %s6405_s16 }
0x47a7   :  { %v3310_v33 = vpop.permute.xlu0 %3309 }
0x47a8   :  { %v3312_v36 = vsel %vm56_vm2, %v3308_v28, %v3310_v33  ;;  %v7498_v33 = vpack.c.bf16 %v3523_v7, %v3522_v55 }
0x47a9   :  { %5378 = vmatmul.mubr.msk.f32.vlgmr.msra.gmra.mrb[30].mxu0 %vm1791_vm4, %v3312_v36 }
0x47aa   :  { %5423 = vmatprep.mubr.msk.f32.mxu0 %vm6401_vm0, %v6402_v4  ;;  %6041 = vmatpush3.bf16.msra.mxu0 %v7498_v33 }
0x47ab   :  { %6042 = vmatprep.subr.bf16.mxu0 %v6400_v0 }
0x487c   :  { %v3382_v12 = vpop.f32.mrb[30].mxu0 }
0x487d   :  { %v3383_v39 = vadd.f32 %v7292_v51, %v3382_v12  ;;  %v5379_v42 = vpop.f32.mrb[31].mxu0  ;;  %v3524_v12 = vld [vmem:[%s7696_s9 + $0x10] sm:$0xff] }
0x487f   :  { %6373 = vtanh.f32 %v3383_v39  ;;  %v4228_v14 = vmul.f32 -1.442695, %v3383_v39  ;;  %v3525_v39 = vld [vmem:[%s7696_s9 + $0x18] sm:$0xff] }
0x4880   :  { %v7510_v42 = vpack.c.bf16 %v3525_v39, %v3524_v12 }
0x4881   :  { %6375 = vpow2.f32 %v4228_v14  ;;  %v3527_v14 = vld [vmem:[%s7696_s9 + $0x28] sm:$0xff] }
0x4882   :  { %6044 = vmatpush3.bf16.msra.mxu0 %v7510_v42 }
0x4883   :  { %6045 = vmatprep.subr.bf16.mxu0 %v6400_v0 }
0x4889   :  { %v6374_v44 = vpop.eup %6373 }
0x488a   :  { %3395 = vrot.lane.b32.xlu1 %v6374_v44, %s6403_s17  ;;  %v3526_v44 = vld [vmem:[%s7696_s9 + $0x20] sm:$0xff] }
0x488b   :  { %v6376_v56 = vpop.eup %6375 }
0x488c   :  { %v3389_v47 = vadd.f32 1.0, %v6376_v56  ;;  %v7522_v56 = vpack.c.bf16 %v3527_v14, %v3526_v44 }
0x488e   :  { %6377 = vrcp.f32 %v3389_v47  ;;  %6047 = vmatpush3.bf16.msra.mxu0 %v7522_v56  ;;  %v3528_v47 = vld [vmem:[%s7696_s9 + $0x30] sm:$0xff] }
0x488f   :  { %6048 = vmatprep.subr.bf16.mxu0 %v6400_v0 }
0x4898   :  { %v6378_v48 = vpop.eup %6377 }
0x4899   :  { %v3393_v54 = vmul.f32 %v6378_v48, %v3296_v21 }
0x48fc   :  { %v3396_v53 = vpop.permute.xlu1 %3395 }
0x48fd   :  { %v3398_v58 = vmul.f32 %v6378_v48, %v3396_v53 }
0x48ff   :  { %3400 = vrot.lane.b32.xlu0 %v3398_v58, %s6404_s18 }
0x4971   :  { %v3401_v34 = vpop.permute.xlu0 %3400 }
0x4972   :  { %v3403_v32 = vadd.f32 %v3401_v34, %v3393_v54 }
0x4974   :  { %6379 = vtanh.f32 %v3403_v32 }
0x4975   :  { %6381 = vtanh.f32 %v2617_v30 }
0x4976   :  { %6383 = vpow2.f32 %v4213_v43 }
0x497e   :  { %v6380_v27 = vpop.eup %6379 }
0x497f   :  { %3406 = vrot.lane.b32.xlu1 %v6380_v27, %s6403_s17  ;;  %v6382_v50 = vpop.eup %6381 }
0x4980   :  { %v6384_v20 = vpop.eup %6383 }
0x4981   :  { %v2623_v41 = vadd.f32 1.0, %v6384_v20 }
0x4983   :  { %6385 = vrcp.f32 %v2623_v41 }
0x498d   :  { %v7477_v26 = vpop.eup %6385 }
0x498e   :  { %v2627_v24 = vmul.f32 %v7477_v26, %v7299_v10 }
0x49f1   :  { %v3407_v31 = vpop.permute.xlu1 %3406 }
0x49f2   :  { %v7468_v6 = vmul.f32 %v6378_v48, %v3407_v31  ;;  %v3529_v48 = vld [vmem:[%s7696_s9 + $0x38] sm:$0xff] }
0x49f3   :  { %v7534_v53 = vpack.c.bf16 %v3529_v48, %v3528_v47 }
0x49f4   :  { %3416 = vrot.lane.b32.xlu0 %v7468_v6, %s6405_s16 }
0x49f5   :  { %6050 = vmatpush3.bf16.msra.mxu0 %v7534_v53 }
0x49f6   :  { %6063 = vmatprep.subr.bf16.mxu0 %v6400_v0 }
0x49f8   :  { %2629 = vrot.lane.b32.xlu0 %v6382_v50, %s6403_s17 }
0x4a66   :  { %v3417_v19 = vpop.permute.xlu0 %3416 }
0x4a67   :  { %v3419_v62 = vsel %vm56_vm2, %v3415_v23, %v3417_v19 }
0x4a68   :  { %5405 = vmatmul.mubr.msk.f32.vlgmr.msra.gmra.mrb[30].mxu1 %vm1791_vm4, %v3419_v62 }
0x4a69   :  { %5442 = vmatprep.mubr.msk.f32.mxu1 %vm6401_vm0, %v6402_v4  ;;  %6053 = vmatpush3.bf16.msra.mxu1 %v7498_v33 }
0x4a6a   :  { %v2630_v5 = vpop.permute.xlu0 %2629  ;;  %6054 = vmatprep.subr.bf16.mxu1 %v6400_v0 }
0x4a6b   :  { %v2632_v61 = vmul.f32 %v7477_v26, %v2630_v5 }
0x4a6d   :  { %2634 = vrot.lane.b32.xlu0 %v2632_v61, %s6404_s18  ;;  %6056 = vmatpush3.bf16.msra.mxu1 %v7510_v42 }
0x4a6e   :  { %6057 = vmatprep.subr.bf16.mxu1 %v6400_v0 }
0x4a71   :  { %6059 = vmatpush3.bf16.msra.mxu1 %v7522_v56 }
0x4a72   :  { %6060 = vmatprep.subr.bf16.mxu1 %v6400_v0 }
0x4a75   :  { %6062 = vmatpush3.bf16.msra.mxu1 %v7534_v53 }
0x4a76   :  { %6075 = vmatprep.subr.bf16.mxu1 %v6400_v0 }
0x4adf   :  { %v2635_v11 = vpop.permute.xlu0 %2634 }
0x4ae0   :  { %v2637_v25 = vadd.f32 %v2635_v11, %v2627_v24 }
0x4ae2   :  { %6387 = vtanh.f32 %v2637_v25 }
0x4aec   :  { %v6388_v29 = vpop.eup %6387 }
0x4aed   :  { %2640 = vrot.lane.b32.xlu0 %v6388_v29, %s6403_s17 }
0x4af1   :  { %1997 = vrot.lane.b32.xlu0 %v7054_v22, %s6404_s18 }
0x4b3b   :  { %v3489_v38 = vpop.f32.mrb[30].mxu1 }
0x4b3c   :  { %v3490_v63 = vadd.f32 %v7292_v51, %v3489_v38  ;;  %v5406_v40 = vpop.f32.mrb[31].mxu1 }
0x4b3e   :  { %6389 = vtanh.f32 %v3490_v63  ;;  %v4230_v13 = vmul.f32 -1.442695, %v3490_v63 }
0x4b40   :  { %6391 = vpow2.f32 %v4230_v13 }
0x4b48   :  { %v6390_v2 = vpop.eup %6389 }
0x4b49   :  { %3502 = vrot.lane.b32.xlu1 %v6390_v2, %s6403_s17 }
0x4b4a   :  { %v6392_v37 = vpop.eup %6391 }
0x4b4b   :  { %v3496_v1 = vadd.f32 1.0, %v6392_v37 }
0x4b4d   :  { %6393 = vrcp.f32 %v3496_v1 }
0x4b57   :  { %v6394_v3 = vpop.eup %6393 }
0x4b58   :  { %v3500_v51 = vmul.f32 %v6394_v3, %v3403_v32 }
0x4b5f   :  { %v7488_v45 = vpop.permute.xlu0 %2640 }
0x4b63   :  { %v1998_v10 = vpop.permute.xlu0 %1997 }
0x4b64   :  { %2001 = vst.msk [vmem:[#allocation3 + $0x8] sm:$0xff] %vm48_vm1, %v1998_v10 }
0x4bbb   :  { %v3503_v22 = vpop.permute.xlu1 %3502 }
0x4bbc   :  { %v3505_v21 = vmul.f32 %v6394_v3, %v3503_v22 }
0x4bbe   :  { %3507 = vrot.lane.b32.xlu1 %v3505_v21, %s6404_s18 }
0x4c30   :  { %v3508_v28 = vpop.permute.xlu1 %3507 }
0x4c31   :  { %v3510_v36 = vadd.f32 %v3508_v28, %v3500_v51 }
0x4c33   :  { %6395 = vtanh.f32 %v3510_v36 }
0x4c3d   :  { %v6396_v58 = vpop.eup %6395 }
0x4c3e   :  { %3513 = vrot.lane.b32.xlu1 %v6396_v58, %s6403_s17 }
0x4c42   :  { %1890 = vrot.lane.b32.xlu1 %v7025_v57, %s6404_s18 }
0x4c46   :  { %3411 = vrot.lane.b32.xlu1 %v7468_v6, %s6403_s17 }
0x4c4a   :  { %2105 = vrot.lane.b32.xlu1 %v7086_v49, %s6404_s18 }
0x4c4e   :  { %3197 = vrot.lane.b32.xlu1 %v7427_v60, %s6403_s17  ;;  %v2643_v60 = vmul.f32 %v7477_v26, %v7488_v45 }
0x4c52   :  { %2321 = vrot.lane.b32.xlu1 %v7154_v16, %s6404_s18 }
0x4c56   :  { %2983 = vrot.lane.b32.xlu1 %v7377_v15, %s6403_s17 }
0x4c5a   :  { %2537 = vrot.lane.b32.xlu1 %v7304_v9, %s6404_s18 }
0x4c5e   :  { %2769 = vrot.lane.b32.xlu1 %v7308_v46, %s6403_s17 }
0x4cb0   :  { %v3514_v57 = vpop.permute.xlu1 %3513 }
0x4cb1   :  { %v3516_v54 = vmul.f32 %v6394_v3, %v3514_v57 }
0x4cb3   :  { %3518 = vrot.lane.b32.xlu0 %v3516_v54, %s6403_s17 }
0x4cb4   :  { %v1891_v49 = vpop.permute.xlu1 %1890 }
0x4cb5   :  { %1893 = vst.msk [vmem:[#allocation3] sm:$0xff] %vm48_vm1, %v1891_v49 }
0x4cb7   :  { %2213 = vrot.lane.b32.xlu0 %v7118_v35, %s6404_s18 }
0x4cb8   :  { %v3412_v16 = vpop.permute.xlu1 %3411 }
0x4cb9   :  { %3414 = vst.msk [vmem:[#allocation3 + $0x8] sm:$0xff] %vm1040_vm3, %v3412_v16 }
0x4cbb   :  { %3304 = vrot.lane.b32.xlu0 %v7452_v17, %s6403_s17 }
0x4cbc   :  { %v2106_v9 = vpop.permute.xlu1 %2105 }
0x4cbd   :  { %2109 = vst.msk [vmem:[#allocation3 + $0x10] sm:$0xff] %vm48_vm1, %v2106_v9 }
0x4cbf   :  { %2429 = vrot.lane.b32.xlu0 %v7191_v8, %s6404_s18 }
0x4cc0   :  { %v3198_v46 = vpop.permute.xlu1 %3197  ;;  %v3613_v15 = vld [vmem:[#allocation3 + $0x8] sm:$0xff] }
0x4cc1   :  { %5443 = vmatmul.mubr.msk.f32.vlgmr.msra.gmra.mrb[32].mxu1 %vm56_vm2, %v3613_v15 }
0x4cc2   :  { %6077 = vmatpush3.bf16.msra.mxu1 %v7498_v33  ;;  %5480 = vmatprep.mubr.msk.f32.mxu1 %vm6401_vm0, %v6402_v4 }
0x4cc3   :  { %3090 = vrot.lane.b32.xlu0 %v7402_v18, %s6403_s17  ;;  %6078 = vmatprep.subr.bf16.mxu1 %v6400_v0 }
0x4cc4   :  { %v2322_v35 = vpop.permute.xlu1 %2321 }
0x4cc5   :  { %2325 = vst.msk [vmem:[#allocation3 + $0x20] sm:$0xff] %vm48_vm1, %v2322_v35 }
0x4cc6   :  { %6080 = vmatpush3.bf16.msra.mxu1 %v7510_v42 }
0x4cc7   :  { %2645 = vrot.lane.b32.xlu0 %v2643_v60, %s6404_s18  ;;  %6081 = vmatprep.subr.bf16.mxu1 %v6400_v0 }
0x4cc8   :  { %v2984_v8 = vpop.permute.xlu1 %2983 }
0x4cca   :  { %6083 = vmatpush3.bf16.msra.mxu1 %v7522_v56 }
0x4ccb   :  { %2876 = vrot.lane.b32.xlu0 %v7352_v52, %s6403_s17  ;;  %6084 = vmatprep.subr.bf16.mxu1 %v6400_v0 }
0x4ccc   :  { %v2538_v18 = vpop.permute.xlu1 %2537 }
0x4ccd   :  { %2541 = vst.msk [vmem:[#allocation3 + $0x30] sm:$0xff] %vm48_vm1, %v2538_v18 }
0x4cce   :  { %6086 = vmatpush3.bf16.msra.mxu1 %v7534_v53 }
0x4ccf   :  { %6099 = vmatprep.subr.bf16.mxu1 %v6400_v0 }
0x4cd0   :  { %v2770_v6 = vpop.permute.xlu1 %2769 }
0x4d25   :  { %v3519_v17 = vpop.permute.xlu0 %3518 }
0x4d26   :  { %3521 = vst.msk [vmem:[#allocation3] sm:$0xff] %vm1040_vm3, %v3519_v17 }
0x4d29   :  { %v2214_v34 = vpop.permute.xlu0 %2213 }
0x4d2a   :  { %2217 = vst.msk [vmem:[#allocation3 + $0x18] sm:$0xff] %vm48_vm1, %v2214_v34 }
0x4d2b   :  { %3200 = vst.msk [vmem:[#allocation3 + $0x18] sm:$0xff] %vm1040_vm3, %v3198_v46 }
0x4d2d   :  { %v3305_v32 = vpop.permute.xlu0 %3304  ;;  %v3531_v27 = vld [vmem:[#allocation3] sm:$0xff] }
0x4d2e   :  { %3307 = vst.msk [vmem:[#allocation3 + $0x10] sm:$0xff] %vm1040_vm3, %v3305_v32  ;;  %5424 = vmatmul.mubr.msk.f32.vlgmr.msra.gmra.mrb[32].mxu0 %vm56_vm2, %v3531_v27 }
0x4d2f   :  { %6065 = vmatpush3.bf16.msra.mxu0 %v7498_v33  ;;  %5461 = vmatprep.mubr.msk.f32.mxu0 %vm6401_vm0, %v6402_v4 }
0x4d30   :  { %6066 = vmatprep.subr.bf16.mxu0 %v6400_v0 }
0x4d31   :  { %v2430_v52 = vpop.permute.xlu0 %2429 }
0x4d32   :  { %2433 = vst.msk [vmem:[#allocation3 + $0x28] sm:$0xff] %vm48_vm1, %v2430_v52  ;;  %v3765_v59 = vld [vmem:[#allocation3 + $0x18] sm:$0xff] }
0x4d33   :  { %2986 = vst.msk [vmem:[#allocation3 + $0x28] sm:$0xff] %vm1040_vm3, %v2984_v8  ;;  %6068 = vmatpush3.bf16.msra.mxu0 %v7510_v42  ;;  %5481 = vmatmul.mubr.msk.f32.vlgmr.msra.gmra.mrb[34].mxu1 %vm56_vm2, %v3765_v59 }
0x4d34   :  { %6101 = vmatpush3.bf16.msra.mxu1 %v7498_v33  ;;  %6069 = vmatprep.subr.bf16.mxu0 %v6400_v0 }
0x4d35   :  { %v3091_v30 = vpop.permute.xlu0 %3090  ;;  %6102 = vmatprep.subr.bf16.mxu1 %v6400_v0  ;;  %5518 = vmatprep.mubr.msk.f32.mxu1 %vm6401_vm0, %v6402_v4  ;;  %v3689_v50 = vld [vmem:[#allocation3 + $0x10] sm:$0xff] }
0x4d36   :  { %3093 = vst.msk [vmem:[#allocation3 + $0x20] sm:$0xff] %vm1040_vm3, %v3091_v30 }
0x4d37   :  { %6071 = vmatpush3.bf16.msra.mxu0 %v7522_v56 }
0x4d38   :  { %6104 = vmatpush3.bf16.msra.mxu1 %v7510_v42  ;;  %6072 = vmatprep.subr.bf16.mxu0 %v6400_v0 }
0x4d39   :  { %v2646_v31 = vpop.permute.xlu0 %2645  ;;  %6105 = vmatprep.subr.bf16.mxu1 %v6400_v0 }
0x4d3a   :  { %2649 = vst.msk [vmem:[#allocation3 + $0x38] sm:$0xff] %vm48_vm1, %v2646_v31  ;;  %v3917_v20 = vld [vmem:[#allocation3 + $0x28] sm:$0xff] }
0x4d3b   :  { %2772 = vst.msk [vmem:[#allocation3 + $0x38] sm:$0xff] %vm1040_vm3, %v2770_v6  ;;  %6074 = vmatpush3.bf16.msra.mxu0 %v7534_v53 }
0x4d3c   :  { %6107 = vmatpush3.bf16.msra.mxu1 %v7522_v56  ;;  %6087 = vmatprep.subr.bf16.mxu0 %v6400_v0 }
0x4d3d   :  { %v2877_v43 = vpop.permute.xlu0 %2876  ;;  %6108 = vmatprep.subr.bf16.mxu1 %v6400_v0  ;;  %v3841_v41 = vld [vmem:[#allocation3 + $0x20] sm:$0xff] }
0x4d3e   :  { %5462 = vmatmul.mubr.msk.f32.vlgmr.msra.gmra.mrb[34].mxu0 %vm56_vm2, %v3689_v50  ;;  %2879 = vst.msk [vmem:[#allocation3 + $0x30] sm:$0xff] %vm1040_vm3, %v2877_v43 }
0x4d3f   :  { %6089 = vmatpush3.bf16.msra.mxu0 %v7498_v33  ;;  %5499 = vmatprep.mubr.msk.f32.mxu0 %vm6401_vm0, %v6402_v4 }
0x4d40   :  { %6110 = vmatpush3.bf16.msra.mxu1 %v7534_v53  ;;  %6090 = vmatprep.subr.bf16.mxu0 %v6400_v0 }
0x4d41   :  { %6123 = vmatprep.subr.bf16.mxu1 %v6400_v0 }
0x4d42   :  { %v4069_v23 = vld [vmem:[#allocation3 + $0x38] sm:$0xff] }
0x4d43   :  { %6092 = vmatpush3.bf16.msra.mxu0 %v7510_v42  ;;  %5519 = vmatmul.mubr.msk.f32.vlgmr.msra.gmra.mrb[36].mxu1 %vm56_vm2, %v3917_v20 }
0x4d44   :  { %6125 = vmatpush3.bf16.msra.mxu1 %v7498_v33  ;;  %6093 = vmatprep.subr.bf16.mxu0 %v6400_v0 }
0x4d45   :  { %6126 = vmatprep.subr.bf16.mxu1 %v6400_v0  ;;  %5556 = vmatprep.mubr.msk.f32.mxu1 %vm6401_vm0, %v6402_v4  ;;  %v3993_v19 = vld [vmem:[#allocation3 + $0x30] sm:$0xff] }
0x4d47   :  { %6095 = vmatpush3.bf16.msra.mxu0 %v7522_v56 }
0x4d48   :  { %6128 = vmatpush3.bf16.msra.mxu1 %v7510_v42  ;;  %6096 = vmatprep.subr.bf16.mxu0 %v6400_v0 }
0x4d49   :  { %6129 = vmatprep.subr.bf16.mxu1 %v6400_v0 }
0x4d4b   :  { %6098 = vmatpush3.bf16.msra.mxu0 %v7534_v53 }
0x4d4c   :  { %6131 = vmatpush3.bf16.msra.mxu1 %v7522_v56  ;;  %6111 = vmatprep.subr.bf16.mxu0 %v6400_v0 }
0x4d4d   :  { %6132 = vmatprep.subr.bf16.mxu1 %v6400_v0 }
0x4d4e   :  { %5500 = vmatmul.mubr.msk.f32.vlgmr.msra.gmra.mrb[36].mxu0 %vm56_vm2, %v3841_v41 }
0x4d4f   :  { %6113 = vmatpush3.bf16.msra.mxu0 %v7498_v33  ;;  %5537 = vmatprep.mubr.msk.f32.mxu0 %vm6401_vm0, %v6402_v4  ;;  %v4231_v4 = vld [vmem:[%s7697_s10] ss:$0 sm:$0xff] }
0x4d50   :  { %6134 = vmatpush3.bf16.msra.mxu1 %v7534_v53  ;;  %6114 = vmatprep.subr.bf16.mxu0 %v6400_v0 }
0x4d53   :  { %6116 = vmatpush3.bf16.msra.mxu0 %v7510_v42  ;;  %5557 = vmatmul.mubr.msk.f32.vlgmr.msra.gmra.mrb[38].mxu1 %vm56_vm2, %v4069_v23 }
0x4d54   :  { %6117 = vmatprep.subr.bf16.mxu0 %v6400_v0 }
0x4d57   :  { %6119 = vmatpush3.bf16.msra.mxu0 %v7522_v56 }
0x4d58   :  { %6120 = vmatprep.subr.bf16.mxu0 %v6400_v0 }
0x4d5b   :  { %6122 = vmatpush3.bf16.msra.mxu0 %v7534_v53 }
0x4d5e   :  { %5538 = vmatmul.mubr.msk.f32.vlgmr.msra.gmra.mrb[38].mxu0 %vm56_vm2, %v3993_v19 }
0x4d94   :  { %v3683_v62 = vpop.f32.mrb[32].mxu1 }
0x4d95   :  { %v3684_v26 = vadd.f32 %v4231_v4, %v3683_v62  ;;  %v5444_v5 = vpop.f32.mrb[33].mxu1 }
0x4d97   :  { %4234 = vst.msk [vmem:[%s7698_s11 + $0x8] sm:$0xff] %vm3611_vm5, %v3684_v26 }
0x4e01   :  { %v3607_v61 = vpop.f32.mrb[32].mxu0 }
0x4e02   :  { %v3608_v0 = vadd.f32 %v4231_v4, %v3607_v61  ;;  %v5425_v24 = vpop.f32.mrb[33].mxu0 }
0x4e04   :  { %3612 = vst.msk [vmem:[%s7698_s11] sm:$0xff] %vm3611_vm5, %v3608_v0 }
0x4e06   :  { %v3835_v11 = vpop.f32.mrb[34].mxu1 }
0x4e07   :  { %v3836_v25 = vadd.f32 %v4231_v4, %v3835_v11  ;;  %v5482_v29 = vpop.f32.mrb[35].mxu1 }
0x4e09   :  { %4238 = vst.msk [vmem:[%s7698_s11 + $0x18] sm:$0xff] %vm3611_vm5, %v3836_v25 }
0x4e11   :  { %v3759_v38 = vpop.f32.mrb[34].mxu0 }
0x4e12   :  { %v3760_v63 = vadd.f32 %v4231_v4, %v3759_v38  ;;  %v5463_v40 = vpop.f32.mrb[35].mxu0 }
0x4e14   :  { %4236 = vst.msk [vmem:[%s7698_s11 + $0x10] sm:$0xff] %vm3611_vm5, %v3760_v63 }
0x4e16   :  { %v3987_v2 = vpop.f32.mrb[36].mxu1 }
0x4e17   :  { %v3988_v45 = vadd.f32 %v4231_v4, %v3987_v2  ;;  %v5520_v10 = vpop.f32.mrb[37].mxu1 }
0x4e19   :  { %4242 = vst.msk [vmem:[%s7698_s11 + $0x28] sm:$0xff] %vm3611_vm5, %v3988_v45 }
0x4e21   :  { %v3911_v13 = vpop.f32.mrb[36].mxu0 }
0x4e22   :  { %v3912_v37 = vadd.f32 %v4231_v4, %v3911_v13  ;;  %v5501_v1 = vpop.f32.mrb[37].mxu0 }
0x4e24   :  { %4240 = vst.msk [vmem:[%s7698_s11 + $0x20] sm:$0xff] %vm3611_vm5, %v3912_v37 }
0x4e26   :  { %v4139_v3 = vpop.f32.mrb[38].mxu1 }
0x4e27   :  { %v4140_v22 = vadd.f32 %v4231_v4, %v4139_v3  ;;  %v5558_v21 = vpop.f32.mrb[39].mxu1 }
0x4e29   :  { %4246 = vst.msk [vmem:[%s7698_s11 + $0x38] sm:$0xff] %vm3611_vm5, %v4140_v22 }
0x4e31   :  { %v4063_v51 = vpop.f32.mrb[38].mxu0 }
0x4e32   :  { %v4064_v55 = vadd.f32 %v4231_v4, %v4063_v51  ;;  %v5539_v7 = vpop.f32.mrb[39].mxu0 }
0x4e34   :  { %4244 = vst.msk [vmem:[%s7698_s11 + $0x30] sm:$0xff] %vm3611_vm5, %v4064_v55 }

</bundles_post_ra>
